<compile_context>
chip_gen: v5e
topology: v5e:2x2
jax: 0.10.0
libtpu: 0.0.40
codegen_flags: <defaults>
</compile_context>

<pallas_src>
import functools

import jax
import jax.numpy as jnp
import numpy as np
from jax.experimental import pallas as pl
from jax.experimental.pallas import tpu as pltpu


def am_kernel(x_ref, mask_ref, bias_ref, w_uu_ref, b_uu_ref, w_conv_ref,
              out_ref, au_ref, *, bt, H, W, mix, neg_slope, conv_dtype):
    """One grid step: `bt` samples, all I/O lane-dense (last dim = bt*H*W)."""
    nk = w_uu_ref.shape[0]            # 10 Linear out-features / attention heads
    cout = out_ref.shape[0]
    HW = H * W
    N = bt * HW

    x2 = x_ref[...]                                            # (cin, N) f32

    # ---- uu = Linear(cin -> 10) per pixel: one matmul with N = bt*H*W.
    uu2 = jnp.dot(w_uu_ref[...], x2,
                  preferred_element_type=jnp.float32) + b_uu_ref[...]  # (10, N)

    # ---- 3x3 conv (padding=1, no bias, BN folded into weights + bias image):
    #      im2col via 9 static lane rolls (XLU) + 0/1 edge masks, one matmul.
    masks = mask_ref[...]                                      # (9, HW) 0/1 f32
    taps = []
    for t in range(9):
        oy, ox = t // 3 - 1, t % 3 - 1
        d = oy * W + ox                       # flat source offset for this tap
        shifted = x2 if d == 0 else pltpu.roll(x2, shift=(-d) % N, axis=1)
        m = masks[t:t + 1, :]                                  # (1, HW)
        if bt > 1:
            m = jnp.tile(m, (1, bt))
        taps.append(shifted * m)              # zero the (would-be) padding halo
    patches = jnp.concatenate(taps, axis=0)                    # (9*cin, N)
    y2 = jnp.dot(w_conv_ref[...].astype(conv_dtype),
                 patches.astype(conv_dtype),
                 preferred_element_type=jnp.float32)           # (cout, N)
    bias = bias_ref[...]                                       # (cout, HW)
    y2 = y2 + (bias if bt == 1 else jnp.tile(bias, (1, bt)))
    # LeakyReLU(0.1) -- lane-dense VPU select.
    y2 = jnp.where(y2 >= 0.0, y2, neg_slope * y2)

    # ---- attention: au = softmax(-cdist(uu,uu)^2 / sqrt(W)) per sample/head.
    neg_inv_sqrt_w = -1.0 / (float(W) ** 0.5)
    au_parts = []
    out_parts = []
    for s in range(bt):                                        # static unroll
        uu = uu2[:, s * HW:(s + 1) * HW].reshape(nk, H, W)     # (10, H, W)
        g = jnp.einsum('kiw,kjw->kij', uu, uu,
                       preferred_element_type=jnp.float32)     # (10, H, H)
        sq = jnp.sum(uu * uu, axis=-1, keepdims=True)          # (10, H, 1)
        d2 = jnp.maximum(sq + sq.reshape(nk, 1, H) - 2.0 * g, 0.0)
        logits = d2 * neg_inv_sqrt_w
        mmax = jnp.max(logits, axis=-1, keepdims=True)
        e = jnp.exp(logits - mmax)
        denom = jnp.sum(e, axis=-1, keepdims=True)
        au = e * pl.reciprocal(denom, approx=True)             # (10, H, H), EUP
        au_parts.append(au.reshape(nk, H * H))                 # lane-dense store

        if mix:
            ad = jnp.mean(au, axis=0)                          # (H, H)
            ys = y2[:, s * HW:(s + 1) * HW].reshape(cout, H, W)
            mixed = jnp.einsum('ij,cjw->ciw', ad, ys,
                               preferred_element_type=jnp.float32)
            out_parts.append(mixed.reshape(cout, HW))

    au_ref[...] = au_parts[0] if bt == 1 else jnp.concatenate(au_parts, axis=1)
    if mix:
        out2 = out_parts[0] if bt == 1 else jnp.concatenate(out_parts, axis=1)
    else:
        out2 = y2
    out_ref[...] = out2.astype(out_ref.dtype)


def _samples_per_step(batch, max_per_step=8):
    """bt samples per grid step: amortizes the ~0.35us/step Pallas overhead for
    larger batches while keeping >= 2 grid steps so both v7x TCs get work."""
    if batch <= 2:
        return 1
    for bt in range(min(max_per_step, batch // 2), 0, -1):
        if batch % bt == 0:
            return bt
    return 1


def am_forward(x, params, *, mix=True, training=True, eps=1e-5,
               samples_per_step=None, conv_dtype=jnp.float32):
    """JAX/Pallas equivalent of AM.forward.  x is NCHW float32."""
    B, cin, H, W = x.shape
    cout, _, kh, kw = params["w_conv"].shape
    assert (kh, kw) == (3, 3)
    HW, HH = H * W, H * H
    # Lane-dense blocks require H*W and H*H to be multiples of 128 (true for
    # the 16x16 demo).  If H is scaled up, also re-check the v7x 64 MiB VMEM
    # budget (au block = 10*bt*H*H*4 B, double-buffered) and set
    # pltpu.CompilerParams(vmem_limit_bytes=...) / tile au over rows.
    assert HW % 128 == 0 and HH % 128 == 0

    x = x.astype(jnp.float32)

    # ---- BatchNorm2d folded into the conv (glue, computed once per call).
    # TODO(synk): running-stat (momentum) buffer updates are a training side
    # effect and are not modeled; only the normalization itself is.
    if training:
        mean = jnp.mean(x, axis=(0, 2, 3))
        var = jnp.var(x, axis=(0, 2, 3))       # biased var, as PyTorch training
    else:
        mean = params["bn_mean"]
        var = params["bn_var"]
    scale = params["bn_gamma"] / jnp.sqrt(var + eps)            # (cin,)
    shift = params["bn_beta"] - mean * scale                    # (cin,)

    w_conv = params["w_conv"].astype(jnp.float32)               # (cout,cin,3,3)
    # scale folds per input channel into the weights (tap-major, channel-minor
    # to match the kernel's im2col concatenation order) ...
    w_fused = jnp.transpose(w_conv * scale.reshape(1, cin, 1, 1),
                            (0, 2, 3, 1)).reshape(cout, 9 * cin)
    # ... and shift becomes a batch-independent (cout, H, W) bias image that
    # accounts for the zero padding (padded pixels contribute 0, not shift).
    shift_pad = jnp.pad(jnp.broadcast_to(shift.reshape(cin, 1, 1), (cin, H, W)),
                        ((0, 0), (1, 1), (1, 1)))
    bias_img = jnp.zeros((cout, H, W), jnp.float32)
    for dy in range(3):
        for dx in range(3):
            bias_img = bias_img + jnp.einsum(
                'oc,chw->ohw', w_conv[:, :, dy, dx],
                shift_pad[:, dy:dy + H, dx:dx + W])
    bias2 = bias_img.reshape(cout, HW)

    # 0/1 validity masks for the 9 conv taps (zero-padding halo), per pixel.
    rows = np.arange(HW) // W
    cols = np.arange(HW) % W
    tap_masks = np.zeros((9, HW), np.float32)
    for t in range(9):
        oy, ox = t // 3 - 1, t % 3 - 1
        tap_masks[t] = ((rows + oy >= 0) & (rows + oy < H) &
                        (cols + ox >= 0) & (cols + ox < W))
    tap_masks = jnp.asarray(tap_masks)

    w_uu = params["w_uu"].astype(jnp.float32)                   # (10, cin)
    b_uu = params["b_uu"].reshape(-1, 1).astype(jnp.float32)    # (10, 1)

    # ---- channel-major, lane-dense layout: (cin, B*H*W).
    x2d = jnp.transpose(x, (1, 0, 2, 3)).reshape(cin, B * HW)

    bt = _samples_per_step(B) if samples_per_step is None else samples_per_step
    assert B % bt == 0
    grid = (B // bt,)

    kernel = functools.partial(am_kernel, bt=bt, H=H, W=W, mix=mix,
                               neg_slope=0.1, conv_dtype=conv_dtype)

    grid_spec = pltpu.PrefetchScalarGridSpec(
        num_scalar_prefetch=0,
        grid=grid,
        in_specs=[
            pl.BlockSpec((cin, bt * HW), lambda b: (0, b)),     # x, lane-dense
            pl.BlockSpec((9, HW), lambda b: (0, 0)),            # tap masks
            pl.BlockSpec((cout, HW), lambda b: (0, 0)),         # BN-fold bias
            pl.BlockSpec((10, cin), lambda b: (0, 0)),          # Linear weight
            pl.BlockSpec((10, 1), lambda b: (0, 0)),            # Linear bias
            pl.BlockSpec((cout, 9 * cin), lambda b: (0, 0)),    # fused conv W
        ],
        out_specs=[
            pl.BlockSpec((cout, bt * HW), lambda b: (0, b)),
            pl.BlockSpec((10, bt * HH), lambda b: (0, b)),
        ],
    )

    out2, au2 = pl.pallas_call(
        kernel,
        out_shape=(jax.ShapeDtypeStruct((cout, B * HW), jnp.float32),
                   jax.ShapeDtypeStruct((10, B * HH), jnp.float32)),
        grid_spec=grid_spec,
        compiler_params=pltpu.CompilerParams(
            dimension_semantics=("parallel",)),
    )(x2d, tap_masks, bias2, w_uu, b_uu, w_fused)

    out = out2.reshape(cout, B, H, W).transpose(1, 0, 2, 3)
    au = au2.reshape(10, B, H, H).transpose(1, 0, 2, 3)
    return out, au


def init_params(key, cin, cout, k=3):
    k1, k2, k3 = jax.random.split(key, 3)
    return dict(
        # nn.BatchNorm2d(cin) parameters / buffers
        bn_gamma=jnp.ones((cin,), jnp.float32),
        bn_beta=jnp.zeros((cin,), jnp.float32),
        bn_mean=jnp.zeros((cin,), jnp.float32),
        bn_var=jnp.ones((cin,), jnp.float32),
        # nn.Conv2d(cin, cout, 3, padding=1, bias=False)
        w_conv=jax.random.normal(k1, (cout, cin, k, k), jnp.float32)
        * (1.0 / (cin * k * k) ** 0.5),
        # nn.Linear(cin, 10)
        w_uu=jax.random.normal(k2, (10, cin), jnp.float32) * (1.0 / cin ** 0.5),
        b_uu=jax.random.normal(k3, (10,), jnp.float32) * 0.01,
    )


if __name__ == "__main__":
    key = jax.random.PRNGKey(0)
    kx, kp = jax.random.split(key)
    B, cin, cout, H, W = 2, 4, 8, 16, 16
    x = jax.random.normal(kx, (B, cin, H, W), jnp.float32)
    params = init_params(kp, cin, cout)

    out, au = am_forward(x, params, mix=True, training=True)
    jax.block_until_ready((out, au))
    assert out.shape == (B, cout, H, W) and out.dtype == jnp.float32
    assert au.shape == (B, 10, H, H) and au.dtype == jnp.float32
    assert bool(jnp.all(jnp.isfinite(out))) and bool(jnp.all(jnp.isfinite(au)))
    # softmax rows must sum to ~1 (loose tolerance: approx reciprocal on EUP)
    row_sums = jnp.sum(au, axis=-1)
    assert bool(jnp.all(jnp.abs(row_sums - 1.0) < 1e-2))
    print("KERNEL_OK")
</pallas_src>

<mosaic_0001>
module attributes {stable_mosaic.version = 11 : i64} {
  func.func @am_kernel(%arg0: i32, %arg1: memref<4x256xf32, #tpu.memory_space<vmem>>, %arg2: memref<9x256xf32, #tpu.memory_space<vmem>>, %arg3: memref<8x256xf32, #tpu.memory_space<vmem>>, %arg4: memref<10x4xf32, #tpu.memory_space<vmem>>, %arg5: memref<10x1xf32, #tpu.memory_space<vmem>>, %arg6: memref<8x36xf32, #tpu.memory_space<vmem>>, %arg7: memref<8x256xf32, #tpu.memory_space<vmem>>, %arg8: memref<10x256xf32, #tpu.memory_space<vmem>>) attributes {dimension_semantics = [#tpu.dimension_semantics<parallel>], iteration_bounds = array<i64: 2>, scalar_prefetch = 0 : i64, scratch_operands = 0 : i64, tpu.core_type = #tpu.core_type<tc>, window_params = [{transform_indices = @transform_0, window_bounds = array<i64: 4, 256>}, {pipeline_mode = #tpu.pipeline_mode<synchronous>, transform_indices = @transform_1, window_bounds = array<i64: 9, 256>}, {pipeline_mode = #tpu.pipeline_mode<synchronous>, transform_indices = @transform_2, window_bounds = array<i64: 8, 256>}, {pipeline_mode = #tpu.pipeline_mode<synchronous>, transform_indices = @transform_3, window_bounds = array<i64: 10, 4>}, {pipeline_mode = #tpu.pipeline_mode<synchronous>, transform_indices = @transform_4, window_bounds = array<i64: 10, 1>}, {pipeline_mode = #tpu.pipeline_mode<synchronous>, transform_indices = @transform_5, window_bounds = array<i64: 8, 36>}, {transform_indices = @transform_6, window_bounds = array<i64: 8, 256>}, {transform_indices = @transform_7, window_bounds = array<i64: 10, 256>}]} {
    %c0 = arith.constant 0 : index
    %c0_0 = arith.constant 0 : index
    %0 = vector.load %arg1[%c0, %c0_0] : memref<4x256xf32, #tpu.memory_space<vmem>>, vector<4x256xf32>
    %c0_1 = arith.constant 0 : index
    %c0_2 = arith.constant 0 : index
    %1 = vector.load %arg4[%c0_1, %c0_2] : memref<10x4xf32, #tpu.memory_space<vmem>>, vector<10x4xf32>
    %cst = arith.constant dense<0.000000e+00> : vector<10x256xf32>
    %2 = tpu.matmul %1, %0, %cst {dimension_numbers = #tpu.dot_dimension_numbers<[1], [0], [0], [1], [0, 0, 1, 1], [], []>} : vector<10x4xf32>, vector<4x256xf32>, vector<10x256xf32> -> vector<10x256xf32>
    %c0_3 = arith.constant 0 : index
    %c0_4 = arith.constant 0 : index
    %3 = vector.load %arg5[%c0_3, %c0_4] : memref<10x1xf32, #tpu.memory_space<vmem>>, vector<10x1xf32>
    %4 = vector.broadcast %3 : vector<10x1xf32> to vector<10x256xf32>
    %5 = arith.addf %2, %4 : vector<10x256xf32>
    %c0_5 = arith.constant 0 : index
    %c0_6 = arith.constant 0 : index
    %6 = vector.load %arg2[%c0_5, %c0_6] : memref<9x256xf32, #tpu.memory_space<vmem>>, vector<9x256xf32>
    %c17_i32 = arith.constant 17 : i32
    %7 = tpu.dynamic_rotate %0 by %c17_i32 dim 1 : vector<4x256xf32>, i32 -> vector<4x256xf32>
    %8 = vector.extract_strided_slice %6 {offsets = [0, 0], sizes = [1, 256], strides = [1, 1]} : vector<9x256xf32> to vector<1x256xf32>
    %9 = vector.broadcast %8 : vector<1x256xf32> to vector<4x256xf32>
    %10 = arith.mulf %7, %9 : vector<4x256xf32>
    %c16_i32 = arith.constant 16 : i32
    %11 = tpu.dynamic_rotate %0 by %c16_i32 dim 1 : vector<4x256xf32>, i32 -> vector<4x256xf32>
    %12 = vector.extract_strided_slice %6 {offsets = [1, 0], sizes = [1, 256], strides = [1, 1]} : vector<9x256xf32> to vector<1x256xf32>
    %13 = vector.broadcast %12 : vector<1x256xf32> to vector<4x256xf32>
    %14 = arith.mulf %11, %13 : vector<4x256xf32>
    %c15_i32 = arith.constant 15 : i32
    %15 = tpu.dynamic_rotate %0 by %c15_i32 dim 1 : vector<4x256xf32>, i32 -> vector<4x256xf32>
    %16 = vector.extract_strided_slice %6 {offsets = [2, 0], sizes = [1, 256], strides = [1, 1]} : vector<9x256xf32> to vector<1x256xf32>
    %17 = vector.broadcast %16 : vector<1x256xf32> to vector<4x256xf32>
    %18 = arith.mulf %15, %17 : vector<4x256xf32>
    %c1_i32 = arith.constant 1 : i32
    %19 = tpu.dynamic_rotate %0 by %c1_i32 dim 1 : vector<4x256xf32>, i32 -> vector<4x256xf32>
    %20 = vector.extract_strided_slice %6 {offsets = [3, 0], sizes = [1, 256], strides = [1, 1]} : vector<9x256xf32> to vector<1x256xf32>
    %21 = vector.broadcast %20 : vector<1x256xf32> to vector<4x256xf32>
    %22 = arith.mulf %19, %21 : vector<4x256xf32>
    %23 = vector.extract_strided_slice %6 {offsets = [4, 0], sizes = [1, 256], strides = [1, 1]} : vector<9x256xf32> to vector<1x256xf32>
    %24 = vector.broadcast %23 : vector<1x256xf32> to vector<4x256xf32>
    %25 = arith.mulf %0, %24 : vector<4x256xf32>
    %c255_i32 = arith.constant 255 : i32
    %26 = tpu.dynamic_rotate %0 by %c255_i32 dim 1 : vector<4x256xf32>, i32 -> vector<4x256xf32>
    %27 = vector.extract_strided_slice %6 {offsets = [5, 0], sizes = [1, 256], strides = [1, 1]} : vector<9x256xf32> to vector<1x256xf32>
    %28 = vector.broadcast %27 : vector<1x256xf32> to vector<4x256xf32>
    %29 = arith.mulf %26, %28 : vector<4x256xf32>
    %c241_i32 = arith.constant 241 : i32
    %30 = tpu.dynamic_rotate %0 by %c241_i32 dim 1 : vector<4x256xf32>, i32 -> vector<4x256xf32>
    %31 = vector.extract_strided_slice %6 {offsets = [6, 0], sizes = [1, 256], strides = [1, 1]} : vector<9x256xf32> to vector<1x256xf32>
    %32 = vector.broadcast %31 : vector<1x256xf32> to vector<4x256xf32>
    %33 = arith.mulf %30, %32 : vector<4x256xf32>
    %c240_i32 = arith.constant 240 : i32
    %34 = tpu.dynamic_rotate %0 by %c240_i32 dim 1 : vector<4x256xf32>, i32 -> vector<4x256xf32>
    %35 = vector.extract_strided_slice %6 {offsets = [7, 0], sizes = [1, 256], strides = [1, 1]} : vector<9x256xf32> to vector<1x256xf32>
    %36 = vector.broadcast %35 : vector<1x256xf32> to vector<4x256xf32>
    %37 = arith.mulf %34, %36 : vector<4x256xf32>
    %c239_i32 = arith.constant 239 : i32
    %38 = tpu.dynamic_rotate %0 by %c239_i32 dim 1 : vector<4x256xf32>, i32 -> vector<4x256xf32>
    %39 = vector.extract_strided_slice %6 {offsets = [8, 0], sizes = [1, 256], strides = [1, 1]} : vector<9x256xf32> to vector<1x256xf32>
    %40 = vector.broadcast %39 : vector<1x256xf32> to vector<4x256xf32>
    %41 = arith.mulf %38, %40 : vector<4x256xf32>
    %42 = tpu.concatenate %10, %14, %18, %22, %25, %29, %33, %37, %41 in 0 : vector<4x256xf32>, vector<4x256xf32>, vector<4x256xf32>, vector<4x256xf32>, vector<4x256xf32>, vector<4x256xf32>, vector<4x256xf32>, vector<4x256xf32>, vector<4x256xf32> -> vector<36x256xf32>
    %c0_7 = arith.constant 0 : index
    %c0_8 = arith.constant 0 : index
    %43 = vector.load %arg6[%c0_7, %c0_8] : memref<8x36xf32, #tpu.memory_space<vmem>>, vector<8x36xf32>
    %cst_9 = arith.constant dense<0.000000e+00> : vector<8x256xf32>
    %44 = tpu.matmul %43, %42, %cst_9 {dimension_numbers = #tpu.dot_dimension_numbers<[1], [0], [0], [1], [0, 0, 1, 1], [], []>} : vector<8x36xf32>, vector<36x256xf32>, vector<8x256xf32> -> vector<8x256xf32>
    %c0_10 = arith.constant 0 : index
    %c0_11 = arith.constant 0 : index
    %45 = vector.load %arg3[%c0_10, %c0_11] : memref<8x256xf32, #tpu.memory_space<vmem>>, vector<8x256xf32>
    %46 = arith.addf %44, %45 : vector<8x256xf32>
    %cst_12 = arith.constant 0.000000e+00 : f32
    %47 = vector.broadcast %cst_12 : f32 to vector<8x256xf32>
    %48 = arith.cmpf oge, %46, %47 : vector<8x256xf32>
    %cst_13 = arith.constant 1.000000e-01 : f32
    %49 = vector.broadcast %cst_13 : f32 to vector<8x256xf32>
    %50 = arith.mulf %49, %46 : vector<8x256xf32>
    %51 = arith.select %48, %46, %50 : vector<8x256xi1>, vector<8x256xf32>
    %52 = vector.shape_cast %5 : vector<10x256xf32> to vector<10x16x16xf32>
    "tpu.trace_start"() <{level = 10 : i32, message = "kiw,kjw->kij"}> : () -> ()
    %cst_14 = arith.constant dense<0.000000e+00> : vector<10x16x16xf32>
    %53 = tpu.matmul %52, %52, %cst_14 {dimension_numbers = #tpu.dot_dimension_numbers<[2], [2], [1], [1], [0, 0, 0, 1, 1, 1], [0], [0]>} : vector<10x16x16xf32>, vector<10x16x16xf32>, vector<10x16x16xf32> -> vector<10x16x16xf32>
    "tpu.trace_stop"() : () -> ()
    %54 = arith.mulf %52, %52 : vector<10x16x16xf32>
    %cst_15 = arith.constant dense<0.000000e+00> : vector<10x16xf32>
    %55 = vector.multi_reduction <add>, %54, %cst_15 [2] : vector<10x16x16xf32> to vector<10x16xf32>
    %56 = vector.shape_cast %55 : vector<10x16xf32> to vector<10x16x1xf32>
    %57 = vector.shape_cast %56 : vector<10x16x1xf32> to vector<10x1x16xf32>
    %58 = vector.broadcast %56 : vector<10x16x1xf32> to vector<10x16x16xf32>
    %59 = vector.broadcast %57 : vector<10x1x16xf32> to vector<10x16x16xf32>
    %60 = arith.addf %58, %59 : vector<10x16x16xf32>
    %cst_16 = arith.constant 2.000000e+00 : f32
    %61 = vector.broadcast %cst_16 : f32 to vector<10x16x16xf32>
    %62 = arith.mulf %61, %53 : vector<10x16x16xf32>
    %63 = arith.subf %60, %62 : vector<10x16x16xf32>
    %cst_17 = arith.constant 0.000000e+00 : f32
    %64 = vector.broadcast %cst_17 : f32 to vector<10x16x16xf32>
    %65 = arith.maximumf %63, %64 : vector<10x16x16xf32>
    %cst_18 = arith.constant -2.500000e-01 : f32
    %66 = vector.broadcast %cst_18 : f32 to vector<10x16x16xf32>
    %67 = arith.mulf %65, %66 : vector<10x16x16xf32>
    %cst_19 = arith.constant dense<0xFF800000> : vector<10x16xf32>
    %68 = vector.multi_reduction <maximumf>, %67, %cst_19 [2] : vector<10x16x16xf32> to vector<10x16xf32>
    %69 = vector.shape_cast %68 : vector<10x16xf32> to vector<10x16x1xf32>
    %70 = vector.broadcast %69 : vector<10x16x1xf32> to vector<10x16x16xf32>
    %71 = arith.subf %67, %70 : vector<10x16x16xf32>
    %72 = math.exp %71 : vector<10x16x16xf32>
    %cst_20 = arith.constant dense<0.000000e+00> : vector<10x16xf32>
    %73 = vector.multi_reduction <add>, %72, %cst_20 [2] : vector<10x16x16xf32> to vector<10x16xf32>
    %74 = vector.shape_cast %73 : vector<10x16xf32> to vector<10x16x1xf32>
    %75 = tpu.reciprocal %74 {approx = true} : vector<10x16x1xf32> -> vector<10x16x1xf32>
    %76 = vector.broadcast %75 : vector<10x16x1xf32> to vector<10x16x16xf32>
    %77 = arith.mulf %72, %76 : vector<10x16x16xf32>
    %78 = vector.shape_cast %77 : vector<10x16x16xf32> to vector<10x256xf32>
    %cst_21 = arith.constant dense<0.000000e+00> : vector<16x16xf32>
    %79 = vector.multi_reduction <add>, %77, %cst_21 [0] : vector<10x16x16xf32> to vector<16x16xf32>
    %cst_22 = arith.constant 1.000000e+01 : f32
    %80 = vector.broadcast %cst_22 : f32 to vector<16x16xf32>
    %81 = arith.divf %79, %80 : vector<16x16xf32>
    %82 = vector.shape_cast %51 : vector<8x256xf32> to vector<8x16x16xf32>
    "tpu.trace_start"() <{level = 10 : i32, message = "ij,cjw->ciw"}> : () -> ()
    %cst_23 = arith.constant dense<0.000000e+00> : vector<8x16x16xf32>
    %83 = tpu.matmul %82, %81, %cst_23 {dimension_numbers = #tpu.dot_dimension_numbers<[1], [1], [0, 2], [0], [0, 0, 0, 2, 1, 0], [], []>} : vector<8x16x16xf32>, vector<16x16xf32>, vector<8x16x16xf32> -> vector<8x16x16xf32>
    %84 = tpu.transpose %83, [0, 2, 1] : vector<8x16x16xf32> -> vector<8x16x16xf32>
    "tpu.trace_stop"() : () -> ()
    %85 = vector.shape_cast %84 : vector<8x16x16xf32> to vector<8x256xf32>
    %c0_24 = arith.constant 0 : index
    %c0_25 = arith.constant 0 : index
    %86 = vector.load %arg8[%c0_24, %c0_25] : memref<10x256xf32, #tpu.memory_space<vmem>>, vector<10x256xf32>
    tpu.vector_store %arg8[%c0_24, %c0_25], %78 {strides = array<i32>} : memref<10x256xf32, #tpu.memory_space<vmem>>, vector<10x256xf32>,
    %c0_26 = arith.constant 0 : index
    %c0_27 = arith.constant 0 : index
    %87 = vector.load %arg7[%c0_26, %c0_27] : memref<8x256xf32, #tpu.memory_space<vmem>>, vector<8x256xf32>
    tpu.vector_store %arg7[%c0_26, %c0_27], %85 {strides = array<i32>} : memref<8x256xf32, #tpu.memory_space<vmem>>, vector<8x256xf32>,
    return
  }
  func.func @transform_0(%arg0: i32) -> (i32, i32) {
    %c0_i32 = arith.constant 0 : i32
    %c0_i32_0 = arith.constant 0 : i32
    return %c0_i32, %arg0 : i32, i32
  }
  func.func @transform_1(%arg0: i32) -> (i32, i32) {
    %c0_i32 = arith.constant 0 : i32
    %c0_i32_0 = arith.constant 0 : i32
    %c0_i32_1 = arith.constant 0 : i32
    return %c0_i32, %c0_i32_0 : i32, i32
  }
  func.func @transform_2(%arg0: i32) -> (i32, i32) {
    %c0_i32 = arith.constant 0 : i32
    %c0_i32_0 = arith.constant 0 : i32
    %c0_i32_1 = arith.constant 0 : i32
    return %c0_i32, %c0_i32_0 : i32, i32
  }
  func.func @transform_3(%arg0: i32) -> (i32, i32) {
    %c0_i32 = arith.constant 0 : i32
    %c0_i32_0 = arith.constant 0 : i32
    %c0_i32_1 = arith.constant 0 : i32
    return %c0_i32, %c0_i32_0 : i32, i32
  }
  func.func @transform_4(%arg0: i32) -> (i32, i32) {
    %c0_i32 = arith.constant 0 : i32
    %c0_i32_0 = arith.constant 0 : i32
    %c0_i32_1 = arith.constant 0 : i32
    return %c0_i32, %c0_i32_0 : i32, i32
  }
  func.func @transform_5(%arg0: i32) -> (i32, i32) {
    %c0_i32 = arith.constant 0 : i32
    %c0_i32_0 = arith.constant 0 : i32
    %c0_i32_1 = arith.constant 0 : i32
    return %c0_i32, %c0_i32_0 : i32, i32
  }
  func.func @transform_6(%arg0: i32) -> (i32, i32) {
    %c0_i32 = arith.constant 0 : i32
    %c0_i32_0 = arith.constant 0 : i32
    return %c0_i32, %arg0 : i32, i32
  }
  func.func @transform_7(%arg0: i32) -> (i32, i32) {
    %c0_i32 = arith.constant 0 : i32
    %c0_i32_0 = arith.constant 0 : i32
    return %c0_i32, %arg0 : i32, i32
  }
}

</mosaic_0001>

<bundles_post_ra>
// kernel: tpu_custom_call.1
= control target key start
LH: loop header
LB: loop body
LE: loop exit
PB: predicated region body
PF: predicated region fallthrough
CT: control target
= control target key end

     0   :  { %s7535_s0 = inlined_call_operand.hbm [shape: f32[4,512], index: 0, kind: input, shape index: {}]   ;;  %s7536_s1 = inlined_call_operand.vmem [shape: f32[9,256], index: 1, kind: input, shape index: {}]   ;;  %s7537_s2 = inlined_call_operand.hbm [shape: f32[8,256], index: 2, kind: input, shape index: {}]   ;;  %s7538_s3 = inlined_call_operand.vmem [shape: f32[10,4], index: 3, kind: input, shape index: {}]   ;;  %s7539_s4 = inlined_call_operand.vmem [shape: f32[10,1], index: 4, kind: input, shape index: {}]   ;;  %s7540_s5 = inlined_call_operand.vmem [shape: f32[8,36], index: 5, kind: input, shape index: {}]   ;;  %s7541_s6 = inlined_call_operand.hbm [shape: f32[8,512], index: 6, kind: output, shape index: {0}]   ;;  %s7542_s7 = inlined_call_operand.hbm [shape: f32[10,512], index: 7, kind: output, shape index: {1}]  }
   0x1   :  { %7562 = sst [smem:[#allocation46_spill]] %s7537_s2 }
   0x2   :  { %13 = vsyncpa [#allocation3], 0 }
   0x3   :  { %15 = vsyncpa [#allocation3 + $0x1], 0 }
   0x4   :  { %16 = vsyncpa [#allocation6], 0 }
   0x5   :  { %17 = vsyncpa [#allocation4], 0 }
   0x6   :  { %19 = vsyncpa [#allocation4 + $0x1], 0 }
   0x7   :  { %20 = vsyncpa [#allocation9], 0 }
   0x8   :  { %22 = vsyncpa [#allocation9 + $0x1], 0  ;;  %s5430_s24 = smov 0   ;;  %s5432_s25 = smov 0  }
   0x9   :  { %s5434_s26 = smov 0   ;;  %s5436_s27 = smov 0  }
   0xa LB: > { %s5451_s28 = sadd.s32 4294967295, %s5368_s27   ;;  %s4942_s29 = sadd.s32 4294967294, %s5368_s27   ;;  %s5368_s27 = sphi %s5436_s27, %s7644_s27   ;;  %s5364_s26 = sphi %s5434_s26, %s7643_s26   ;;  %s5360_s25 = sphi %s5432_s25, %s7642_s25   ;;  %s5356_s24 = sphi %s5430_s24, %s7641_s24  }
   0xb   : > { %p48_p0 = scmp.ne.s32.totalorder %s5360_s25, %s5356_s24  ;;  %p49_p1 = scmp.eq.s32.totalorder %s5451_s28, 0 }
   0xc   : > { %p177_p2 = scmp.eq.s32.totalorder %s5451_s28, 1  ;;  %p183_p3 = scmp.eq.s32.totalorder %s4942_s29, 1 }
   0xd   : > { %p5460_p4 = por %p49_p1, %p48_p0  ;;  %p4943_p5 = scmp.ge.s32.totalorder %s5368_s27, 1 }
   0xe   : > { %p5465_p6 = por %p183_p3, %p48_p0  ;;  %p216_p7 = scmp.lt.s32.totalorder %s5368_s27, 3 }
   0xf   : > { %s7565_s2 = sld [smem:[#allocation46_spill]]  ;;  %s5370_s13 = smov [#allocation5]  }
  0x10   : > { %p5473_p8 = pnand %p4943_p5, %p216_p7  ;;  %s233_s14 = sshll.u32 %s5370_s13, 4  ;;  %s234_s14 = int_to_ptr.vmem [resolvable:$true] %s233_s14 }
  0x11   : > { %s5483_s15 = sadd.s32 1, %s5368_s27   ;;  %s35_s16 = sadd.s32 1, %s5364_s26 }
  0x12   : > { %p5049_p10 = pneg %p5473_p8  ;;  %s32_s17 = ssub.s32 %s5368_s27, %s5483_s15 }
  0x13   : > { %p33_p12 = scmp.eq.s32.totalorder %s32_s17, 0  ;;  %p42_p13 = scmp.ne.s32.totalorder %s5364_s26, %s5360_s25 }
  0x14   : > { %p5050_p11 = pnand %p5049_p10, %p49_p1  ;;  %p43_p0 = scmp.eq.s32.totalorder %s5368_s27, 0 }
  0x15   : > { %s231_s11 = sshll.u32 %s7565_s2, 4  ;;  %p5496_p3 = por %p177_p2, %p42_p13  ;;  %s232_s11 = int_to_ptr.hbm [resolvable:$true] %s231_s11 }
  0x16   : > { %5052 = dma.hbm_to_vmem [thread:$0]  (!%p5050_p11), %s232_s11, 256, %s234_s14, [#allocation6]  }
  0x17   : > { %s5492_s18 = scalar_select %p33_p12, %s5364_s26, %s35_s16  }
  0x18   : > { %p5065_p5 = scmp.lt.s32.totalorder %s5368_s27, 2  ;;  %s253_s20 = sand.u32 1, %s5364_s26  }
  0x19   : > { %s5030_s21 = sshll.u32 %s5368_s27, 3  ;;  %p44_p7 = por %p43_p0, %p42_p13 }
  0x1a   : > { %s4946_s22 = sshll.u32 %s253_s20, 3  ;;  %s262_s9 = scalar_lea.hbm %s7535_s0, %s5030_s21 }
  0x1b   : > { %s264_s10 = sshll.u32 %s262_s9, 4  ;;  %s257_s11 = scalar_lea.vmem [#allocation2], %s4946_s22  ;;  %s265_s10 = int_to_ptr.hbm [resolvable:$true] %s264_s10 }
  0x1c   : > { %s266_s13 = sshll.u32 %s257_s11, 4  ;;  %p5506_p10 = pnand %p5065_p5, %p44_p7  ;;  %s267_s13 = int_to_ptr.vmem [resolvable:$true] %s266_s13 }
  0x1d   : > { %s254_s16 = scalar_lea.sflag [#allocation3], %s253_s20  ;;  %s5236_s17 = sshra.s32 %s265_s10, 4  ;;  %s5237_s17 = int_to_ptr.hbm [resolvable:$true] %s5236_s17 }
  0x1e   : > { %s5238_s2 = scalar_lea.hbm %s5237_s17, 8  ;;  %p5240_p11 = pneg %p5506_p10 }
  0x1f   : > { %p5239_p2 = scmp.ne.s32.totalorder %s5237_s17, %s5238_s2  ;;  %s5243_s22 = scalar_lea.hbm %s7535_s0, 16 }
  0x20   : > { %p5244_p0 = scmp.lt.s32.totalorder %s5237_s17, %s7535_s0  ;;  %p5245_p5 = scmp.lt.s32.totalorder %s5243_s22, %s5238_s2 }
  0x21   : > { %p5241_p12 = pnand %p5240_p11, %p5239_p2 }
  0x22   : > { %p5246_p7 = por %p5245_p5, %p5244_p0 }
  0x23   : > { %p5242_p13 = pneg %p5241_p12 }
  0x25   : > { %p5247_p9 = pnand %p5246_p7, %p5242_p13 }
  0x27   : > { %5250 = shalt.err (!%p5247_p9)
}
  0x28   : > { %5056 = dma.hbm_to_vmem [thread:$0]  (!%p5506_p10), %s265_s10, 128, %s267_s13, %s254_s16  }
  0x29   : > { %275 = sbr.rel (%p5473_p8) target bundleno = 1802 (0x70a), region = 44 }
  0x2e   : > { %s5523_s20 = sand.u32 1, %s5360_s25  }
  0x2f   : > { %s4950_s11 = sshll.u32 %s5523_s20, 3  ;;  %s278_s21 = scalar_lea.sflag [#allocation3], %s5523_s20 }
  0x30   : > { %s281_s23 = scalar_lea.vmem [#allocation2], %s4950_s11 }
  0x31   : > { %5339 = dma.done.wait (%p5460_p4), %s278_s21, 128  }
  0x32   : > { %5341 = vsyncadd (%p5460_p4), %s278_s21, 4294967168 }
  0x33   : > { %5343 = dma.done.wait (%p49_p1), [#allocation6], 256  }
  0x34   : > { %5345 = vsyncadd (%p49_p1), [#allocation6], 4294967040  ;;  %v5371_v0 = vmov 0   ;;  %v5535_v1 = vld [vmem:[%s281_s23] sm:$0xff]  ;;  %v329_v2 = vld [vmem:[%s7539_s4] sm:$0xff]  ;;  %vm352_vm0 = vcmask 1043456   ;;  %v416_v49 = vlaneseq }
  0x35   : > { %5121 = vset.pattern.permute.xlu0 %v5371_v0  ;;  %342 = vst [vmem:[#allocation1] ss:$2 sm:$0xff] %v5535_v1  ;;  %v327_v3 = vld [vmem:[%s7538_s3] sm:$0xff]  ;;  %vm345_vm1 = vcmask 31744   ;;  %v330_v4 = vld [vmem:[%s7539_s4 + $0x8] sm:$0x3] }
  0x36   : > { %333 = vperm.xlu0 %5121, %v329_v2   ;;  %v328_v7 = vld [vmem:[%s7538_s3 + $0x8] sm:$0x3]  ;;  %s5372_s22 = smov 17   ;;  %s7560_s29 = smov 16   ;;  %v5571_v24 = vld [vmem:[%s7536_s1] sm:$0xff]  ;;  %v5633_v51 = vand.u32 127, %v416_v49 }
  0x37   : > { %s5374_s9 = smov 15   ;;  %s5375_s11 = smov 1   ;;  %v5576_v25 = vld [vmem:[%s7536_s1 + $0x8] sm:$0xff]  ;;  %v473_v26 = vperm.slane %v5571_v24, 4  ;;  %v525_v54 = vperm.slane %v5571_v24, 7  ;;  %v421_v56 = vperm.slane %v5571_v24, 0 }
  0x38   : > { %s5376_s21 = smov 127   ;;  %s5377_s23 = smov 113   ;;  %v474_v27 = vperm.slane %v5576_v25, 4  ;;  %vm522_vm2 = vcmp.lt.s32.totalorder %v5633_v51, 112  ;;  %vm490_vm3 = vcmp.lt.s32.totalorder %v5633_v51, 127  ;;  %v526_v55 = vperm.slane %v5576_v25, 7 }
  0x39   : > { %s5378_s2 = smov 112   ;;  %s5379_s12 = smov 111   ;;  %vm434_vm4 = vcmp.lt.s32.totalorder %v5633_v51, 16  ;;  %v437_v57 = vperm.slane %v5571_v24, 1  ;;  %v438_v58 = vperm.slane %v5576_v25, 1  ;;  %v493_v60 = vperm.slane %v5571_v24, 5 }
  0x3a   : > { %v477_v28 = vrot.slane %v474_v27, 4  ;;  %s5380_s16 = smov 80   ;;  %s7559_s17 = smov 96   ;;  %vm506_vm5 = vcmp.lt.s32.totalorder %v5633_v51, 113  ;;  %vm466_vm6 = vcmp.lt.s32.totalorder %v5633_v51, 1  ;;  %v494_v63 = vperm.slane %v5576_v25, 5 }
  0x3b   : > { %vm418_vm7 = vcmp.lt.s32.totalorder %v5633_v51, 17  ;;  %vm450_vm8 = vcmp.lt.s32.totalorder %v5633_v51, 15  ;;  %vm538_vm9 = vcmp.lt.s32.totalorder %v5633_v51, 111  ;;  %vm586_vm10 = vcmask 293888   ;;  %s4953_s14 = sshll.u32 %s5523_s20, 5  ;;  %s4796_s10 = scalar_lea.sflag [#allocation9], %s5523_s20 }
  0x3c   : > { %v343_v5 = vld.sshfl [vmem:[#allocation1] sm:$0xff pattern:$0x75316420]  ;;  %v344_v6 = vld.sshfl [vmem:[#allocation1 + $0x8] sm:$0xff pattern:$0x75316420]  ;;  %v478_v29 = vsel %vm352_vm0, %v473_v26, %v477_v28 }
  0x3d   : > { %4954 = vmatpush.msk.msra.mxu0 %vm352_vm0, %v343_v5  ;;  %4957 = vmatpush.msk.msra.mxu1 %vm352_vm0, %v344_v6  ;;  %407 = vst [vmem:[#allocation1] ss:$2 sm:$0xff] %v5535_v1  ;;  %v480_v30 = vmul.f32 %v478_v29, %v5535_v1  ;;  %v454_v26 = vperm.slane %v5576_v25, 2  ;;  %vm731_vm11 = vcmask 1047556   ;;  %vm1035_vm12 = vcmask 130048  }
  0x3e   : > { %4955 = vmatmul.msk.f32.vlgmr.msra.gmra.mxu0 %vm345_vm1, %v327_v3  ;;  %4958 = vmatmul.msk.f32.vlgmr.msra.gmra.mxu1 %vm345_vm1, %v327_v3  ;;  %v510_v3 = vperm.slane %v5576_v25, 6  ;;  %vm1429_vm15 = vcmask 130112  }
  0x3f   : > { %338 = vperm.xlu0 %5121, %v330_v4  }
  0x44   : > { %v408_v8 = vld.sshfl [vmem:[#allocation1] sm:$0xff pattern:$0x75316420]  ;;  %v409_v9 = vld.sshfl [vmem:[#allocation1 + $0x8] sm:$0xff pattern:$0x75316420] }
  0x45   : > { %412 = vrot.lane.b32.xlu1 %v408_v8, %s5372_s22  ;;  %425 = vst [vmem:[#allocation1] ss:$2 sm:$0xff] %v5535_v1 }
  0x46   : > { %4956 = vmatmul.msk.f32.gmra.mxu0 %vm345_vm1, %v328_v7  ;;  %4959 = vmatmul.msk.f32.gmra.mxu1 %vm345_vm1, %v328_v7  ;;  %vm2296_vm1 = vcmask 261120  }
  0x4c   : > { %v426_v10 = vld.sshfl [vmem:[#allocation1] sm:$0xff pattern:$0x75316420]  ;;  %v427_v11 = vld.sshfl [vmem:[#allocation1 + $0x8] sm:$0xff pattern:$0x75316420] }
  0x4d   : > { %414 = vrot.lane.b32.xlu1 %v409_v9, %s5372_s22  ;;  %441 = vst [vmem:[#allocation1] ss:$2 sm:$0xff] %v5535_v1  ;;  %430 = vrot.lane.b32.xlu2 %v426_v10, %s7560_s29  ;;  %s5382_s22 = smov 32   ;;  %v469_v9 = vperm.slane %v5571_v24, 3  ;;  %v470_v10 = vperm.slane %v5576_v25, 3 }
  0x54   : > { %v442_v12 = vld.sshfl [vmem:[#allocation1] sm:$0xff pattern:$0x75316420]  ;;  %v443_v13 = vld.sshfl [vmem:[#allocation1 + $0x8] sm:$0xff pattern:$0x75316420] }
  0x55   : > { %446 = vrot.lane.b32.xlu0 %v442_v12, %s5374_s9  ;;  %448 = vrot.lane.b32.xlu1 %v443_v13, %s5374_s9  ;;  %457 = vst [vmem:[#allocation1] ss:$2 sm:$0xff] %v5535_v1  ;;  %s5383_s9 = smov 48  }
  0x56   : > { %432 = vrot.lane.b32.xlu2 %v427_v11, %s7560_s29 }
  0x5c   : > { %v459_v14 = vld.sshfl [vmem:[#allocation1 + $0x8] sm:$0xff pattern:$0x75316420]  ;;  %v458_v15 = vld.sshfl [vmem:[#allocation1] sm:$0xff pattern:$0x75316420] }
  0x5d   : > { %464 = vrot.lane.b32.xlu0 %v459_v14, %s5375_s11  ;;  %481 = vst [vmem:[#allocation1] ss:$2 sm:$0xff] %v5535_v1 }
  0x5e   : > { %462 = vrot.lane.b32.xlu2 %v458_v15, %s5375_s11  ;;  %s5384_s11 = smov 64  }
  0x64   : > { %v482_v16 = vld.sshfl [vmem:[#allocation1] sm:$0xff pattern:$0x75316420]  ;;  %v483_v17 = vld.sshfl [vmem:[#allocation1 + $0x8] sm:$0xff pattern:$0x75316420] }
  0x65   : > { %486 = vrot.lane.b32.xlu1 %v482_v16, %s5376_s21  ;;  %497 = vst [vmem:[#allocation1] ss:$2 sm:$0xff] %v5535_v1  ;;  %v5122_v16 = vld [vmem:[%s7536_s1 + $0x10] ss:$0 sm:$0xff] }
  0x66   : > { %488 = vrot.lane.b32.xlu2 %v483_v17, %s5376_s21  ;;  %v5123_v17 = vld [vmem:[%s7536_s1 + $0x18] ss:$0 sm:$0xff]  ;;  %s7293_s21 = scalar_lea.vmem [#allocation8], %s4953_s14 }
  0x6c   : > { %v498_v18 = vld.sshfl [vmem:[#allocation1] sm:$0xff pattern:$0x75316420]  ;;  %v499_v19 = vld.sshfl [vmem:[#allocation1 + $0x8] sm:$0xff pattern:$0x75316420] }
  0x6d   : > { %502 = vrot.lane.b32.xlu0 %v498_v18, %s5377_s23  ;;  %504 = vrot.lane.b32.xlu1 %v499_v19, %s5377_s23  ;;  %513 = vst [vmem:[#allocation1] ss:$2 sm:$0xff] %v5535_v1 }
  0x74   : > { %v514_v20 = vld.sshfl [vmem:[#allocation1] sm:$0xff pattern:$0x75316420]  ;;  %v515_v21 = vld.sshfl [vmem:[#allocation1 + $0x8] sm:$0xff pattern:$0x75316420] }
  0x75   : > { %520 = vrot.lane.b32.xlu0 %v515_v21, %s5378_s2  ;;  %529 = vst [vmem:[#allocation1] ss:$2 sm:$0xff] %v5535_v1  ;;  %518 = vrot.lane.b32.xlu2 %v514_v20, %s5378_s2  ;;  %v509_v1 = vperm.slane %v5571_v24, 6 }
  0x7c   : > { %v530_v22 = vld.sshfl [vmem:[#allocation1] sm:$0xff pattern:$0x75316420]  ;;  %v531_v23 = vld.sshfl [vmem:[#allocation1 + $0x8] sm:$0xff pattern:$0x75316420] }
  0x7d   : > { %534 = vrot.lane.b32.xlu1 %v530_v22, %s5379_s12  ;;  %536 = vrot.lane.b32.xlu2 %v531_v23, %s5379_s12  ;;  %558 = vst [vmem:[#allocation1] ss:$2 sm:$0xff] %v480_v30  ;;  %v453_v23 = vperm.slane %v5571_v24, 2 }
  0xa7   : > { %v5582_v33 = vpop.permute.xlu2 %430 }
  0xa8   : > { %v334_v31 = vpop.permute.xlu0 %333 }
  0xb0   : > { %v5596_v37 = vpop.permute.xlu2 %432 }
  0xb1   : > { %v5594_v36 = vpop.permute.xlu0 %338  ;;  %v435_v6 = vsel %vm434_vm4, %v5582_v33, %v5596_v37  ;;  %v436_v22 = vsel %vm434_vm4, %v5596_v37, %v5582_v33  ;;  %vm2305_vm4 = vcmask 654336  }
  0xb7   : > { %v5586_v35 = vpop.permute.xlu1 %412 }
  0xb8   : > { %v463_v42 = vpop.permute.xlu2 %462 }
  0xbb   : > { %v374_v32 = vpop.f32.mrf.mxu0  ;;  %v397_v39 = vpop.f32.mrf.mxu1 }
  0xbc   : > { %v5584_v34 = vadd.f32 %v374_v32, %v334_v31  ;;  %v5608_v41 = vadd.f32 %v397_v39, %v334_v31 }
  0xbe   : > { %656 = vrot.lane.b32.xlu1 %v5584_v34, %s5380_s16  ;;  %650 = vrot.lane.b32.xlu2 %v5584_v34, %s7559_s17 }
  0xbf   : > { %644 = vrot.lane.b32.xlu0 %v5584_v34, %s5378_s2  ;;  %v5604_v38 = vpop.permute.xlu1 %414 }
  0xc0   : > { %v489_v46 = vpop.permute.xlu2 %488 }
  0xc3   : > { %v377_v45 = vpop.f32.mrf.mxu0  ;;  %v400_v33 = vpop.f32.mrf.mxu1 }
  0xc4   : > { %v5625_v48 = vadd.f32 %v377_v45, %v5594_v36 }
  0xc6   : > { %674 = vrot.lane.b32.xlu1 %v5584_v34, %s5382_s22  ;;  %668 = vrot.lane.b32.xlu2 %v5584_v34, %s5383_s9 }
  0xc7   : > { %662 = vrot.lane.b32.xlu0 %v5584_v34, %s5384_s11  ;;  %v5606_v40 = vpop.permute.xlu0 %446  ;;  %v5616_v43 = vpop.permute.xlu1 %448 }
  0xc8   : > { %v452_v27 = vsel %vm450_vm8, %v5616_v43, %v5606_v40 }
  0xce   : > { %694 = vrot.lane.b32.xlu1 %v5608_v41, %s7559_s17  ;;  %688 = vrot.lane.b32.xlu2 %v5608_v41, %s5378_s2 }
  0xcf   : > { %680 = vrot.lane.b32.xlu0 %v5584_v34, %s7560_s29  ;;  %v465_v44 = vpop.permute.xlu0 %464  ;;  %v519_v52 = vpop.permute.xlu2 %518 }
  0xd0   : > { %v467_v12 = vsel %vm466_vm6, %v463_v42, %v465_v44  ;;  %v468_v13 = vsel %vm466_vm6, %v465_v44, %v463_v42  ;;  %v559_v44 = vld.sshfl [vmem:[#allocation1] sm:$0xff pattern:$0x75316420]  ;;  %vm2311_vm6 = vcmask 916480  }
  0xd1   : > { %v471_v29 = vmul.f32 %v469_v9, %v468_v13  ;;  %v472_v37 = vmul.f32 %v470_v10, %v467_v12 }
  0xd6   : > { %712 = vrot.lane.b32.xlu1 %v5608_v41, %s5383_s9  ;;  %706 = vrot.lane.b32.xlu2 %v5608_v41, %s5384_s11 }
  0xd7   : > { %700 = vrot.lane.b32.xlu0 %v5608_v41, %s5380_s16  ;;  %v487_v47 = vpop.permute.xlu1 %486  ;;  %v537_v15 = vpop.permute.xlu2 %536 }
  0xd8   : > { %v491_v0 = vsel %vm490_vm3, %v487_v47, %v489_v46  ;;  %v492_v2 = vsel %vm490_vm3, %v489_v46, %v487_v47  ;;  %v439_v46 = vmul.f32 %v437_v57, %v436_v22  ;;  %v451_v47 = vsel %vm450_vm8, %v5606_v40, %v5616_v43 }
  0xd9   : > { %v495_v11 = vmul.f32 %v493_v60, %v491_v0  ;;  %v496_v14 = vmul.f32 %v494_v63, %v492_v2  ;;  %v440_v57 = vmul.f32 %v438_v58, %v435_v6  ;;  %v5716_v40 = vadd.f32 %v400_v33, %v5594_v36 }
  0xda   : > { %v455_v43 = vmul.f32 %v453_v23, %v452_v27  ;;  %v456_v60 = vmul.f32 %v454_v26, %v451_v47  ;;  %v547_v36 = vrot.slane %v439_v46, 4  ;;  %vm2302_vm3 = vcmask 523264  }
  0xdb   : > { %v565_v32 = vrot.slane %v495_v11, 4  ;;  %v566_v45 = vrot.slane %v496_v14, 4  ;;  %v548_v58 = vrot.slane %v440_v57, 4 }
  0xde   : > { %646 = vrot.lane.b32.xlu1 %v5625_v48, %s5378_s2  ;;  %724 = vrot.lane.b32.xlu2 %v5608_v41, %s7560_s29 }
  0xdf   : > { %718 = vrot.lane.b32.xlu0 %v5608_v41, %s5382_s22  ;;  %v503_v50 = vpop.permute.xlu0 %502  ;;  %v505_v53 = vpop.permute.xlu1 %504 }
  0xe0   : > { %v507_v7 = vsel %vm506_vm5, %v503_v50, %v505_v53  ;;  %v508_v8 = vsel %vm506_vm5, %v505_v53, %v503_v50  ;;  %v422_v53 = vperm.slane %v5576_v25, 0  ;;  %v579_v25 = vsel %vm352_vm0, %v559_v44, %v565_v32 }
  0xe1   : > { %v511_v18 = vmul.f32 %v509_v1, %v507_v7  ;;  %v512_v19 = vmul.f32 %v510_v3, %v508_v8  ;;  %v733_v8 = vrot.slane %v5584_v34, 4  ;;  %vm2308_vm5 = vcmask 785408  }
  0xe6   : > { %664 = vrot.lane.b32.xlu1 %v5625_v48, %s5384_s11  ;;  %658 = vrot.lane.b32.xlu2 %v5625_v48, %s5380_s16 }
  0xe7   : > { %652 = vrot.lane.b32.xlu0 %v5625_v48, %s7559_s17  ;;  %v521_v59 = vpop.permute.xlu0 %520 }
  0xe8   : > { %v523_v61 = vsel %vm522_vm2, %v519_v52, %v521_v59  ;;  %v524_v62 = vsel %vm522_vm2, %v521_v59, %v519_v52  ;;  %v560_v52 = vld.sshfl [vmem:[#allocation1 + $0x8] sm:$0xff pattern:$0x75316420]  ;;  %v553_v59 = vrot.slane %v471_v29, 4  ;;  %vm2299_vm2 = vcmask 392192  }
  0xe9   : > { %v527_v4 = vmul.f32 %v525_v54, %v523_v61  ;;  %v528_v5 = vmul.f32 %v526_v55, %v524_v62  ;;  %v419_v54 = vsel %vm418_vm7, %v5586_v35, %v5604_v38  ;;  %v420_v55 = vsel %vm418_vm7, %v5604_v38, %v5586_v35 }
  0xea   : > { %v580_v61 = vsel %vm352_vm0, %v560_v52, %v566_v45  ;;  %v554_v62 = vrot.slane %v472_v37, 4  ;;  %v423_v35 = vmul.f32 %v421_v56, %v420_v55  ;;  %v424_v38 = vmul.f32 %v422_v53, %v419_v54  ;;  %v583_v56 = vld [vmem:[%s7540_s5] sm:$0xff] }
  0xeb   : > { %v571_v20 = vrot.slane %v527_v4, 4  ;;  %v572_v21 = vrot.slane %v528_v5, 4  ;;  %v577_v63 = vsel %vm352_vm0, %v455_v43, %v553_v59  ;;  %v5385_v5 = vmov 1983009808  }
  0xec   : > { %v578_v24 = vsel %vm352_vm0, %v456_v60, %v554_v62  ;;  %v575_v0 = vsel %vm352_vm0, %v423_v35, %v547_v36  ;;  %v576_v1 = vsel %vm352_vm0, %v424_v38, %v548_v58  ;;  %v736_v6 = vunpack.c.l.s4 %v5385_v5 }
  0xed   : > { %v581_v49 = vsel %vm352_vm0, %v511_v18, %v571_v20  ;;  %v582_v50 = vsel %vm352_vm0, %v512_v19, %v572_v21  ;;  %v5386_v20 = vmov 1934713408   ;;  %v845_v36 = vrot.slane %v5608_v41, 4 }
  0xee   : > { %682 = vrot.lane.b32.xlu1 %v5625_v48, %s7560_s29  ;;  %676 = vrot.lane.b32.xlu2 %v5625_v48, %s5382_s22  ;;  %v5746_v11 = vunpack.c.0.s8 %v736_v6  ;;  %v784_v21 = vunpack.c.l.s4 %v5386_v20 }
  0xef   : > { %670 = vrot.lane.b32.xlu0 %v5625_v48, %s5383_s9  ;;  %v535_v28 = vpop.permute.xlu1 %534 }
  0xf0   : > { %v539_v30 = vsel %vm538_vm9, %v535_v28, %v537_v15  ;;  %v540_v31 = vsel %vm538_vm9, %v537_v15, %v535_v28 }
  0xf1   : > { %v543_v39 = vmul.f32 %v5122_v16, %v539_v30  ;;  %v544_v42 = vmul.f32 %v5123_v17, %v540_v31  ;;  %v5763_v31 = vunpack.c.0.s8 %v784_v21 }
  0xf3   : > { %4960 = vmatpush.msk.msra.mxu2 %vm352_vm0, %v543_v39  ;;  %4962 = vmatpush.msk.msra.mxu3 %vm352_vm0, %v544_v42 }
  0xf5   : > { %608 = vmatpush.msra.mxu2 %v581_v49  ;;  %628 = vmatpush.msra.mxu3 %v582_v50 }
  0xf6   : > { %702 = vrot.lane.b32.xlu1 %v5716_v40, %s5380_s16  ;;  %696 = vrot.lane.b32.xlu2 %v5716_v40, %s7559_s17 }
  0xf7   : > { %690 = vrot.lane.b32.xlu0 %v5716_v40, %s5378_s2  ;;  %609 = vmatpush.msra.mxu2 %v579_v25 }
  0xf8   : > { %629 = vmatpush.msra.mxu3 %v580_v61 }
  0xf9   : > { %610 = vmatpush.msra.mxu2 %v577_v63 }
  0xfa   : > { %630 = vmatpush.msra.mxu3 %v578_v24 }
  0xfb   : > { %611 = vmatpush.msra.mxu2 %v575_v0 }
  0xfc   : > { %631 = vmatpush.msra.mxu3 %v576_v1  ;;  %4961 = vmatmul.msk.f32.vlgmr.msra.gmra.mxu2 %vm586_vm10, %v583_v56 }
  0xfd   : > { %4963 = vmatmul.msk.f32.vlgmr.msra.gmra.mxu3 %vm586_vm10, %v583_v56 }
  0xfe   : > { %720 = vrot.lane.b32.xlu1 %v5716_v40, %s5382_s22  ;;  %714 = vrot.lane.b32.xlu2 %v5716_v40, %s5383_s9 }
  0xff   : > { %708 = vrot.lane.b32.xlu0 %v5716_v40, %s5384_s11 }
 0x107   : > { %726 = vrot.lane.b32.xlu0 %v5716_v40, %s7560_s29 }
 0x118   : > { %v651_v2 = vpop.permute.xlu2 %650 }
 0x119   : > { %v734_v12 = vsel %vm731_vm11, %v651_v2, %v733_v8  ;;  %v730_v17 = vrot.slane %v651_v2, 4 }
 0x11a   : > { %v5751_v15 = vperm.slane %v734_v12, %v5746_v11 }
 0x11b   : > { %v732_v28 = vsel %vm731_vm11, %v730_v17, %v5584_v34 }
 0x11c   : > { %v793_v27 = vrot.slane %v5751_v15, 4  ;;  %v738_v44 = vperm.slane %v732_v28, %v5746_v11 }
 0x11e   : > { %v781_v59 = vrot.slane %v738_v44, 4 }
 0x120   : > { %v669_v3 = vpop.permute.xlu2 %668 }
 0x121   : > { %v769_v39 = vrot.slane %v669_v3, 4 }
 0x128   : > { %v5744_v9 = vpop.permute.xlu2 %688 }
 0x129   : > { %v857_v35 = vrot.slane %v5744_v9, 4 }
 0x130   : > { %v657_v4 = vpop.permute.xlu1 %656  ;;  %v5760_v29 = vpop.permute.xlu2 %706 }
 0x131   : > { %v645_v7 = vpop.permute.xlu0 %644  ;;  %v743_v18 = vrot.slane %v657_v4, 4  ;;  %v869_v28 = vrot.slane %v5760_v29, 4 }
 0x132   : > { %v745_v10 = vrot.slane %v645_v7, 4 }
 0x133   : > { %v744_v30 = vsel %vm731_vm11, %v743_v18, %v645_v7 }
 0x134   : > { %v746_v13 = vsel %vm731_vm11, %v657_v4, %v745_v10  ;;  %v750_v34 = vperm.slane %v744_v30, %v5746_v11 }
 0x135   : > { %v5754_v22 = vperm.slane %v746_v13, %v5746_v11 }
 0x136   : > { %v779_v55 = vrot.slane %v750_v34, 4  ;;  %v782_v58 = vsel %vm731_vm11, %v750_v34, %v781_v59 }
 0x137   : > { %v794_v37 = vsel %vm731_vm11, %v5754_v22, %v793_v27  ;;  %v5837_v34 = vperm.slane %v782_v58, %v5763_v31 }
 0x138   : > { %v675_v14 = vpop.permute.xlu1 %674  ;;  %v5776_v50 = vperm.slane %v794_v37, %v5763_v31  ;;  %v725_v63 = vpop.permute.xlu2 %724  ;;  %v780_v5 = vsel %vm731_vm11, %v779_v55, %v738_v44 }
 0x139   : > { %v663_v16 = vpop.permute.xlu0 %662  ;;  %v755_v23 = vrot.slane %v675_v14, 4  ;;  %v879_v12 = vrot.slane %v725_v63, 4 }
 0x13a   : > { %v757_v19 = vrot.slane %v663_v16, 4  ;;  %v841_v62 = vrot.slane %v5776_v50, 4 }
 0x13b   : > { %v756_v32 = vsel %vm731_vm11, %v755_v23, %v663_v16 }
 0x13c   : > { %v758_v26 = vsel %vm731_vm11, %v675_v14, %v757_v19  ;;  %v762_v46 = vperm.slane %v756_v32, %v5746_v11  ;;  %v5818_v19 = vperm.slane %v780_v5, %v5763_v31 }
 0x13d   : > { %v5767_v33 = vperm.slane %v758_v26, %v5746_v11 }
 0x13e   : > { %v805_v60 = vrot.slane %v762_v46, 4 }
 0x13f   : > { %v817_v52 = vrot.slane %v5767_v33, 4 }
 0x140   : > { %v695_v42 = vpop.permute.xlu1 %694 }
 0x141   : > { %v681_v45 = vpop.permute.xlu0 %680  ;;  %v843_v57 = vrot.slane %v695_v42, 4  ;;  %v846_v2 = vsel %vm731_vm11, %v695_v42, %v845_v36 }
 0x142   : > { %v767_v47 = vrot.slane %v681_v45, 4  ;;  %v770_v49 = vsel %vm731_vm11, %v681_v45, %v769_v39  ;;  %v854_v17 = vperm.slane %v846_v2, %v5746_v11 }
 0x143   : > { %v5780_v53 = vperm.slane %v770_v49, %v5746_v11  ;;  %v844_v1 = vsel %vm731_vm11, %v843_v57, %v5608_v41 }
 0x144   : > { %v768_v54 = vsel %vm731_vm11, %v767_v47, %v669_v3  ;;  %v850_v16 = vperm.slane %v844_v1, %v5746_v11  ;;  %v905_v37 = vrot.slane %v854_v17, 4 }
 0x145   : > { %v774_v43 = vperm.slane %v768_v54, %v5746_v11  ;;  %v818_v25 = vsel %vm731_vm11, %v5780_v53, %v817_v52  ;;  %v815_v36 = vrot.slane %v5780_v53, 4 }
 0x146   : > { %v5787_v61 = vperm.slane %v818_v25, %v5763_v31  ;;  %v893_v45 = vrot.slane %v850_v16, 4  ;;  %v791_v25 = vrot.slane %v5754_v22, 4 }
 0x147   : > { %v803_v38 = vrot.slane %v774_v43, 4  ;;  %v806_v0 = vsel %vm731_vm11, %v774_v43, %v805_v60 }
 0x148   : > { %v713_v24 = vpop.permute.xlu1 %712  ;;  %v5795_v56 = vsel %vm731_vm11, %v5787_v61, %v841_v62  ;;  %v5811_v41 = vperm.slane %v806_v0, %v5763_v31 }
 0x149   : > { %v701_v3 = vpop.permute.xlu0 %700  ;;  %v1340_v4 = vmul.f32 %v5795_v56, %v5795_v56  ;;  %v881_v6 = vrot.slane %v713_v24, 4  ;;  %v804_v10 = vsel %vm731_vm11, %v803_v38, %v762_v46  ;;  %v880_v20 = vsel %vm731_vm11, %v879_v12, %v713_v24 }
 0x14a   : > { %v855_v7 = vrot.slane %v701_v3, 4  ;;  %v858_v8 = vsel %vm731_vm11, %v701_v3, %v857_v35  ;;  %v5808_v14 = vperm.slane %v804_v10, %v5763_v31  ;;  %v831_v32 = vrot.slane %v5811_v41, 4  ;;  %v5851_v35 = vpop.permute.xlu2 %658 }
 0x14b   : > { %v1388_v13 = vsel %vm1035_vm12, %v1340_v4, 0.0  ;;  %v866_v23 = vperm.slane %v858_v8, %v5746_v11  ;;  %v882_v27 = vsel %vm731_vm11, %v725_v63, %v881_v6  ;;  %v886_v39 = vperm.slane %v880_v20, %v5746_v11 }
 0x14c   : > { %v856_v18 = vsel %vm731_vm11, %v855_v7, %v5744_v9  ;;  %1389 = vadd.xlane.f32.xlu2 %v1388_v13  ;;  %v827_v26 = vrot.slane %v5808_v14, 4  ;;  %v890_v46 = vperm.slane %v882_v27, %v5746_v11  ;;  %v5848_v60 = vsel %vm731_vm11, %v831_v32, %v5837_v34 }
 0x14d   : > { %v862_v21 = vperm.slane %v856_v18, %v5746_v11  ;;  %v903_v47 = vrot.slane %v866_v23, 4  ;;  %v906_v54 = vsel %vm731_vm11, %v866_v23, %v905_v37  ;;  %v915_v38 = vrot.slane %v886_v39, 4 }
 0x14e   : > { %v5828_v9 = vsel %vm731_vm11, %v827_v26, %v5818_v19  ;;  %v927_v22 = vrot.slane %v890_v46, 4  ;;  %v5858_v24 = vperm.slane %v906_v54, %v5763_v31  ;;  %v1330_v3 = vmul.f32 %v5848_v60, %v5848_v60 }
 0x14f   : > { %v891_v30 = vrot.slane %v862_v21, 4  ;;  %v1326_v44 = vmul.f32 %v5828_v9, %v5828_v9  ;;  %v894_v62 = vsel %vm731_vm11, %v862_v21, %v893_v45  ;;  %v904_v2 = vsel %vm731_vm11, %v903_v47, %v854_v17 }
 0x150   : > { %v5832_v42 = vpop.permute.xlu1 %646  ;;  %v902_v53 = vperm.slane %v894_v62, %v5763_v31  ;;  %v792_v13 = vsel %vm731_vm11, %v791_v25, %v5751_v15  ;;  %v953_v20 = vrot.slane %v5858_v24, 4  ;;  %v816_v21 = vsel %vm731_vm11, %v815_v36, %v5767_v33 }
 0x151   : > { %v719_v49 = vpop.permute.xlu0 %718  ;;  %v892_v52 = vsel %vm731_vm11, %v891_v30, %v850_v16  ;;  %v1346_v43 = vsel %vm1035_vm12, %v1326_v44, 0.0  ;;  %v910_v16 = vperm.slane %v904_v2, %v5763_v31  ;;  %v1358_v26 = vsel %vm1035_vm12, %v1330_v3, 0.0 }
 0x152   : > { %v867_v55 = vrot.slane %v719_v49, 4  ;;  %v870_v57 = vsel %vm731_vm11, %v719_v49, %v869_v28  ;;  %1347 = vadd.xlane.f32.xlu1 %v1346_v43  ;;  %v898_v63 = vperm.slane %v892_v52, %v5763_v31  ;;  %v945_v30 = vrot.slane %v902_v53, 4  ;;  %v677_v52 = vpop.permute.xlu2 %676 }
 0x153   : > { %v878_v59 = vperm.slane %v870_v57, %v5746_v11  ;;  %v829_v33 = vrot.slane %v5818_v19, 4  ;;  %v798_v44 = vperm.slane %v792_v13, %v5763_v31  ;;  %v822_v45 = vperm.slane %v816_v21, %v5763_v31 }
 0x154   : > { %v868_v58 = vsel %vm731_vm11, %v867_v55, %v5760_v29  ;;  %v941_v10 = vrot.slane %v898_v63, 4  ;;  %v949_v49 = vrot.slane %v910_v16, 4  ;;  %v833_v36 = vrot.slane %v5837_v34, 4 }
 0x155   : > { %v874_v0 = vperm.slane %v868_v58, %v5746_v11  ;;  %v929_v1 = vrot.slane %v878_v59, 4  ;;  %v928_v5 = vsel %vm731_vm11, %v927_v22, %v878_v59  ;;  %v830_v55 = vsel %vm731_vm11, %v5808_v14, %v829_v33 }
 0x156   : > { %v934_v23 = vperm.slane %v928_v5, %v5763_v31  ;;  %v837_v58 = vrot.slane %v798_v44, 4 }
 0x157   : > { %v917_v4 = vrot.slane %v874_v0, 4  ;;  %v916_v29 = vsel %vm731_vm11, %v915_v38, %v874_v0  ;;  %v930_v6 = vsel %vm731_vm11, %v890_v46, %v929_v1  ;;  %v961_v38 = vrot.slane %v5851_v35, 4 }
 0x158   : > { %v665_v7 = vpop.permute.xlu1 %664  ;;  %v922_v8 = vperm.slane %v916_v29, %v5763_v31  ;;  %v5870_v12 = vperm.slane %v930_v6, %v5763_v31  ;;  %v947_v43 = vrot.slane %v934_v23, 4  ;;  %v5920_v59 = vsel %vm731_vm11, %v934_v23, %v949_v49 }
 0x159   : > { %v5875_v17 = vpop.permute.xlu0 %652  ;;  %v918_v18 = vsel %vm731_vm11, %v886_v39, %v917_v4  ;;  %v834_v0 = vsel %vm731_vm11, %v5811_v41, %v833_v36  ;;  %v838_v3 = vsel %vm731_vm11, %v822_v45, %v837_v58  ;;  %v835_v29 = vrot.slane %v822_v45, 4 }
 0x15a   : > { %v5884_v27 = vsel %vm731_vm11, %v922_v8, %v941_v10  ;;  %v939_v28 = vrot.slane %v922_v8, 4  ;;  %1359 = vadd.xlane.f32.xlu1 %v1358_v26  ;;  %v926_v15 = vperm.slane %v918_v18, %v5763_v31  ;;  %v5891_v32 = vsel %vm731_vm11, %v5870_v12, %v953_v20  ;;  %v697_v45 = vpop.permute.xlu2 %696 }
 0x15b   : > { %4968 = vmatpush.xpose.msk.msrb.mxu1 %vm1035_vm12, %v5884_v27  ;;  %v1341_v39 = vmul.f32 %v5891_v32, %v5891_v32  ;;  %v951_v35 = vrot.slane %v5870_v12, 4  ;;  %v5938_v2 = vsel %vm731_vm11, %v947_v43, %v910_v16  ;;  %v955_v5 = vrot.slane %v5875_v17, 4 }
 0x15c   : > { %v5895_v37 = vsel %vm731_vm11, %v939_v28, %v898_v63  ;;  %v5904_v46 = vsel %vm731_vm11, %v926_v15, %v945_v30  ;;  %v943_v47 = vrot.slane %v926_v15, 4  ;;  %v967_v63 = vrot.slane %v677_v52, 4 }
 0x15d   : > { %4964 = vmatpush.xpose.msk.msrb.mxu0 %vm1035_vm12, %v5895_v37  ;;  %v1327_v19 = vmul.f32 %v5895_v37, %v5895_v37  ;;  %4976 = vmatpush.xpose.msk.msrb.mxu3 %vm1035_vm12, %v5904_v46  ;;  %v1391_v54 = vsel %vm1035_vm12, %v1341_v39, 0.0  ;;  %v1333_v57 = vmul.f32 %v5904_v46, %v5904_v46  ;;  %v962_v8 = vsel %vm731_vm11, %v961_v38, %v5832_v42 }
 0x15e   : > { %1392 = vadd.xlane.f32.xlu0 %v1391_v54  ;;  %v5917_v25 = vsel %vm731_vm11, %v943_v47, %v902_v53  ;;  %v1328_v53 = vmul.f32 %v830_v55, %v830_v55  ;;  %v968_v4 = vsel %vm731_vm11, %v967_v63, %v665_v7  ;;  %v1329_v7 = vmul.f32 %v5884_v27, %v5884_v27 }
 0x15f   : > { %4969 = vmatpush.xpose.msk.msrb.mxu1 %vm1035_vm12, %v830_v55  ;;  %v1349_v62 = vsel %vm1035_vm12, %v1327_v19, 0.0  ;;  %4972 = vmatpush.xpose.msk.msrb.mxu2 %vm1035_vm12, %v5917_v25  ;;  %v1367_v1 = vsel %vm1035_vm12, %v1333_v57, 0.0  ;;  %v5960_v10 = vsel %vm731_vm11, %v951_v35, %v5858_v24  ;;  %v839_v12 = vrot.slane %v5787_v61, 4 }
 0x160   : > { %v683_v14 = vpop.permute.xlu1 %682  ;;  %1350 = vadd.xlane.f32.xlu2 %v1349_v62  ;;  %v972_v13 = vperm.slane %v968_v4, %v5746_v11  ;;  %v1352_v42 = vsel %vm1035_vm12, %v1328_v53, 0.0  ;;  %v1336_v17 = vmul.f32 %v838_v3, %v838_v3  ;;  %v836_v61 = vsel %vm731_vm11, %v835_v29, %v798_v44 }
 0x161   : > { %v973_v22 = vrot.slane %v683_v14, 4  ;;  %4965 = vmatpush.xpose.msk.msrb.mxu0 %vm1035_vm12, %v5828_v9  ;;  %v671_v34 = vpop.permute.xlu0 %670  ;;  %4977 = vmatpush.xpose.msk.msrb.mxu3 %vm1035_vm12, %v834_v0  ;;  %v966_v24 = vperm.slane %v962_v8, %v5746_v11  ;;  %v1355_v20 = vsel %vm1035_vm12, %v1329_v7, 0.0  ;;  %v1332_v28 = vmul.f32 %v834_v0, %v834_v0 }
 0x162   : > { %4970 = vmatmul.msk.f32.vlgmr.msrb.gmra.mxu1 %vm1035_vm12, %v830_v55  ;;  %1368 = vadd.xlane.f32.xlu1 %v1367_v1  ;;  %v1376_v26 = vsel %vm1035_vm12, %v1336_v17, 0.0  ;;  %v995_v52 = vrot.slane %v697_v45, 4  ;;  %v1335_v55 = vmul.f32 %v5938_v2, %v5938_v2  ;;  %v715_v1 = vpop.permute.xlu2 %714 }
 0x163   : > { %4984 = vmatpush.xpose.msk.msra.mxu1 %vm1035_vm12, %v5920_v59  ;;  %v974_v41 = vsel %vm731_vm11, %v973_v22, %v671_v34  ;;  %4973 = vmatpush.xpose.msk.msrb.mxu2 %vm1035_vm12, %v5848_v60  ;;  %v979_v30 = vrot.slane %v966_v24, 4  ;;  %v1364_v39 = vsel %vm1035_vm12, %v1332_v28, 0.0 }
 0x164   : > { %v978_v6 = vperm.slane %v974_v41, %v5746_v11  ;;  %4966 = vmatmul.msk.f32.vlgmr.msrb.gmra.mxu0 %vm1035_vm12, %v5828_v9  ;;  %4978 = vmatmul.msk.f32.vlgmr.msrb.gmra.mxu3 %vm1035_vm12, %v834_v0  ;;  %v956_v9 = vsel %vm731_vm11, %v955_v5, %v5625_v48  ;;  %v840_v48 = vsel %vm731_vm11, %v839_v12, %v5776_v50  ;;  %v1373_v38 = vsel %vm1035_vm12, %v1335_v55, 0.0 }
 0x165   : > { %4980 = vmatpush.xpose.msk.msra.mxu0 %vm1035_vm12, %v5938_v2  ;;  %4992 = vmatpush.xpose.msk.msra.mxu3 %vm1035_vm12, %v5891_v32  ;;  %v1331_v50 = vmul.f32 %v5917_v25, %v5917_v25  ;;  %v996_v36 = vsel %vm731_vm11, %v995_v52, %v5716_v40  ;;  %v1338_v40 = vmul.f32 %v840_v48, %v840_v48 }
 0x166   : > { %v985_v16 = vrot.slane %v978_v6, 4  ;;  %1353 = vadd.xlane.f32.xlu0 %v1352_v42  ;;  %4974 = vmatmul.msk.f32.vlgmr.msrb.gmra.mxu2 %vm1035_vm12, %v5848_v60  ;;  %v960_v60 = vperm.slane %v956_v9, %v5746_v11  ;;  %v1000_v0 = vperm.slane %v996_v36, %v5746_v11  ;;  %v1337_v5 = vmul.f32 %v5920_v59, %v5920_v59 }
 0x167   : > { %4985 = vmatpush.xpose.msk.msra.mxu1 %vm1035_vm12, %v838_v3  ;;  %4988 = vmatpush.xpose.msk.msra.mxu2 %vm1035_vm12, %v5960_v10  ;;  %v1382_v7 = vsel %vm1035_vm12, %v1338_v40, 0.0 }
 0x168   : > { %v986_v18 = vsel %vm731_vm11, %v985_v16, %v972_v13  ;;  %1356 = vadd.xlane.f32.xlu2 %v1355_v20  ;;  %v703_v21 = vpop.permute.xlu1 %702  ;;  %v980_v44 = vsel %vm731_vm11, %v979_v30, %v960_v60  ;;  %v1379_v13 = vsel %vm1035_vm12, %v1337_v5, 0.0 }
 0x169   : > { %4981 = vmatpush.xpose.msk.msra.mxu0 %vm1035_vm12, %v836_v61  ;;  %4993 = vmatpush.xpose.msk.msra.mxu3 %vm1035_vm12, %v5795_v56  ;;  %v691_v23 = vpop.permute.xlu0 %690  ;;  %v990_v15 = vperm.slane %v986_v18, %v5763_v31  ;;  %v1001_v33 = vrot.slane %v703_v21, 4  ;;  %v584_v21 = vld [vmem:[#allocation5] sm:$0xff] }
 0x16a   : > { %4971 = vmatmul.msk.f32.gmra.mxu1 %vm1035_vm12, %v5884_v27  ;;  %1377 = vadd.xlane.f32.xlu1 %v1376_v26  ;;  %v1339_v27 = vmul.f32 %v5960_v10, %v5960_v10 }
 0x16b   : > { %4989 = vmatpush.xpose.msk.msra.mxu2 %vm1035_vm12, %v840_v48  ;;  %v991_v47 = vrot.slane %v990_v15, 4  ;;  %v1002_v49 = vsel %vm731_vm11, %v1001_v33, %v691_v23 }
 0x16c   : > { %4967 = vmatmul.msk.f32.gmra.mxu0 %vm1035_vm12, %v5895_v37  ;;  %4979 = vmatmul.msk.f32.gmra.mxu3 %vm1035_vm12, %v5904_v46  ;;  %v1361_v37 = vsel %vm1035_vm12, %v1331_v50, 0.0  ;;  %v984_v46 = vperm.slane %v980_v44, %v5763_v31  ;;  %v1385_v54 = vsel %vm1035_vm12, %v1339_v27, 0.0  ;;  %v1006_v57 = vperm.slane %v1002_v49, %v5746_v11 }
 0x16e   : > { %1365 = vadd.xlane.f32.xlu0 %v1364_v39  ;;  %4975 = vmatmul.msk.f32.gmra.mxu2 %vm1035_vm12, %v5917_v25  ;;  %v992_v43 = vsel %vm731_vm11, %v991_v47, %v984_v46  ;;  %v1334_v25 = vmul.f32 %v836_v61, %v836_v61  ;;  %v1019_v58 = vrot.slane %v1006_v57, 4  ;;  %v993_v29 = vrot.slane %v984_v46, 4 }
 0x16f   : > { %v1342_v14 = vmul.f32 %v992_v43, %v992_v43 }
 0x170   : > { %1362 = vadd.xlane.f32.xlu2 %v1361_v37  ;;  %v721_v62 = vpop.permute.xlu1 %720  ;;  %v1370_v22 = vsel %vm1035_vm12, %v1334_v25, 0.0 }
 0x171   : > { %v709_v19 = vpop.permute.xlu0 %708  ;;  %v1007_v63 = vrot.slane %v721_v62, 4 }
 0x172   : > { %4986 = vmatmul.msk.f32.vlgmr.msra.gmra.mxu1 %vm1035_vm12, %v838_v3  ;;  %1386 = vadd.xlane.f32.xlu1 %v1385_v54  ;;  %v1020_v3 = vsel %vm731_vm11, %v1019_v58, %v1000_v0 }
 0x173   : > { %v1008_v53 = vsel %vm731_vm11, %v1007_v63, %v709_v19  ;;  %v1024_v6 = vperm.slane %v1020_v3, %v5763_v31  ;;  %v6082_v19 = vadd.s32 4294967288, %v5633_v51 }
 0x174   : > { %4982 = vmatmul.msk.f32.vlgmr.msra.gmra.mxu0 %vm1035_vm12, %v836_v61  ;;  %4994 = vmatmul.msk.f32.vlgmr.msra.gmra.mxu3 %vm1035_vm12, %v5795_v56  ;;  %v1394_v56 = vsel %vm1035_vm12, %v1342_v14, 0.0  ;;  %v1012_v8 = vperm.slane %v1008_v53, %v5746_v11 }
 0x175   : > { %v1033_v16 = vrot.slane %v1024_v6, 4 }
 0x176   : > { %1374 = vadd.xlane.f32.xlu0 %v1373_v38  ;;  %4990 = vmatmul.msk.f32.vlgmr.msra.gmra.mxu2 %vm1035_vm12, %v840_v48 }
 0x178   : > { %1371 = vadd.xlane.f32.xlu2 %v1370_v22 }
 0x179   : > { %v727_v34 = vpop.permute.xlu0 %726 }
 0x17a   : > { %v1013_v35 = vrot.slane %v727_v34, 4  ;;  %4987 = vmatmul.msk.f32.gmra.mxu1 %vm1035_vm12, %v5920_v59  ;;  %1395 = vadd.xlane.f32.xlu1 %v1394_v56  ;;  %v994_v59 = vsel %vm731_vm11, %v990_v15, %v993_v29  ;;  %v585_v15 = vld [vmem:[#allocation5 + $0x8] sm:$0xff] }
 0x17b   : > { %v1344_v42 = vmul.f32 %v994_v59, %v994_v59 }
 0x17c   : > { %v1014_v4 = vsel %vm731_vm11, %v1013_v35, %v715_v1  ;;  %4983 = vmatmul.msk.f32.gmra.mxu0 %vm1035_vm12, %v5938_v2  ;;  %4995 = vmatmul.msk.f32.gmra.mxu3 %vm1035_vm12, %v5891_v32 }
 0x17d   : > { %v1018_v41 = vperm.slane %v1014_v4, %v5746_v11  ;;  %v1400_v24 = vsel %vm1035_vm12, %v1344_v42, 0.0 }
 0x17e   : > { %1383 = vadd.xlane.f32.xlu0 %v1382_v7  ;;  %4991 = vmatmul.msk.f32.gmra.mxu2 %vm1035_vm12, %v5960_v10 }
 0x17f   : > { %v1025_v12 = vrot.slane %v1018_v41, 4  ;;  %v613_v23 = vpop.f32.mrf.mxu2 }
 0x180   : > { %1380 = vadd.xlane.f32.xlu2 %v1379_v13  ;;  %v614_v60 = vadd.f32 %v613_v23, %v584_v21  ;;  %v633_v30 = vpop.f32.mrf.mxu3 }
 0x181   : > { %v1026_v2 = vsel %vm731_vm11, %v1025_v12, %v1012_v8  ;;  %v634_v33 = vadd.f32 %v633_v30, %v585_v15 }
 0x182   : > { %v1030_v32 = vperm.slane %v1026_v2, %v5763_v31  ;;  %v638_v26 = vmul.f32 0.1, %v614_v60  ;;  %vm636_vm13 = vcmp.ge.f32.partialorder %v614_v60, 0.0 }
 0x183   : > { %v639_v50 = vmul.f32 0.1, %v634_v33  ;;  %vm637_vm14 = vcmp.ge.f32.partialorder %v634_v33, 0.0 }
 0x184   : > { %v1034_v17 = vsel %vm731_vm11, %v1030_v32, %v1033_v16  ;;  %v1031_v9 = vrot.slane %v1030_v32, 4  ;;  %v640_v28 = vsel %vm636_vm13, %v614_v60, %v638_v26 }
 0x185   : > { %5000 = vmatpush.xpose.msk.msrb.mxu1 %vm1035_vm12, %v1034_v17  ;;  %v1345_v61 = vmul.f32 %v1034_v17, %v1034_v17  ;;  %v6056_v39 = vsel %vm637_vm14, %v634_v33, %v639_v50 }
 0x186   : > { %v1032_v10 = vsel %vm731_vm11, %v1031_v9, %v1024_v6  ;;  %1401 = vadd.xlane.f32.xlu0 %v1400_v24 }
 0x187   : > { %4996 = vmatpush.xpose.msk.msrb.mxu0 %vm1035_vm12, %v1032_v10  ;;  %v1403_v18 = vsel %vm1035_vm12, %v1345_v61, 0.0  ;;  %v1343_v20 = vmul.f32 %v1032_v10, %v1032_v10 }
 0x188   : > { %1404 = vadd.xlane.f32.xlu1 %v1403_v18 }
 0x189   : > { %5001 = vmatpush.xpose.msk.msrb.mxu1 %vm1035_vm12, %v994_v59  ;;  %v1397_v48 = vsel %vm1035_vm12, %v1343_v20, 0.0 }
 0x18a   : > { %1398 = vadd.xlane.f32.xlu2 %v1397_v48 }
 0x18b   : > { %4997 = vmatpush.xpose.msk.msrb.mxu0 %vm1035_vm12, %v992_v43 }
 0x18c   : > { %5002 = vmatmul.msk.f32.vlgmr.msrb.gmra.mxu1 %vm1035_vm12, %v994_v59 }
 0x18e   : > { %4998 = vmatmul.msk.f32.vlgmr.msrb.gmra.mxu0 %vm1035_vm12, %v992_v43 }
 0x194   : > { %5003 = vmatmul.msk.f32.gmra.mxu1 %vm1035_vm12, %v1034_v17 }
 0x196   : > { %4999 = vmatmul.msk.f32.gmra.mxu0 %vm1035_vm12, %v1032_v10 }
 0x19a   : > { %2379 = vrot.lane.b32.xlu0 %v640_v28, %s7559_s17 }
 0x1a1   : > { %2376 = vrot.lane.b32.xlu1 %v640_v28, %s5378_s2 }
 0x1a2   : > { %2382 = vrot.lane.b32.xlu2 %v640_v28, %s5380_s16  ;;  %2388 = vrot.lane.b32.xlu0 %v640_v28, %s5383_s9 }
 0x1a9   : > { %2385 = vrot.lane.b32.xlu1 %v640_v28, %s5384_s11 }
 0x1aa   : > { %2391 = vrot.lane.b32.xlu2 %v640_v28, %s5382_s22  ;;  %2398 = vrot.lane.b32.xlu0 %v6056_v39, %s5378_s2 }
 0x1b1   : > { %2394 = vrot.lane.b32.xlu1 %v640_v28, %s7560_s29 }
 0x1b2   : > { %2401 = vrot.lane.b32.xlu2 %v6056_v39, %s7559_s17  ;;  %2413 = vrot.lane.b32.xlu0 %v6056_v39, %s5382_s22 }
 0x1b9   : > { %2404 = vrot.lane.b32.xlu1 %v6056_v39, %s5380_s16 }
 0x1ba   : > { %2416 = vrot.lane.b32.xlu2 %v6056_v39, %s7560_s29  ;;  %2410 = vrot.lane.b32.xlu0 %v6056_v39, %s5383_s9 }
 0x1bf   : > { %v6075_v44 = vpop.xlane.xlu2 %1389 }
 0x1c1   : > { %2407 = vrot.lane.b32.xlu1 %v6056_v39, %s5384_s11 }
 0x1c5   : > { %v1348_v27 = vpop.xlane.xlu1 %1347 }
 0x1c6   : > { %v1426_v43 = vperm.slane %v1348_v27, %v5633_v51 }
 0x1cd   : > { %v1360_v45 = vpop.xlane.xlu1 %1359 }
 0x1ce   : > { %v1434_v29 = vperm.slane %v1360_v45, %v5633_v51 }
 0x1d1   : > { %v6077_v47 = vpop.xlane.xlu0 %1392 }
 0x1d3   : > { %v1351_v49 = vpop.xlane.xlu2 %1350 }
 0x1d4   : > { %v1428_v52 = vperm.slane %v1351_v49, %v6082_v19 }
 0x1d5   : > { %v6079_v37 = vpop.xlane.xlu1 %1368 }
 0x1d6   : > { %v1430_v36 = vsel %vm1429_vm15, %v1428_v52, %v1426_v43  ;;  %v1438_v34 = vperm.slane %v6079_v37, %v6082_v19 }
 0x1d7   : > { %v6096_v56 = vadd.f32 %v1430_v36, %v1348_v27  ;;  %v1535_v20 = vadd.f32 %v1430_v36, %v1351_v49 }
 0x1d9   : > { %v1354_v46 = vpop.xlane.xlu0 %1353 }
 0x1da   : > { %v1431_v55 = vperm.slane %v1354_v46, %v5633_v51 }
 0x1db   : > { %v1357_v54 = vpop.xlane.xlu2 %1356 }
 0x1dc   : > { %v1432_v57 = vperm.slane %v1357_v54, %v6082_v19 }
 0x1dd   : > { %v6094_v35 = vpop.xlane.xlu1 %1377 }
 0x1de   : > { %v1433_v25 = vsel %vm1429_vm15, %v1432_v57, %v1431_v55 }
 0x1df   : > { %v1088_v62 = vpop.f32.mrf.mxu1  ;;  %v1536_v38 = vadd.f32 %v1433_v25, %v1354_v46  ;;  %v6090_v14 = vadd.f32 %v1433_v25, %v1357_v54 }
 0x1e0   : > { %v1556_v58 = vmul.f32 2.0, %v1088_v62  ;;  %2419 = vxpose.xlu2.b32.start.end [1/1] (short) (narrow) %v640_v28, 16 }
 0x1e1   : > { %v1059_v22 = vpop.f32.mrf.mxu0  ;;  %v1366_v0 = vpop.xlane.xlu0 %1365 }
 0x1e2   : > { %v1576_v63 = vsub.f32 %v1536_v38, %v1556_v58  ;;  %v6098_v40 = vmul.f32 2.0, %v1059_v22  ;;  %v1437_v1 = vperm.slane %v1366_v0, %v5633_v51  ;;  %v1450_v58 = vperm.slane %v6077_v47, %v6082_v19 }
 0x1e3   : > { %v1363_v3 = vpop.xlane.xlu2 %1362 }
 0x1e4   : > { %v1596_v53 = vmax.f32 %v1576_v63, 0.0  ;;  %v1574_v4 = vsub.f32 %v6096_v56, %v6098_v40  ;;  %v1439_v5 = vsel %vm1429_vm15, %v1438_v34, %v1437_v1  ;;  %v1435_v41 = vperm.slane %v1363_v3, %v6082_v19 }
 0x1e5   : > { %v6106_v6 = vadd.f32 %v1439_v5, %v1366_v0  ;;  %v6121_v21 = vpop.xlane.xlu1 %1386  ;;  %v1541_v25 = vadd.f32 %v1439_v5, %v6079_v37  ;;  %v1443_v63 = vperm.slane %v6094_v35, %v5633_v51  ;;  %v1449_v5 = vperm.slane %v6075_v44, %v5633_v51 }
 0x1e6   : > { %v6108_v7 = vmul.f32 -0.25, %v1596_v53  ;;  %v1436_v12 = vsel %vm1429_vm15, %v1435_v41, %v1434_v29 }
 0x1e7   : > { %v1091_v8 = vpop.f32.mrf.mxu1  ;;  %v1146_v13 = vpop.f32.mrf.mxu3  ;;  %v1538_v24 = vadd.f32 %v1436_v12, %v1360_v45  ;;  %v1539_v52 = vadd.f32 %v1436_v12, %v1363_v3 }
 0x1e8   : > { %v6111_v59 = vmul.f32 2.0, %v1091_v8  ;;  %v6113_v2 = vmul.f32 2.0, %v1146_v13  ;;  %v1640_v17 = vsel %vm1035_vm12, %v6108_v7, -inf }
 0x1e9   : > { %v1062_v16 = vpop.f32.mrf.mxu0  ;;  %v1117_v42 = vpop.f32.mrf.mxu2 }
 0x1ea   : > { %v1577_v32 = vsub.f32 %v6090_v14, %v6111_v59  ;;  %v1580_v9 = vsub.f32 %v6106_v6, %v6113_v2  ;;  %v1555_v61 = vmul.f32 2.0, %v1062_v16  ;;  %v1558_v10 = vmul.f32 2.0, %v1117_v42  ;;  %v1375_v18 = vpop.xlane.xlu0 %1374 }
 0x1eb   : > { %1641 = vmax.xlane.f32.xlu1 %v1640_v17  ;;  %v1372_v48 = vpop.xlane.xlu2 %1371  ;;  %v1441_v28 = vperm.slane %v1375_v18, %v6082_v19  ;;  %v6151_v16 = vsel %vm1429_vm15, %v1450_v58, %v1449_v5 }
 0x1ec   : > { %v1578_v23 = vsub.f32 %v1538_v24, %v1558_v10  ;;  %v1440_v60 = vperm.slane %v1372_v48, %v5633_v51  ;;  %v1575_v26 = vsub.f32 %v1535_v20, %v1555_v61  ;;  %v1597_v40 = vmax.f32 %v1577_v32, 0.0 }
 0x1ed   : > { %v6145_v41 = vpop.xlane.xlu1 %1395 }
 0x1ee   : > { %v1598_v15 = vmax.f32 %v1578_v23, 0.0  ;;  %v1442_v33 = vsel %vm1429_vm15, %v1441_v28, %v1440_v60  ;;  %v1595_v46 = vmax.f32 %v1575_v26, 0.0 }
 0x1ef   : > { %v1149_v30 = vpop.f32.mrf.mxu3  ;;  %v1542_v62 = vadd.f32 %v1442_v33, %v1372_v48  ;;  %v1204_v22 = vpop.f32.mrf.mxu1  ;;  %v6153_v42 = vadd.f32 %v1442_v33, %v1375_v18 }
 0x1f0   : > { %2675 = vxpose.xlu2.b32.start.end [1/1] (short) (narrow) %v6056_v39, 16  ;;  %v6127_v50 = vmul.f32 -0.25, %v1598_v15  ;;  %v1561_v27 = vmul.f32 2.0, %v1149_v30  ;;  %v1447_v39 = vperm.slane %v6121_v21, %v6082_v19  ;;  %v6141_v53 = vmul.f32 -0.25, %v1595_v46 }
 0x1f1   : > { %v1120_v45 = vpop.f32.mrf.mxu2  ;;  %v1175_v49 = vpop.f32.mrf.mxu0  ;;  %v1564_v15 = vmul.f32 2.0, %v1204_v22  ;;  %v1548_v30 = vadd.f32 %v6151_v16, %v6075_v44 }
 0x1f2   : > { %v1559_v54 = vmul.f32 2.0, %v1120_v45  ;;  %v1384_v55 = vpop.xlane.xlu0 %1383  ;;  %v1562_v57 = vmul.f32 2.0, %v1175_v49  ;;  %v1646_v43 = vsel %vm1035_vm12, %v6127_v50, -inf  ;;  %v1581_v1 = vsub.f32 %v1541_v25, %v1561_v27  ;;  %7569 = vst [vmem:[#allocation14_spill] sm:$0xff] %v6141_v53 }
 0x1f3   : > { %v1446_v36 = vperm.slane %v1384_v55, %v5633_v51  ;;  %1647 = vmax.xlane.f32.xlu0 %v1646_v43  ;;  %v1381_v38 = vpop.xlane.xlu2 %1380  ;;  %v1637_v20 = vsel %vm1035_vm12, %v6141_v53, -inf }
 0x1f4   : > { %v1579_v0 = vsub.f32 %v1539_v52, %v1559_v54  ;;  %v1444_v34 = vperm.slane %v1381_v38, %v6082_v19  ;;  %v1582_v3 = vsub.f32 %v1542_v62, %v1562_v57  ;;  %v1601_v48 = vmax.f32 %v1581_v1, 0.0 }
 0x1f5   : > { %v1448_v37 = vsel %vm1429_vm15, %v1447_v39, %v1446_v36 }
 0x1f6   : > { %v6147_v29 = vadd.f32 %v1448_v37, %v1384_v55  ;;  %v1599_v8 = vmax.f32 %v1579_v0, 0.0  ;;  %v1445_v12 = vsel %vm1429_vm15, %v1444_v34, %v1443_v63  ;;  %v1602_v23 = vmax.f32 %v1582_v3, 0.0 }
 0x1f7   : > { %v1262_v13 = vpop.f32.mrf.mxu3  ;;  %v1544_v18 = vadd.f32 %v1445_v12, %v6094_v35  ;;  %v6172_v45 = vmul.f32 -0.25, %v1601_v48  ;;  %v1207_v49 = vpop.f32.mrf.mxu1  ;;  %v1545_v55 = vadd.f32 %v1445_v12, %v1381_v38  ;;  %v1547_v0 = vadd.f32 %v1448_v37, %v6121_v21 }
 0x1f8   : > { %v6155_v17 = vmul.f32 -0.25, %v1599_v8  ;;  %v1568_v61 = vmul.f32 2.0, %v1262_v13  ;;  %v6174_v54 = vmul.f32 -0.25, %v1602_v23  ;;  %v1565_v57 = vmul.f32 2.0, %v1207_v49 }
 0x1f9   : > { %v1178_v24 = vpop.f32.mrf.mxu0  ;;  %v1233_v10 = vpop.f32.mrf.mxu2  ;;  %7571 = vst [vmem:[#allocation16_spill] sm:$0xff] %v6172_v45  ;;  %v1584_v35 = vsub.f32 %v1544_v18, %v1564_v15  ;;  %v1655_v39 = vsel %vm1035_vm12, %v6172_v45, -inf  ;;  %v1452_v13 = vperm.slane %v6145_v41, %v5633_v51 }
 0x1fa   : > { %7570 = vst [vmem:[#allocation15_spill] sm:$0xff] %v6155_v17  ;;  %v6159_v60 = vmul.f32 2.0, %v1178_v24  ;;  %v6161_v26 = vmul.f32 2.0, %v1233_v10  ;;  %v1649_v28 = vsel %vm1035_vm12, %v6155_v17, -inf  ;;  %v1588_v46 = vsub.f32 %v1548_v30, %v1568_v61  ;;  %v1402_v43 = vpop.xlane.xlu0 %1401 }
 0x1fb   : > { %1638 = vmax.xlane.f32.xlu0 %v1637_v20  ;;  %1650 = vmax.xlane.f32.xlu1 %v1649_v28  ;;  %v1405_v52 = vpop.xlane.xlu1 %1404  ;;  %7572 = vst [vmem:[#allocation17_spill] sm:$0xff] %v6174_v54  ;;  %v1658_v58 = vsel %vm1035_vm12, %v6174_v54, -inf  ;;  %v1604_v63 = vmax.f32 %v1584_v35, 0.0  ;;  %v1455_v38 = vperm.slane %v1402_v43, %v5633_v51  ;;  %v1585_v34 = vsub.f32 %v1545_v55, %v1565_v57 }
 0x1fc   : > { %v1583_v33 = vsub.f32 %v6153_v42, %v6159_v60  ;;  %v1586_v27 = vsub.f32 %v6147_v29, %v6161_v26  ;;  %v1456_v25 = vperm.slane %v1405_v52, %v6082_v19  ;;  %v1608_v22 = vmax.f32 %v1588_v46, 0.0 }
 0x1fd   : > { %v1399_v62 = vpop.xlane.xlu2 %1398  ;;  %v6185_v8 = vmul.f32 -0.25, %v1604_v63  ;;  %v1605_v23 = vmax.f32 %v1585_v34, 0.0 }
 0x1fe   : > { %v1453_v1 = vperm.slane %v1399_v62, %v6082_v19  ;;  %v1457_v3 = vsel %vm1429_vm15, %v1456_v25, %v1455_v38  ;;  %v6187_v12 = vmul.f32 -0.25, %v1608_v22  ;;  %v1606_v2 = vmax.f32 %v1586_v27, 0.0 }
 0x1ff   : > { %7573 = vst [vmem:[#allocation18_spill] sm:$0xff] %v6185_v8  ;;  %v6192_v10 = vadd.f32 %v1457_v3, %v1402_v43  ;;  %v1664_v19 = vsel %vm1035_vm12, %v6185_v8, -inf  ;;  %v6205_v49 = vmul.f32 -0.25, %v1605_v23  ;;  %v1603_v32 = vmax.f32 %v1583_v33, 0.0 }
 0x200   : > { %7574 = vst [vmem:[#allocation19_spill] sm:$0xff] %v6187_v12  ;;  %v1454_v24 = vsel %vm1429_vm15, %v1453_v1, %v1452_v13  ;;  %v1676_v37 = vsel %vm1035_vm12, %v6187_v12, -inf }
 0x201   : > { %v1236_v44 = vpop.f32.mrf.mxu2  ;;  %v1550_v18 = vadd.f32 %v1454_v24, %v6145_v41  ;;  %7576 = vst [vmem:[#allocation21_spill] sm:$0xff] %v6205_v49  ;;  %v1667_v57 = vsel %vm1035_vm12, %v6205_v49, -inf  ;;  %v1553_v41 = vadd.f32 %v1457_v3, %v1405_v52  ;;  %v6256_v27 = vmul.f32 -0.25, %v1603_v32 }
 0x202   : > { %v1567_v36 = vmul.f32 2.0, %v1236_v44  ;;  %v1551_v44 = vadd.f32 %v1454_v24, %v1399_v62 }
 0x203   : > { %1656 = vmax.xlane.f32.xlu0 %v1655_v39  ;;  %1659 = vmax.xlane.f32.xlu1 %v1658_v58  ;;  %7582 = vst [vmem:[#allocation27_spill] sm:$0xff] %v6256_v27 }
 0x204   : > { %v1587_v5 = vsub.f32 %v1547_v0, %v1567_v36 }
 0x205   : > { %v2383_v13 = vpop.permute.xlu2 %2382 }
 0x206   : > { %v1607_v48 = vmax.f32 %v1587_v5, 0.0 }
 0x208   : > { %v6203_v30 = vmul.f32 -0.25, %v1607_v48 }
 0x209   : > { %v1320_v61 = vpop.f32.mrf.mxu1 }
 0x20a   : > { %v6194_v21 = vmul.f32 2.0, %v1320_v61  ;;  %7575 = vst [vmem:[#allocation20_spill] sm:$0xff] %v6203_v30  ;;  %v1673_v55 = vsel %vm1035_vm12, %v6203_v30, -inf }
 0x20b   : > { %v1291_v20 = vpop.f32.mrf.mxu0  ;;  %1665 = vmax.xlane.f32.xlu0 %v1664_v19  ;;  %1677 = vmax.xlane.f32.xlu1 %v1676_v37  ;;  %v1594_v37 = vmax.f32 %v1574_v4, 0.0 }
 0x20c   : > { %v1592_v28 = vsub.f32 %v6192_v10, %v6194_v21  ;;  %v1570_v51 = vmul.f32 2.0, %v1291_v20  ;;  %v2380_v5 = vpop.permute.xlu0 %2379 }
 0x20d   : > { %v2392_v24 = vpop.permute.xlu2 %2391  ;;  %v6226_v20 = vmul.f32 -0.25, %v1594_v37 }
 0x20e   : > { %v1590_v15 = vsub.f32 %v1550_v18, %v1570_v51  ;;  %v1600_v18 = vmax.f32 %v1580_v9, 0.0 }
 0x20f   : > { %v1634_v51 = vsel %vm1035_vm12, %v6226_v20, -inf }
 0x210   : > { %v1610_v25 = vmax.f32 %v1590_v15, 0.0  ;;  %v6233_v15 = vmul.f32 -0.25, %v1600_v18 }
 0x211   : > { %v1323_v46 = vpop.f32.mrf.mxu1 }
 0x212   : > { %v1573_v35 = vmul.f32 2.0, %v1323_v46  ;;  %v6211_v63 = vmul.f32 -0.25, %v1610_v25  ;;  %v1652_v56 = vsel %vm1035_vm12, %v6233_v15, -inf  ;;  %v6240_v46 = vmul.f32 -0.25, %v1597_v40 }
 0x213   : > { %v1294_v43 = vpop.f32.mrf.mxu0  ;;  %1674 = vmax.xlane.f32.xlu0 %v1673_v55  ;;  %1668 = vmax.xlane.f32.xlu1 %v1667_v57  ;;  %v2377_v3 = vpop.permute.xlu1 %2376  ;;  %v1549_v57 = vadd.f32 %v6151_v16, %v6077_v47  ;;  %v1661_v25 = vsel %vm1035_vm12, %v6256_v27, -inf  ;;  %v1612_v47 = vmax.f32 %v1592_v28, 0.0 }
 0x214   : > { %v1571_v39 = vmul.f32 2.0, %v1294_v43  ;;  %v1593_v58 = vsub.f32 %v1553_v41, %v1573_v35  ;;  %7577 = vst [vmem:[#allocation22_spill] sm:$0xff] %v6211_v63  ;;  %v1682_v38 = vsel %vm1035_vm12, %v6211_v63, -inf  ;;  %v2389_v23 = vpop.permute.xlu0 %2388  ;;  %v1643_v6 = vsel %vm1035_vm12, %v6240_v46, -inf  ;;  %v1265_v55 = vpop.f32.mrf.mxu3 }
 0x215   : > { %7580 = vst [vmem:[#allocation25_spill] sm:$0xff] %v6240_v46  ;;  %v6247_v35 = vmul.f32 -0.25, %v1606_v2  ;;  %v1569_v14 = vmul.f32 2.0, %v1265_v55  ;;  %v2402_v29 = vpop.permute.xlu2 %2401  ;;  %v6267_v16 = vmul.f32 -0.25, %v1612_v47 }
 0x216   : > { %v1591_v36 = vsub.f32 %v1551_v44, %v1571_v39  ;;  %v1613_v34 = vmax.f32 %v1593_v58, 0.0 }
 0x217   : > { %7581 = vst [vmem:[#allocation26_spill] sm:$0xff] %v6247_v35  ;;  %v1670_v59 = vsel %vm1035_vm12, %v6247_v35, -inf  ;;  %v1589_v26 = vsub.f32 %v1549_v57, %v1569_v14  ;;  %v1688_v60 = vsel %vm1035_vm12, %v6267_v16, -inf }
 0x218   : > { %v1611_v22 = vmax.f32 %v1591_v36, 0.0  ;;  %v6219_v62 = vmul.f32 -0.25, %v1613_v34  ;;  %7584 = vst [vmem:[#allocation29_spill] sm:$0xff] %v6267_v16 }
 0x219   : > { %v1609_v44 = vmax.f32 %v1589_v26, 0.0 }
 0x21a   : > { %v6213_v0 = vmul.f32 -0.25, %v1611_v22  ;;  %7579 = vst [vmem:[#allocation24_spill] sm:$0xff] %v6219_v62  ;;  %v1691_v52 = vsel %vm1035_vm12, %v6219_v62, -inf }
 0x21b   : > { %1683 = vmax.xlane.f32.xlu0 %v1682_v38  ;;  %v2386_v61 = vpop.permute.xlu1 %2385  ;;  %v6260_v41 = vmul.f32 -0.25, %v1609_v44 }
 0x21c   : > { %7578 = vst [vmem:[#allocation23_spill] sm:$0xff] %v6213_v0  ;;  %v1685_v1 = vsel %vm1035_vm12, %v6213_v0, -inf  ;;  %v2399_v4 = vpop.permute.xlu0 %2398 }
 0x21d   : > { %1686 = vmax.xlane.f32.xlu1 %v1685_v1  ;;  %v2417_v39 = vpop.permute.xlu2 %2416  ;;  %7583 = vst [vmem:[#allocation28_spill] sm:$0xff] %v6260_v41  ;;  %v1679_v42 = vsel %vm1035_vm12, %v6260_v41, -inf }
 0x223   : > { %1692 = vmax.xlane.f32.xlu0 %v1691_v52  ;;  %v2395_v19 = vpop.permute.xlu1 %2394 }
 0x224   : > { %v2414_v9 = vpop.permute.xlu0 %2413 }
 0x22b   : > { %v2405_v48 = vpop.permute.xlu1 %2404 }
 0x22c   : > { %v2411_v33 = vpop.permute.xlu0 %2410 }
 0x233   : > { %v2408_v43 = vpop.permute.xlu1 %2407 }
 0x24c   : > { %2483 = vxpose.xlu0.b32.start.end [1/1] (short) (narrow) %v2380_v5, 16 }
 0x257   : > { %2451 = vxpose.xlu1.b32.start.end [1/1] (short) (narrow) %v2377_v3, 16 }
 0x25c   : > { %2611 = vxpose.xlu0.b32.start.end [1/1] (short) (narrow) %v2392_v24, 16 }
 0x25e   : > { %v6285_v5 = vpop.xlane.xlu1 %1641 }
 0x266   : > { %v6271_v36 = vpop.xlane.xlu0 %1647 }
 0x267   : > { %2771 = vxpose.xlu1.b32.start.end [1/1] (short) (narrow) %v2405_v48, 16 }
 0x269   : > { %1635 = vmax.xlane.f32.xlu2 %v1634_v51 }
 0x26c   : > { %2547 = vxpose.xlu0.b32.start.end [1/1] (short) (narrow) %v2386_v61, 16 }
 0x26e   : > { %v6273_v58 = vpop.xlane.xlu0 %1638 }
 0x26f   : > { %7585 = vst [vmem:[#allocation30_spill] sm:$0xff] %v6273_v58 }
 0x271   : > { %1653 = vmax.xlane.f32.xlu2 %v1652_v56 }
 0x276   : > { %v6275_v22 = vpop.xlane.xlu0 %1656 }
 0x277   : > { %2707 = vxpose.xlu1.b32.start.end [1/1] (short) (narrow) %v2399_v4, 16  ;;  %7586 = vst [vmem:[#allocation31_spill] sm:$0xff] %v6275_v22 }
 0x279   : > { %1644 = vmax.xlane.f32.xlu2 %v1643_v6  ;;  %v2435_v34 = vpop.trf.xlu2 }
 0x27c   : > { %2867 = vxpose.xlu0.b32.start.end [1/1] (short) (narrow) %v2414_v9, 16 }
 0x27e   : > { %v6277_v38 = vpop.xlane.xlu0 %1665 }
 0x27f   : > { %7587 = vst [vmem:[#allocation32_spill] sm:$0xff] %v6277_v38 }
 0x281   : > { %1671 = vmax.xlane.f32.xlu2 %v1670_v59  ;;  %v2436_v52 = vpop.trf.xlu2 }
 0x286   : > { %v6279_v10 = vpop.xlane.xlu0 %1674 }
 0x287   : > { %2803 = vxpose.xlu1.b32.start.end [1/1] (short) (narrow) %v2408_v43, 16  ;;  %7588 = vst [vmem:[#allocation33_spill] sm:$0xff] %v6279_v10 }
 0x289   : > { %1662 = vmax.xlane.f32.xlu2 %v1661_v25  ;;  %v6287_v24 = vpop.trf.xlu2 }
 0x28c   : > { %2899 = vxpose.xlu0.b32.start.end [1/1] (short) (narrow) %v2417_v39, 16 }
 0x28e   : > { %v6281_v21 = vpop.xlane.xlu0 %1683 }
 0x28f   : > { %7589 = vst [vmem:[#allocation34_spill] sm:$0xff] %v6281_v21 }
 0x291   : > { %1680 = vmax.xlane.f32.xlu2 %v1679_v42  ;;  %v6291_v37 = vpop.trf.xlu2 }
 0x296   : > { %v6283_v28 = vpop.xlane.xlu0 %1692 }
 0x297   : > { %7590 = vst [vmem:[#allocation35_spill] sm:$0xff] %v6283_v28 }
 0x299   : > { %1689 = vmax.xlane.f32.xlu2 %v1688_v60 }
 0x29c   : > { %2835 = vxpose.xlu0.b32.start.end [1/1] (short) (narrow) %v2411_v33, 16  ;;  %v3157_v33 = vrot.slane %v2436_v52, 4 }
 0x2c2   : > { %2515 = vxpose.xlu2.b32.start.end [1/1] (short) (narrow) %v2383_v13, 16  ;;  %v6289_v13 = vpop.xlane.xlu1 %1650 }
 0x2c3   : > { %7591 = vst [vmem:[#allocation36_spill] sm:$0xff] %v6289_v13 }
 0x2ca   : > { %v6293_v51 = vpop.xlane.xlu1 %1659 }
 0x2cb   : > { %7592 = vst [vmem:[#allocation37_spill] sm:$0xff] %v6293_v51 }
 0x2d2   : > { %2643 = vxpose.xlu2.b32.start.end [1/1] (short) (narrow) %v2395_v19, 16  ;;  %v6298_v6 = vpop.xlane.xlu1 %1677 }
 0x2d3   : > { %7593 = vst [vmem:[#allocation38_spill] sm:$0xff] %v6298_v6 }
 0x2da   : > { %v6305_v55 = vpop.xlane.xlu1 %1668 }
 0x2db   : > { %7594 = vst [vmem:[#allocation39_spill] sm:$0xff] %v6305_v55 }
 0x2dc   : > { %v6295_v18 = vpop.xlane.xlu2 %1635 }
 0x2e2   : > { %2579 = vxpose.xlu2.b32.start.end [1/1] (short) (narrow) %v2389_v23, 16  ;;  %v6309_v59 = vpop.xlane.xlu1 %1686 }
 0x2e3   : > { %7596 = vst [vmem:[#allocation41_spill] sm:$0xff] %v6309_v59 }
 0x2e4   : > { %v6303_v9 = vpop.xlane.xlu2 %1653 }
 0x2ec   : > { %v6307_v14 = vpop.xlane.xlu2 %1644 }
 0x2ed   : > { %7595 = vst [vmem:[#allocation40_spill] sm:$0xff] %v6307_v14 }
 0x2f0   : > { %v2499_v1 = vpop.trf.xlu0 }
 0x2f1   : > { %v2931_v49 = vrot.slane %v2499_v1, 4 }
 0x2f2   : > { %2739 = vxpose.xlu2.b32.start.end [1/1] (short) (narrow) %v2402_v29, 16 }
 0x2f4   : > { %v6311_v32 = vpop.xlane.xlu2 %1671 }
 0x2f5   : > { %7597 = vst [vmem:[#allocation42_spill] sm:$0xff] %v6311_v32 }
 0x2f8   : > { %v2500_v3 = vpop.trf.xlu0 }
 0x2f9   : > { %v3155_v55 = vrot.slane %v2500_v3, 4 }
 0x2fb   : > { %v2467_v57 = vpop.trf.xlu1 }
 0x2fc   : > { %v6313_v29 = vpop.xlane.xlu2 %1662 }
 0x2fd   : > { %7598 = vst [vmem:[#allocation43_spill] sm:$0xff] %v6313_v29 }
 0x300   : > { %v2627_v61 = vpop.trf.xlu0 }
 0x301   : > { %v2955_v30 = vrot.slane %v2627_v61, 4 }
 0x303   : > { %v6315_v26 = vpop.trf.xlu1 }
 0x304   : > { %v6319_v25 = vpop.xlane.xlu2 %1680 }
 0x305   : > { %7599 = vst [vmem:[#allocation44_spill] sm:$0xff] %v6319_v25  ;;  %v2933_v25 = vrot.slane %v2435_v34, 4 }
 0x307   : > { %v2934_v29 = vsel %vm731_vm11, %v2499_v1, %v2933_v25 }
 0x308   : > { %v2628_v19 = vpop.trf.xlu0 }
 0x309   : > { %v3179_v23 = vrot.slane %v2628_v19, 4 }
 0x30b   : > { %v6321_v44 = vpop.trf.xlu1 }
 0x30c   : > { %v6325_v42 = vpop.xlane.xlu2 %1689 }
 0x30d   : > { %7600 = vst [vmem:[#allocation45_spill] sm:$0xff] %v6325_v42 }
 0x310   : > { %v2563_v48 = vpop.trf.xlu0 }
 0x311   : > { %v2957_v10 = vrot.slane %v2563_v48, 4  ;;  %v2956_v12 = vsel %vm731_vm11, %v2955_v30, %v2563_v48 }
 0x313   : > { %v6327_v47 = vpop.trf.xlu1 }
 0x318   : > { %v2564_v56 = vpop.trf.xlu0 }
 0x319   : > { %v3180_v40 = vsel %vm731_vm11, %v3179_v23, %v2564_v56  ;;  %v3181_v4 = vrot.slane %v2564_v56, 4  ;;  %v3158_v23 = vsel %vm731_vm11, %v2500_v3, %v3157_v33  ;;  %v6359_v3 = vperm.slane %v2934_v29, %v5746_v11 }
 0x31a   : > { %v3166_v62 = vperm.slane %v3158_v23, %v5746_v11 }
 0x31b   : > { %v6301_v2 = vsel %vm731_vm11, %v2628_v19, %v3181_v4  ;;  %v6332_v56 = vpop.trf.xlu1  ;;  %v3169_v4 = vrot.slane %v6315_v26, 4  ;;  %v2993_v29 = vrot.slane %v6359_v3, 4 }
 0x31c   : > { %v3217_v42 = vrot.slane %v3166_v62, 4 }
 0x320   : > { %v6317_v43 = vpop.trf.xlu0 }
 0x321   : > { %v3067_v38 = vrot.slane %v6317_v43, 4 }
 0x323   : > { %v6343_v41 = vpop.trf.xlu1 }
 0x328   : > { %v6323_v39 = vpop.trf.xlu0 }
 0x32b   : > { %v2819_v8 = vpop.trf.xlu1 }
 0x330   : > { %v6329_v60 = vpop.trf.xlu0 }
 0x333   : > { %v6423_v45 = vpop.trf.xlu1 }
 0x338   : > { %v6336_v28 = vpop.trf.xlu0 }
 0x35b   : > { %v2531_v19 = vpop.trf.xlu2 }
 0x35c   : > { %v2943_v27 = vrot.slane %v2531_v19, 4 }
 0x35e   : > { %v2944_v6 = vsel %vm731_vm11, %v2943_v27, %v2467_v57 }
 0x363   : > { %v2532_v16 = vpop.trf.xlu2 }
 0x364   : > { %v3170_v0 = vsel %vm731_vm11, %v2532_v16, %v3169_v4  ;;  %v2851_v4 = vpop.trf.xlu0 }
 0x365   : > { %v3178_v59 = vperm.slane %v3170_v0, %v5746_v11  ;;  %v2932_v0 = vsel %vm731_vm11, %v2931_v49, %v2435_v34  ;;  %v6366_v34 = vperm.slane %v2956_v12, %v5746_v11  ;;  %v6381_v12 = vperm.slane %v2944_v6, %v5746_v11 }
 0x366   : > { %v3081_v35 = vrot.slane %v2851_v4, 4 }
 0x367   : > { %v3215_v63 = vrot.slane %v3178_v59, 4  ;;  %v6341_v21 = vsel %vm731_vm11, %v3178_v59, %v3217_v42  ;;  %v2945_v59 = vrot.slane %v2467_v57, 4  ;;  %v3156_v42 = vsel %vm731_vm11, %v3155_v55, %v2436_v52 }
 0x368   : > { %v6363_v49 = vperm.slane %v3156_v42, %v5746_v11  ;;  %v3057_v52 = vrot.slane %v6332_v56, 4  ;;  %v6378_v55 = vperm.slane %v3180_v40, %v5746_v11  ;;  %v3079_v40 = vrot.slane %v6329_v60, 4 }
 0x369   : > { %v6346_v33 = vsel %vm731_vm11, %v3215_v63, %v3166_v62  ;;  %v2958_v63 = vsel %vm731_vm11, %v2627_v61, %v2957_v10  ;;  %v6356_v62 = vperm.slane %v2932_v0, %v5746_v11  ;;  %v2946_v1 = vsel %vm731_vm11, %v2531_v19, %v2945_v59 }
 0x36a   : > { %v6372_v10 = vperm.slane %v2958_v63, %v5746_v11  ;;  %v3167_v61 = vrot.slane %v2532_v16, 4  ;;  %v6386_v25 = vperm.slane %v2946_v1, %v5746_v11  ;;  %v3069_v19 = vrot.slane %v2819_v8, 4 }
 0x36b   : > { %v6348_v23 = vpop.trf.xlu2  ;;  %v2981_v57 = vrot.slane %v6356_v62, 4  ;;  %v3205_v16 = vrot.slane %v6363_v49, 4  ;;  %v3005_v0 = vrot.slane %v6366_v34, 4  ;;  %v3055_v59 = vrot.slane %v6321_v44, 4 }
 0x36c   : > { %v6392_v42 = vpop.trf.xlu0  ;;  %v3017_v6 = vrot.slane %v6372_v10, 4  ;;  %v6397_v63 = vperm.slane %v6301_v2, %v5746_v11  ;;  %v3058_v1 = vsel %vm731_vm11, %v6321_v44, %v3057_v52  ;;  %v3168_v27 = vsel %vm731_vm11, %v3167_v61, %v6315_v26 }
 0x36d   : > { %v2982_v32 = vsel %vm731_vm11, %v6381_v12, %v2981_v57  ;;  %v2994_v54 = vsel %vm731_vm11, %v6386_v25, %v2993_v29  ;;  %v2967_v2 = vrot.slane %v6348_v23, 4  ;;  %v3070_v51 = vsel %vm731_vm11, %v6317_v43, %v3069_v19 }
 0x36e   : > { %v3305_v44 = vrot.slane %v6392_v42, 4  ;;  %v6415_v26 = vsel %vm731_vm11, %v3055_v59, %v6332_v56  ;;  %v6418_v52 = vperm.slane %v3058_v1, %v5746_v11  ;;  %v3174_v61 = vperm.slane %v3168_v27, %v5746_v11 }
 0x36f   : > { %v3080_v57 = vsel %vm731_vm11, %v3079_v40, %v2851_v4  ;;  %v3281_v29 = vrot.slane %v6343_v41, 4  ;;  %v2990_v22 = vperm.slane %v2982_v32, %v5763_v31  ;;  %v3068_v56 = vsel %vm731_vm11, %v3067_v38, %v2819_v8 }
 0x370   : > { %v6429_v59 = vperm.slane %v3070_v51, %v5746_v11  ;;  %v6435_v4 = vperm.slane %v2994_v54, %v5763_v31  ;;  %v3082_v27 = vsel %vm731_vm11, %v6329_v60, %v3081_v35  ;;  %v6440_v40 = vperm.slane %v3080_v57, %v5746_v11 }
 0x371   : > { %v3306_v32 = vsel %vm731_vm11, %v6336_v28, %v3305_v44  ;;  %v3203_v38 = vrot.slane %v3174_v61, 4  ;;  %v3293_v51 = vrot.slane %v6423_v45, 4  ;;  %v6453_v35 = vperm.slane %v3068_v56, %v5746_v11 }
 0x372   : > { %v3206_v44 = vsel %vm731_vm11, %v3174_v61, %v3205_v16  ;;  %v3129_v57 = vrot.slane %v6429_v59, 4  ;;  %v3226_v16 = vperm.slane %v6341_v21, %v5763_v31  ;;  %v3241_v21 = vrot.slane %v6397_v63, 4 }
 0x373   : > { %v6369_v30 = vpop.trf.xlu2  ;;  %v3294_v61 = vsel %vm731_vm11, %v6323_v39, %v3293_v51  ;;  %v3214_v46 = vperm.slane %v3206_v44, %v5763_v31  ;;  %v3282_v51 = vsel %vm731_vm11, %v6327_v47, %v3281_v29 }
 0x374   : > { %v3302_v29 = vperm.slane %v3294_v61, %v5746_v11 }
 0x37b   : > { %v2595_v48 = vpop.trf.xlu2 }
 0x37c   : > { %v2968_v43 = vsel %vm731_vm11, %v2967_v2, %v2595_v48  ;;  %v2969_v19 = vrot.slane %v2595_v48, 4  ;;  %v3033_v2 = vrot.slane %v2990_v22, 4 }
 0x37d   : > { %v6432_v1 = vperm.slane %v2968_v43, %v5746_v11 }
 0x37e   : > { %v2970_v8 = vsel %vm731_vm11, %v6348_v23, %v2969_v19  ;;  %v6459_v23 = vperm.slane %v3306_v32, %v5746_v11  ;;  %v3041_v19 = vrot.slane %v6435_v4, 4 }
 0x37f   : > { %v6448_v48 = vperm.slane %v2970_v8, %v5746_v11  ;;  %v3006_v54 = vsel %vm731_vm11, %v6432_v1, %v3005_v0  ;;  %v3191_v0 = vrot.slane %v6369_v30, 4 }
 0x380   : > { %v3014_v60 = vperm.slane %v3006_v54, %v5763_v31 }
 0x381   : > { %v3018_v43 = vsel %vm731_vm11, %v6448_v48, %v3017_v6  ;;  %v3204_v6 = vsel %vm731_vm11, %v3203_v38, %v6363_v49  ;;  %v3117_v38 = vrot.slane %v6453_v35, 4 }
 0x382   : > { %v3034_v56 = vsel %vm731_vm11, %v3014_v60, %v3033_v2  ;;  %v6467_v8 = vperm.slane %v3018_v43, %v5763_v31  ;;  %v3031_v54 = vrot.slane %v3014_v60, 4 }
 0x383   : > { %v2596_v32 = vpop.trf.xlu2  ;;  %3475 = vxpose.xlu0.b32.start [1/2] (short) (narrow) %v3034_v56, 8  ;;  %v6484_v56 = vperm.slane %v3082_v27, %v5746_v11 }
 0x384   : > { %v3192_v14 = vsel %vm731_vm11, %v3191_v0, %v2596_v32  ;;  %v3193_v2 = vrot.slane %v2596_v32, 4  ;;  %v3042_v43 = vsel %vm731_vm11, %v6467_v8, %v3041_v19  ;;  %v3032_v60 = vsel %vm731_vm11, %v3031_v54, %v2990_v22 }
 0x385   : > { %v3198_v49 = vperm.slane %v3192_v14, %v5746_v11  ;;  %3603 = vxpose.xlu2.b32.start [1/2] (short) (narrow) %v3042_v43, 8  ;;  %3443 = vxpose.xlu1.b32.start [1/2] (short) (narrow) %v3032_v60, 8  ;;  %v3210_v19 = vperm.slane %v3204_v6, %v5763_v31  ;;  %v3222_v22 = vperm.slane %v6346_v33, %v5763_v31  ;;  %v3351_v0 = vrot.slane %v6459_v23, 4 }
 0x386   : > { %v3194_v44 = vsel %vm731_vm11, %v6369_v30, %v3193_v2  ;;  %v3130_v14 = vsel %vm731_vm11, %v6484_v56, %v3129_v57  ;;  %v7601_v32 = vrot.slane %v6378_v55, 4  ;;  %v3257_v30 = vrot.slane %v3214_v46, 4 }
 0x387   : > { %v3202_v27 = vperm.slane %v3194_v44, %v5746_v11  ;;  %v3227_v54 = vrot.slane %v3198_v49, 4  ;;  %v3265_v2 = vrot.slane %v3226_v16, 4  ;;  %v3253_v17 = vrot.slane %v3210_v19, 4 }
 0x388   : > { %v3230_v43 = vsel %vm731_vm11, %v3198_v49, %v7601_v32  ;;  %v3261_v13 = vrot.slane %v3222_v22, 4  ;;  %v3118_v49 = vsel %vm731_vm11, %v6440_v40, %v3117_v38 }
 0x389   : > { %v3239_v6 = vrot.slane %v3202_v27, 4  ;;  %v3228_v33 = vsel %vm731_vm11, %v3227_v54, %v6378_v55  ;;  %v3238_v60 = vperm.slane %v3230_v43, %v5763_v31  ;;  %v3242_v61 = vsel %vm731_vm11, %v3202_v27, %v3241_v21 }
 0x38a   : > { %v3234_v44 = vperm.slane %v3228_v33, %v5763_v31  ;;  %v3250_v57 = vperm.slane %v3242_v61, %v5763_v31  ;;  %v7602_v21 = vrot.slane %v6287_v24, 4 }
 0x38b   : > { %v2755_v53 = vpop.trf.xlu2  ;;  %v6510_v32 = vsel %vm731_vm11, %v3238_v60, %v3257_v30  ;;  %v3240_v55 = vsel %vm731_vm11, %v3239_v6, %v6397_v63  ;;  %v3255_v54 = vrot.slane %v3238_v60, 4  ;;  %v3003_v6 = vrot.slane %v6432_v1, 4 }
 0x38c   : > { %v3043_v43 = vrot.slane %v2755_v53, 4  ;;  %v3046_v27 = vsel %vm731_vm11, %v2755_v53, %v7602_v21  ;;  %v3251_v33 = vrot.slane %v3234_v44, 4  ;;  %v6518_v58 = vsel %vm731_vm11, %v3234_v44, %v3253_v17 }
 0x38d   : > { %v6521_v61 = vperm.slane %v3046_v27, %v5746_v11  ;;  %v3246_v38 = vperm.slane %v3240_v55, %v5763_v31  ;;  %v6525_v30 = vsel %vm731_vm11, %v3250_v57, %v3265_v2  ;;  %v6528_v63 = vsel %vm731_vm11, %v3255_v54, %v3214_v46 }
 0x38e   : > { %v3044_v53 = vsel %vm731_vm11, %v3043_v43, %v6287_v24  ;;  %v6534_v60 = vsel %vm731_vm11, %v3251_v33, %v3210_v19  ;;  %v3263_v17 = vrot.slane %v3250_v57, 4  ;;  %v3126_v55 = vperm.slane %v3118_v49, %v5763_v31 }
 0x38f   : > { %v3050_v44 = vperm.slane %v3044_v53, %v5746_v11  ;;  %v3105_v21 = vrot.slane %v6521_v61, 4  ;;  %v6540_v2 = vsel %vm731_vm11, %v3246_v38, %v3261_v13  ;;  %v3353_v46 = vrot.slane %v3302_v29, 4 }
 0x390   : > { %v3352_v54 = vsel %vm731_vm11, %v3351_v0, %v3302_v29  ;;  %v3259_v1 = vrot.slane %v3246_v38, 4  ;;  %v6544_v27 = vsel %vm731_vm11, %v3263_v17, %v3226_v16  ;;  %v3062_v24 = vperm.slane %v6415_v26, %v5746_v11 }
 0x391   : > { %v3290_v19 = vperm.slane %v3282_v51, %v5746_v11  ;;  %v3093_v57 = vrot.slane %v3050_v44, 4  ;;  %v3106_v43 = vsel %vm731_vm11, %v6418_v52, %v3105_v21  ;;  %v2979_v49 = vrot.slane %v6381_v12, 4 }
 0x392   : > { %v6553_v13 = vperm.slane %v3106_v43, %v5763_v31  ;;  %v6556_v0 = vperm.slane %v3130_v14, %v5763_v31  ;;  %v3004_v16 = vsel %vm731_vm11, %v3003_v6, %v6366_v34  ;;  %v3143_v33 = vrot.slane %v3126_v55, 4 }
 0x393   : > { %v2756_v29 = vpop.trf.xlu2  ;;  %v3094_v26 = vsel %vm731_vm11, %v3062_v24, %v3093_v57  ;;  %v3358_v51 = vperm.slane %v3352_v54, %v5763_v31  ;;  %v6563_v38 = vsel %vm731_vm11, %v3259_v1, %v3222_v22  ;;  %v7603_v12 = vrot.slane %v6291_v37, 4 }
 0x394   : > { %v3153_v17 = vrot.slane %v6553_v13, 4  ;;  %v3102_v14 = vperm.slane %v3094_v26, %v5763_v31  ;;  %v3354_v34 = vsel %vm731_vm11, %v6459_v23, %v3353_v46  ;;  %v3327_v6 = vrot.slane %v3290_v19, 4 }
 0x395   : > { %v3270_v53 = vsel %vm731_vm11, %v2756_v29, %v7603_v12  ;;  %v3010_v57 = vperm.slane %v3004_v16, %v5763_v31  ;;  %v2980_v43 = vsel %vm731_vm11, %v2979_v49, %v6356_v62  ;;  %v3362_v23 = vperm.slane %v3354_v34, %v5763_v31 }
 0x396   : > { %v3278_v21 = vperm.slane %v3270_v53, %v5746_v11  ;;  %v3154_v22 = vsel %vm731_vm11, %v6556_v0, %v3153_v17  ;;  %v3144_v54 = vsel %vm731_vm11, %v3143_v33, %v3102_v14  ;;  %v3145_v1 = vrot.slane %v3102_v14, 4 }
 0x397   : > { %3604 = vxpose.xlu2.b32.end [2/2] (short) (narrow) %v3154_v22, 8  ;;  %3444 = vxpose.xlu1.b32.end [2/2] (short) (narrow) %v3144_v54, 8  ;;  %v3371_v53 = vrot.slane %v3358_v51, 4  ;;  %v3115_v17 = vrot.slane %v6440_v40, 4  ;;  %v2986_v14 = vperm.slane %v2980_v43, %v5763_v31  ;;  %v3027_v62 = vrot.slane %v3010_v57, 4 }
 0x398   : > { %v3328_v12 = vsel %vm731_vm11, %v3327_v6, %v3278_v21  ;;  %v3329_v26 = vrot.slane %v3278_v21, 4  ;;  %v3146_v46 = vsel %vm731_vm11, %v3126_v55, %v3145_v1  ;;  %v3039_v49 = vrot.slane %v6467_v8, 4 }
 0x399   : > { %v3334_v16 = vperm.slane %v3328_v12, %v5763_v31  ;;  %3476 = vxpose.xlu0.b32.end [2/2] (short) (narrow) %v3146_v46, 8  ;;  %v3091_v55 = vrot.slane %v3062_v24, 4  ;;  %v3375_v22 = vrot.slane %v3362_v23, 4  ;;  %v3116_v1 = vsel %vm731_vm11, %v3115_v17, %v6453_v35 }
 0x39a   : > { %v3330_v33 = vsel %vm731_vm11, %v3290_v19, %v3329_v26  ;;  %v3279_v19 = vrot.slane %v6327_v47, 4  ;;  %v3028_v12 = vsel %vm731_vm11, %v3027_v62, %v2986_v14  ;;  %v3040_v24 = vsel %vm731_vm11, %v3039_v49, %v6435_v4 }
 0x39b   : > { %v3373_v6 = vrot.slane %v3334_v16, 4  ;;  %v3338_v21 = vperm.slane %v3330_v33, %v5763_v31  ;;  %v6589_v34 = vsel %vm731_vm11, %v3371_v53, %v3334_v16  ;;  %v3092_v43 = vsel %vm731_vm11, %v3091_v55, %v3050_v44 }
 0x39c   : > { %v3029_v26 = vrot.slane %v2986_v14, 4  ;;  %v3015_v46 = vrot.slane %v6448_v48, 4  ;;  %v3267_v47 = vrot.slane %v2756_v29, 4  ;;  %v3098_v44 = vperm.slane %v3092_v43, %v5763_v31 }
 0x39d   : > { %v6592_v54 = vsel %vm731_vm11, %v3358_v51, %v3373_v6  ;;  %v3377_v40 = vrot.slane %v3338_v21, 4  ;;  %v6599_v8 = vsel %vm731_vm11, %v3375_v22, %v3338_v21  ;;  %v3122_v16 = vperm.slane %v3116_v1, %v5763_v31 }
 0x39e   : > { %v3030_v35 = vsel %vm731_vm11, %v3010_v57, %v3029_v26  ;;  %v3303_v53 = vrot.slane %v6336_v28, 4  ;;  %v3280_v4 = vsel %vm731_vm11, %v3279_v19, %v6343_v41  ;;  %v3016_v48 = vsel %vm731_vm11, %v3015_v46, %v6372_v10 }
 0x39f   : > { %v6605_v51 = vsel %vm731_vm11, %v3362_v23, %v3377_v40  ;;  %3379 = vxpose.xlu2.b32.start [1/2] (short) (narrow) %v3028_v12, 8  ;;  %3571 = vxpose.xlu1.b32.start [1/2] (short) (narrow) %v3040_v24, 8  ;;  %v2991_v23 = vrot.slane %v6386_v25, 4  ;;  %v3268_v29 = vsel %vm731_vm11, %v3267_v47, %v6291_v37  ;;  %v3151_v57 = vrot.slane %v6556_v0, 4 }
 0x3a0   : > { %v3139_v17 = vrot.slane %v3122_v16, 4  ;;  %v3141_v33 = vrot.slane %v3098_v44, 4  ;;  %v3291_v14 = vrot.slane %v6323_v39, 4  ;;  %v3286_v62 = vperm.slane %v3280_v4, %v5746_v11 }
 0x3a1   : > { %3411 = vxpose.xlu0.b32.start [1/2] (short) (narrow) %v3030_v35, 8  ;;  %v3304_v28 = vsel %vm731_vm11, %v3303_v53, %v6392_v42  ;;  %v3152_v41 = vsel %vm731_vm11, %v3151_v57, %v6553_v13  ;;  %v3022_v10 = vperm.slane %v3016_v48, %v5763_v31  ;;  %v3274_v37 = vperm.slane %v3268_v29, %v5746_v11 }
 0x3a2   : > { %v3140_v25 = vsel %vm731_vm11, %v3139_v17, %v3098_v44  ;;  %v2992_v0 = vsel %vm731_vm11, %v2991_v23, %v6359_v3  ;;  %v3142_v39 = vsel %vm731_vm11, %v3122_v16, %v3141_v33  ;;  %v3315_v49 = vrot.slane %v3286_v62, 4 }
 0x3a3   : > { %v3127_v6 = vrot.slane %v6484_v56, 4  ;;  %v3310_v42 = vperm.slane %v3304_v28, %v5746_v11  ;;  %v3292_v13 = vsel %vm731_vm11, %v3291_v14, %v6423_v45  ;;  %v2998_v21 = vperm.slane %v2992_v0, %v5763_v31  ;;  %v7605_v28 = vld [vmem:[#allocation14_spill] sm:$0xff] }
 0x3a4   : > { %v3035_v55 = vrot.slane %v3022_v10, 4  ;;  %v3103_v22 = vrot.slane %v6418_v52, 4  ;;  %v3316_v40 = vsel %vm731_vm11, %v3315_v49, %v3274_v37  ;;  %v3298_v3 = vperm.slane %v3292_v13, %v5746_v11  ;;  %v7612_v13 = vld [vmem:[#allocation37_spill] sm:$0xff] }
 0x3a5   : > { %v3339_v19 = vrot.slane %v3310_v42, 4  ;;  %v3128_v56 = vsel %vm731_vm11, %v3127_v6, %v6429_v59  ;;  %v3037_v12 = vrot.slane %v2998_v21, 4  ;;  %v3322_v45 = vperm.slane %v3316_v40, %v5763_v31 }
 0x3a6   : > { %v3104_v1 = vsel %vm731_vm11, %v3103_v22, %v6521_v61  ;;  %v3036_v43 = vsel %vm731_vm11, %v3035_v55, %v2998_v21  ;;  %v3134_v26 = vperm.slane %v3128_v56, %v5763_v31  ;;  %v3317_v53 = vrot.slane %v3274_v37, 4  ;;  %v7609_v37 = vld [vmem:[#allocation25_spill] sm:$0xff] }
 0x3a7   : > { %3572 = vxpose.xlu1.b32.end [2/2] (short) (narrow) %v3152_v41, 8  ;;  %3380 = vxpose.xlu2.b32.end [2/2] (short) (narrow) %v3140_v25, 8  ;;  %v3038_v52 = vsel %vm731_vm11, %v3022_v10, %v3037_v12  ;;  %v3110_v24 = vperm.slane %v3104_v1, %v5763_v31  ;;  %v3340_v61 = vsel %vm731_vm11, %v3339_v19, %v3298_v3  ;;  %v3365_v46 = vrot.slane %v3322_v45, 4  ;;  %v7606_v41 = vld [vmem:[#allocation36_spill] sm:$0xff]  ;;  %v7613_v21 = vld [vmem:[#allocation17_spill] sm:$0xff]  ;;  %v7615_v12 = vld [vmem:[#allocation26_spill] sm:$0xff] }
 0x3a8   : > { %v3147_v47 = vrot.slane %v3134_v26, 4  ;;  %v3346_v59 = vperm.slane %v3340_v61, %v5763_v31  ;;  %v3318_v4 = vsel %vm731_vm11, %v3286_v62, %v3317_v53  ;;  %v3341_v23 = vrot.slane %v3298_v3, 4  ;;  %v7608_v10 = vld [vmem:[#allocation40_spill] sm:$0xff] }
 0x3a9   : > { %3412 = vxpose.xlu0.b32.end [2/2] (short) (narrow) %v3142_v39, 8  ;;  %v3149_v35 = vrot.slane %v3110_v24, 4  ;;  %v3326_v48 = vperm.slane %v3318_v4, %v5763_v31  ;;  %v1697_v0 = vsub.f32 %v7609_v37, %v7608_v10  ;;  %v7611_v39 = vld [vmem:[#allocation16_spill] sm:$0xff]  ;;  %v1702_v55 = vsub.f32 %v7613_v21, %v7612_v13 }
 0x3aa   : > { %v3148_v44 = vsel %vm731_vm11, %v3147_v47, %v3110_v24  ;;  %v3366_v16 = vsel %vm731_vm11, %v3346_v59, %v3365_v46  ;;  %v3342_v29 = vsel %vm731_vm11, %v3310_v42, %v3341_v23  ;;  %v7616_v24 = vld [vmem:[#allocation32_spill] sm:$0xff]  ;;  %v7618_v47 = vld [vmem:[#allocation38_spill] sm:$0xff] }
 0x3ab   : > { %v3369_v57 = vrot.slane %v3326_v48, 4  ;;  %v3350_v17 = vperm.slane %v3342_v29, %v5763_v31  ;;  %v1720_v22 = vmul.f32 1.442695, %v1697_v0  ;;  %v1730_v56 = vmul.f32 1.442695, %v1702_v55  ;;  %v7630_v55 = vld [vmem:[#allocation41_spill] sm:$0xff] }
 0x3ad   : > { %v3370_v33 = vsel %vm731_vm11, %v3350_v17, %v3369_v57  ;;  %v7620_v57 = vld [vmem:[#allocation43_spill] sm:$0xff] }
 0x3af   : > { %3507 = vxpose.xlu1.b32.start [1/2] (short) (narrow) %v3036_v43, 8  ;;  %3667 = vxpose.xlu2.b32.start [1/2] (short) (narrow) %v6518_v58, 8  ;;  %v3150_v58 = vsel %vm731_vm11, %v3134_v26, %v3149_v35  ;;  %v7614_v43 = vld [vmem:[#allocation42_spill] sm:$0xff] }
 0x3b0   : > { %v7617_v26 = vld [vmem:[#allocation18_spill] sm:$0xff] }
 0x3b1   : > { %3539 = vxpose.xlu0.b32.start [1/2] (short) (narrow) %v3038_v52, 8  ;;  %v1704_v61 = vsub.f32 %v7617_v26, %v7616_v24 }
 0x3b7   : > { %3508 = vxpose.xlu1.b32.end [2/2] (short) (narrow) %v3148_v44, 8  ;;  %3668 = vxpose.xlu2.b32.end [2/2] (short) (narrow) %v3366_v16, 8 }
 0x3b9   : > { %3540 = vxpose.xlu0.b32.end [2/2] (short) (narrow) %v3150_v58, 8  ;;  %v1734_v58 = vmul.f32 1.442695, %v1704_v61 }
 0x3bf   : > { %3731 = vxpose.xlu1.b32.start [1/2] (short) (narrow) %v6510_v32, 8  ;;  %3795 = vxpose.xlu2.b32.start [1/2] (short) (narrow) %v6540_v2, 8  ;;  %v3367_v32 = vrot.slane %v3350_v17, 4  ;;  %v3363_v2 = vrot.slane %v3346_v59, 4  ;;  %v7619_v59 = vld [vmem:[#allocation19_spill] sm:$0xff] }
 0x3c0   : > { %v1708_v35 = vsub.f32 %v7619_v59, %v7618_v47  ;;  %v7621_v17 = vld [vmem:[#allocation27_spill] sm:$0xff] }
 0x3c1   : > { %3859 = vxpose.xlu0.b32.start [1/2] (short) (narrow) %v6525_v30, 8  ;;  %v3368_v30 = vsel %vm731_vm11, %v3367_v32, %v3326_v48  ;;  %v3364_v14 = vsel %vm731_vm11, %v3363_v2, %v3322_v45  ;;  %v1706_v45 = vsub.f32 %v7615_v12, %v7614_v43  ;;  %v7623_v2 = vld [vmem:[#allocation20_spill] sm:$0xff] }
 0x3c2   : > { %v1742_v48 = vmul.f32 1.442695, %v1708_v35 }
 0x3c3   : > { %v1738_v16 = vmul.f32 1.442695, %v1706_v45 }
 0x3c7   : > { %3732 = vxpose.xlu1.b32.end [2/2] (short) (narrow) %v3370_v33, 8  ;;  %3796 = vxpose.xlu2.b32.end [2/2] (short) (narrow) %v6592_v54, 8  ;;  %v1703_v33 = vsub.f32 %v7621_v17, %v7620_v57 }
 0x3c9   : > { %3860 = vxpose.xlu0.b32.end [2/2] (short) (narrow) %v6605_v51, 8 }
 0x3cf   : > { %3699 = vxpose.xlu1.b32.start [1/2] (short) (narrow) %v6528_v63, 8  ;;  %3763 = vxpose.xlu2.b32.start [1/2] (short) (narrow) %v6563_v38, 8  ;;  %v1694_v63 = vsub.f32 %v6226_v20, %v6295_v18  ;;  %v1696_v38 = vsub.f32 %v6108_v7, %v6285_v5  ;;  %v7607_v20 = vld [vmem:[#allocation15_spill] sm:$0xff] }
 0x3d0   : > { %v1699_v18 = vsub.f32 %v7607_v20, %v7606_v41 }
 0x3d1   : > { %3635 = vxpose.xlu0.b32.start [1/2] (short) (narrow) %v6534_v60, 8  ;;  %v1698_v60 = vsub.f32 %v6127_v50, %v6271_v36  ;;  %v1714_v54 = vmul.f32 1.442695, %v1694_v63  ;;  %v1718_v62 = vmul.f32 1.442695, %v1696_v38  ;;  %v7625_v38 = vld [vmem:[#allocation21_spill] sm:$0xff] }
 0x3d2   : > { %v1724_v5 = vmul.f32 1.442695, %v1699_v18 }
 0x3d3   : > { %v1722_v51 = vmul.f32 1.442695, %v1698_v60  ;;  %5124 = vpow2.f32 %v1714_v54  ;;  %v7624_v60 = vld [vmem:[#allocation39_spill] sm:$0xff] }
 0x3d4   : > { %v1705_v54 = vsub.f32 %v7625_v38, %v7624_v60 }
 0x3d5   : > { %5126 = vpow2.f32 %v1722_v51 }
 0x3d6   : > { %5128 = vpow2.f32 %v1718_v62  ;;  %v1736_v18 = vmul.f32 1.442695, %v1705_v54 }
 0x3d7   : > { %3700 = vxpose.xlu1.b32.end [2/2] (short) (narrow) %v3368_v30, 8  ;;  %3764 = vxpose.xlu2.b32.end [2/2] (short) (narrow) %v6589_v34, 8  ;;  %v1700_v34 = vsub.f32 %v6233_v15, %v6303_v9  ;;  %v7610_v9 = vld [vmem:[#allocation31_spill] sm:$0xff]  ;;  %v7622_v30 = vld [vmem:[#allocation33_spill] sm:$0xff] }
 0x3d8   : > { %v1701_v49 = vsub.f32 %v7611_v39, %v7610_v9  ;;  %v7628_v39 = vld [vmem:[#allocation34_spill] sm:$0xff] }
 0x3d9   : > { %3636 = vxpose.xlu0.b32.end [2/2] (short) (narrow) %v3364_v14, 8  ;;  %v1726_v25 = vmul.f32 1.442695, %v1700_v34  ;;  %v6685_v36 = vpop.eup %5124  ;;  %v1707_v14 = vsub.f32 %v7623_v2, %v7622_v30 }
 0x3da   : > { %v1754_v6 = vsel %vm1035_vm12, %v6685_v36, 0.0  ;;  %v1728_v19 = vmul.f32 1.442695, %v1701_v49  ;;  %v7629_v49 = vld [vmem:[#allocation22_spill] sm:$0xff] }
 0x3db   : > { %v6687_v7 = vpop.eup %5126  ;;  %5130 = vpow2.f32 %v1726_v25 }
 0x3dc   : > { %v6691_v15 = vpop.eup %5128  ;;  %v1766_v42 = vsel %vm1035_vm12, %v6687_v7, 0.0 }
 0x3dd   : > { %v1760_v40 = vsel %vm1035_vm12, %v6691_v15, 0.0 }
 0x3df   : > { %3827 = vxpose.xlu1.b32.start [1/2] (short) (narrow) %v6544_v27, 8  ;;  %v7604_v27 = vld [vmem:[#allocation30_spill] sm:$0xff] }
 0x3e1   : > { %v6703_v3 = vpop.eup %5130 }
 0x3e2   : > { %v1772_v46 = vsel %vm1035_vm12, %v6703_v3, 0.0 }
 0x3e7   : > { %3828 = vxpose.xlu1.b32.end [2/2] (short) (narrow) %v6599_v8, 8  ;;  %v1695_v8 = vsub.f32 %v7605_v28, %v7604_v27  ;;  %v1732_v27 = vmul.f32 1.442695, %v1703_v33 }
 0x3e9   : > { %v1716_v50 = vmul.f32 1.442695, %v1695_v8  ;;  %v1740_v8 = vmul.f32 1.442695, %v1707_v14  ;;  %v7632_v14 = vld [vmem:[#allocation45_spill] sm:$0xff] }
 0x3eb   : > { %5132 = vpow2.f32 %v1716_v50  ;;  %v7626_v50 = vld [vmem:[#allocation44_spill] sm:$0xff] }
 0x3ec   : > { %5134 = vpow2.f32 %v1724_v5  ;;  %v7627_v5 = vld [vmem:[#allocation28_spill] sm:$0xff] }
 0x3ed   : > { %5136 = vpow2.f32 %v1720_v22  ;;  %v1709_v10 = vsub.f32 %v7627_v5, %v7626_v50  ;;  %v7631_v22 = vld [vmem:[#allocation23_spill] sm:$0xff] }
 0x3ee   : > { %5138 = vpow2.f32 %v1728_v19 }
 0x3ef   : > { %5140 = vpow2.f32 %v1730_v56  ;;  %v1744_v19 = vmul.f32 1.442695, %v1709_v10 }
 0x3f0   : > { %5142 = vpow2.f32 %v1738_v16 }
 0x3f1   : > { %v6705_v1 = vpop.eup %5132  ;;  %5144 = vpow2.f32 %v1734_v58 }
 0x3f2   : > { %v6709_v52 = vpop.eup %5134  ;;  %v1757_v44 = vsel %vm1035_vm12, %v6705_v1, 0.0  ;;  %5146 = vpow2.f32 %v1742_v48 }
 0x3f3   : > { %v1769_v53 = vsel %vm1035_vm12, %v6709_v52, 0.0  ;;  %v6721_v23 = vpop.eup %5136  ;;  %5148 = vpow2.f32 %v1732_v27 }
 0x3f4   : > { %v6723_v29 = vpop.eup %5138  ;;  %v1763_v63 = vsel %vm1035_vm12, %v6721_v23, 0.0  ;;  %5150 = vpow2.f32 %v1740_v8 }
 0x3f5   : > { %v6727_v32 = vpop.eup %5140  ;;  %v1775_v51 = vsel %vm1035_vm12, %v6723_v29, 0.0  ;;  %5152 = vpow2.f32 %v1736_v18 }
 0x3f6   : > { %v1778_v28 = vsel %vm1035_vm12, %v6727_v32, 0.0  ;;  %v6741_v20 = vpop.eup %5142  ;;  %5154 = vpow2.f32 %v1744_v19 }
 0x3f7   : > { %v6743_v25 = vpop.eup %5144 }
 0x3f8   : > { %v6747_v37 = vpop.eup %5146  ;;  %v1784_v13 = vsel %vm1035_vm12, %v6743_v25, 0.0 }
 0x3f9   : > { %v1796_v56 = vsel %vm1035_vm12, %v6747_v37, 0.0 }
 0x428   : > { %v6737_v34 = vpop.trf.xlu2 }
 0x429   : > { %v3927_v38 = vrot.slane %v6737_v34, 4 }
 0x433   : > { %v3459_v4 = vpop.trf.xlu1 }
 0x434   : > { %v3891_v0 = vrot.slane %v3459_v4, 4 }
 0x435   : > { %v3491_v62 = vpop.trf.xlu0 }
 0x436   : > { %v3903_v9 = vrot.slane %v3491_v62, 4 }
 0x438   : > { %v3395_v12 = vpop.trf.xlu2 }
 0x439   : > { %v3892_v26 = vsel %vm731_vm11, %v3891_v0, %v3395_v12  ;;  %v3893_v61 = vrot.slane %v3395_v12, 4 }
 0x43a   : > { %v3898_v35 = vperm.slane %v3892_v26, %v5746_v11 }
 0x43b   : > { %v6770_v48 = vsel %vm731_vm11, %v3459_v4, %v3893_v61  ;;  %v7634_v4 = vld [vmem:[#allocation35_spill] sm:$0xff] }
 0x443   : > { %v3587_v41 = vpop.trf.xlu1 }
 0x444   : > { %v3915_v21 = vrot.slane %v3587_v41, 4 }
 0x445   : > { %v3427_v43 = vpop.trf.xlu0 }
 0x446   : > { %v3904_v45 = vsel %vm731_vm11, %v3903_v9, %v3427_v43  ;;  %v3905_v24 = vrot.slane %v3427_v43, 4 }
 0x447   : > { %1755 = vadd.xlane.f32.xlu1 %v1754_v6  ;;  %v1710_v6 = vsub.f32 %v7629_v49, %v7628_v39  ;;  %v3910_v47 = vperm.slane %v3904_v45, %v5746_v11 }
 0x448   : > { %1767 = vadd.xlane.f32.xlu2 %v1766_v42  ;;  %v1790_v42 = vsel %vm1035_vm12, %v6741_v20, 0.0  ;;  %v6766_v16 = vsel %vm731_vm11, %v3491_v62, %v3905_v24  ;;  %v7635_v62 = vld [vmem:[#allocation24_spill] sm:$0xff]  ;;  %v3683_v0 = vpop.trf.xlu2 }
 0x449   : > { %v3939_v33 = vrot.slane %v3910_v47, 4  ;;  %v1713_v27 = vsub.f32 %v7635_v62, %v7634_v4 }
 0x44a   : > { %1761 = vadd.xlane.f32.xlu0 %v1760_v40  ;;  %v1711_v40 = vsub.f32 %v7631_v22, %v7630_v55 }
 0x44b   : > { %v6788_v8 = vsel %vm731_vm11, %v3939_v33, %v3898_v35 }
 0x44c   : > { %v1748_v17 = vmul.f32 1.442695, %v1711_v40 }
 0x44f   : > { %1773 = vadd.xlane.f32.xlu1 %v1772_v46  ;;  %v1746_v46 = vmul.f32 1.442695, %v1710_v6  ;;  %v4017_v6 = vrot.slane %v3683_v0, 4 }
 0x450   : > { %1758 = vadd.xlane.f32.xlu2 %v1757_v44  ;;  %v6763_v44 = vpop.eup %5148 }
 0x451   : > { %v6772_v57 = vpop.eup %5150  ;;  %5156 = vpow2.f32 %v1746_v46 }
 0x452   : > { %1770 = vadd.xlane.f32.xlu0 %v1769_v53  ;;  %v6775_v2 = vpop.eup %5152  ;;  %v1793_v18 = vsel %vm1035_vm12, %v6772_v57, 0.0  ;;  %5158 = vpow2.f32 %v1748_v17 }
 0x453   : > { %v3523_v59 = vpop.trf.xlu1 }
 0x454   : > { %v3916_v53 = vsel %vm731_vm11, %v3915_v21, %v3523_v59  ;;  %v3917_v58 = vrot.slane %v3523_v59, 4 }
 0x455   : > { %v3922_v30 = vperm.slane %v3916_v53, %v5746_v11  ;;  %v3555_v10 = vpop.trf.xlu0 }
 0x456   : > { %v6781_v54 = vsel %vm731_vm11, %v3587_v41, %v3917_v58  ;;  %v1787_v41 = vsel %vm1035_vm12, %v6775_v2, 0.0  ;;  %v3928_v39 = vsel %vm731_vm11, %v3927_v38, %v3555_v10  ;;  %v3929_v49 = vrot.slane %v3555_v10, 4 }
 0x457   : > { %1764 = vadd.xlane.f32.xlu1 %v1763_v63  ;;  %v7633_v63 = vld [vmem:[#allocation29_spill] sm:$0xff]  ;;  %v3965_v5 = vrot.slane %v3922_v30, 4  ;;  %v3934_v21 = vperm.slane %v3928_v39, %v5746_v11 }
 0x458   : > { %1776 = vadd.xlane.f32.xlu2 %v1775_v51  ;;  %v1712_v60 = vsub.f32 %v7633_v63, %v7632_v14  ;;  %v3941_v51 = vrot.slane %v3898_v35, 4  ;;  %v3930_v22 = vsel %vm731_vm11, %v6737_v34, %v3929_v49  ;;  %v3811_v46 = vpop.trf.xlu2 }
 0x459   : > { %v3963_v43 = vrot.slane %v3934_v21, 4  ;;  %v3966_v12 = vsel %vm731_vm11, %v3934_v21, %v3965_v5  ;;  %v4041_v35 = vrot.slane %v3811_v46, 4  ;;  %v3926_v21 = vperm.slane %v6781_v54, %v5746_v11 }
 0x45a   : > { %1779 = vadd.xlane.f32.xlu0 %v1778_v28  ;;  %v1781_v28 = vsel %vm1035_vm12, %v6763_v44, 0.0  ;;  %v6793_v50 = vsel %vm731_vm11, %v3910_v47, %v3941_v51  ;;  %v1750_v9 = vmul.f32 1.442695, %v1712_v60 }
 0x45b   : > { %v3964_v61 = vsel %vm731_vm11, %v3963_v43, %v3922_v30 }
 0x45c   : > { %5160 = vpow2.f32 %v1750_v9  ;;  %v3970_v54 = vperm.slane %v3964_v61, %v5763_v31 }
 0x45f   : > { %1791 = vadd.xlane.f32.xlu1 %v1790_v42  ;;  %v6798_v42 = vpop.eup %5154 }
 0x460   : > { %1785 = vadd.xlane.f32.xlu2 %v1784_v13  ;;  %v1752_v13 = vmul.f32 1.442695, %v1713_v27  ;;  %v1799_v26 = vsel %vm1035_vm12, %v6798_v42, 0.0 }
 0x462   : > { %1797 = vadd.xlane.f32.xlu0 %v1796_v56  ;;  %v6804_v56 = vpop.eup %5156  ;;  %5162 = vpow2.f32 %v1752_v13 }
 0x463   : > { %v3747_v55 = vpop.trf.xlu1  ;;  %v6808_v24 = vpop.eup %5158  ;;  %v1802_v34 = vsel %vm1035_vm12, %v6804_v56, 0.0 }
 0x464   : > { %v4015_v40 = vrot.slane %v3747_v55, 4  ;;  %v4018_v19 = vsel %vm731_vm11, %v3747_v55, %v4017_v6  ;;  %v1805_v59 = vsel %vm1035_vm12, %v6808_v24, 0.0  ;;  %v6817_v58 = vpop.eup %5160 }
 0x465   : > { %v3875_v47 = vpop.trf.xlu0  ;;  %v1808_v38 = vsel %vm1035_vm12, %v6817_v58, 0.0  ;;  %v6831_v51 = vperm.slane %v4018_v19, %v5746_v11  ;;  %v3902_v19 = vperm.slane %v6770_v48, %v5746_v11  ;;  %v3946_v48 = vperm.slane %v6788_v8, %v5763_v31 }
 0x466   : > { %v4016_v45 = vsel %vm731_vm11, %v4015_v40, %v3683_v0  ;;  %v4039_v53 = vrot.slane %v3875_v47, 4  ;;  %v6821_v33 = vsel %vm731_vm11, %v3875_v47, %v4041_v35  ;;  %v3914_v47 = vperm.slane %v6766_v16, %v5746_v11 }
 0x467   : > { %1782 = vadd.xlane.f32.xlu1 %v1781_v28  ;;  %v6826_v14 = vperm.slane %v4016_v45, %v5746_v11  ;;  %v3987_v16 = vrot.slane %v3970_v54, 4 }
 0x468   : > { %1794 = vadd.xlane.f32.xlu2 %v1793_v18  ;;  %v4040_v17 = vsel %vm731_vm11, %v4039_v53, %v3811_v46  ;;  %v6823_v30 = vpop.eup %5162  ;;  %v3779_v13 = vpop.trf.xlu2  ;;  %v3974_v53 = vperm.slane %v3966_v12, %v5763_v31 }
 0x469   : > { %v1811_v4 = vsel %vm1035_vm12, %v6823_v30, 0.0  ;;  %v4051_v62 = vrot.slane %v6826_v14, 4  ;;  %v4046_v49 = vperm.slane %v4040_v17, %v5746_v11 }
 0x46a   : > { %1788 = vadd.xlane.f32.xlu0 %v1787_v41  ;;  %v4063_v41 = vrot.slane %v6831_v51, 4 }
 0x46b   : > { %v4075_v40 = vrot.slane %v4046_v49, 4 }
 0x46f   : > { %1800 = vadd.xlane.f32.xlu1 %v1799_v26  ;;  %v3977_v26 = vrot.slane %v3926_v21, 4 }
 0x470   : > { %1803 = vadd.xlane.f32.xlu2 %v1802_v34  ;;  %v3938_v34 = vperm.slane %v3930_v22, %v5746_v11 }
 0x472   : > { %1806 = vadd.xlane.f32.xlu0 %v1805_v59  ;;  %v3953_v59 = vrot.slane %v3902_v19, 4  ;;  %v3978_v35 = vsel %vm731_vm11, %v3938_v34, %v3977_v26  ;;  %v3975_v17 = vrot.slane %v3938_v34, 4  ;;  %v4029_v34 = vrot.slane %v3779_v13, 4 }
 0x473   : > { %v3715_v63 = vpop.trf.xlu1 }
 0x474   : > { %v4003_v60 = vrot.slane %v3715_v63, 4  ;;  %v3954_v22 = vsel %vm731_vm11, %v3914_v47, %v3953_v59  ;;  %v3976_v12 = vsel %vm731_vm11, %v3975_v17, %v3926_v21  ;;  %v3989_v21 = vrot.slane %v3946_v48, 4 }
 0x475   : > { %v3651_v27 = vpop.trf.xlu0 }
 0x476   : > { %v4004_v28 = vsel %vm731_vm11, %v4003_v60, %v3651_v27  ;;  %v4005_v18 = vrot.slane %v3651_v27, 4  ;;  %v3951_v60 = vrot.slane %v3914_v47, 4  ;;  %v3991_v27 = vrot.slane %v3974_v53, 4 }
 0x477   : > { %1809 = vadd.xlane.f32.xlu1 %v1808_v38  ;;  %v4010_v5 = vperm.slane %v4004_v28, %v5746_v11  ;;  %v3950_v38 = vperm.slane %v6793_v50, %v5763_v31  ;;  %v3982_v28 = vperm.slane %v3976_v12, %v5763_v31  ;;  %v6894_v17 = vsel %vm731_vm11, %v3970_v54, %v3989_v21 }
 0x478   : > { %1812 = vadd.xlane.f32.xlu2 %v1811_v4  ;;  %v4006_v10 = vsel %vm731_vm11, %v3715_v63, %v4005_v18  ;;  %v3986_v63 = vperm.slane %v3978_v35, %v5763_v31  ;;  %v3962_v4 = vperm.slane %v3954_v22, %v5763_v31  ;;  %v3952_v50 = vsel %vm731_vm11, %v3951_v60, %v3902_v19 }
 0x479   : > { %v6841_v0 = vperm.slane %v4006_v10, %v5746_v11  ;;  %v4052_v9 = vsel %vm731_vm11, %v4051_v62, %v4010_v5  ;;  %v6870_v62 = vsel %vm731_vm11, %v3987_v16, %v3946_v48  ;;  %v3993_v18 = vrot.slane %v3950_v38, 4 }
 0x47a   : > { %v3999_v61 = vrot.slane %v3986_v63, 4  ;;  %v3958_v10 = vperm.slane %v3952_v50, %v5763_v31  ;;  %v4001_v47 = vrot.slane %v3962_v4, 4  ;;  %v4050_v35 = vperm.slane %v6821_v33, %v5746_v11 }
 0x47b   : > { %v6846_v39 = vsel %vm731_vm11, %v4063_v41, %v6841_v0  ;;  %v6878_v41 = vsel %vm731_vm11, %v3991_v27, %v3950_v38  ;;  %v4053_v22 = vrot.slane %v4010_v5, 4 }
 0x47c   : > { %v6873_v8 = vsel %vm731_vm11, %v3999_v61, %v3962_v4  ;;  %v3997_v26 = vrot.slane %v3958_v10, 4  ;;  %v4087_v38 = vrot.slane %v4050_v35, 4 }
 0x47d   : > { %v4054_v33 = vsel %vm731_vm11, %v6826_v14, %v4053_v22 }
 0x47e   : > { %v6889_v59 = vsel %vm731_vm11, %v3982_v28, %v3997_v26  ;;  %v4062_v54 = vperm.slane %v4054_v33, %v5763_v31 }
 0x483   : > { %v3843_v6 = vpop.trf.xlu1 }
 0x484   : > { %v4027_v55 = vrot.slane %v3843_v6, 4  ;;  %v4030_v60 = vsel %vm731_vm11, %v3843_v6, %v4029_v34  ;;  %v4105_v6 = vrot.slane %v4062_v54, 4 }
 0x485   : > { %v4038_v48 = vperm.slane %v4030_v60, %v5746_v11 }
 0x486   : > { %v4028_v43 = vsel %vm731_vm11, %v4027_v55, %v3779_v13  ;;  %v3995_v55 = vrot.slane %v3982_v28, 4 }
 0x487   : > { %v4034_v45 = vperm.slane %v4028_v43, %v5746_v11  ;;  %v4089_v4 = vrot.slane %v4038_v48, 4 }
 0x488   : > { %v6886_v43 = vsel %vm731_vm11, %v3995_v55, %v3958_v10 }
 0x489   : > { %v4076_v46 = vsel %vm731_vm11, %v4075_v40, %v4034_v45  ;;  %v6883_v40 = vsel %vm731_vm11, %v3974_v53, %v3993_v18  ;;  %v4077_v19 = vrot.slane %v4034_v45, 4  ;;  %v6897_v53 = vsel %vm731_vm11, %v3986_v63, %v4001_v47 }
 0x48a   : > { %v4082_v16 = vperm.slane %v4076_v46, %v5763_v31  ;;  %v4058_v45 = vperm.slane %v4052_v9, %v5763_v31  ;;  %v4088_v63 = vsel %vm731_vm11, %v4087_v38, %v4038_v48  ;;  %v4070_v46 = vperm.slane %v6846_v39, %v5763_v31 }
 0x48b   : > { %v4078_v13 = vsel %vm731_vm11, %v4046_v49, %v4077_v19  ;;  %v4065_v49 = vrot.slane %v6841_v0, 4  ;;  %v4094_v28 = vperm.slane %v4088_v63, %v5763_v31  ;;  %v4090_v50 = vsel %vm731_vm11, %v4050_v35, %v4089_v4 }
 0x48c   : > { %v4099_v61 = vrot.slane %v4082_v16, 4  ;;  %v4086_v5 = vperm.slane %v4078_v13, %v5763_v31  ;;  %v4101_v27 = vrot.slane %v4058_v45, 4  ;;  %v4109_v18 = vrot.slane %v4070_v46, 4 }
 0x48d   : > { %v4098_v0 = vperm.slane %v4090_v50, %v5763_v31  ;;  %v4066_v39 = vsel %vm731_vm11, %v6831_v51, %v4065_v49  ;;  %v4107_v19 = vrot.slane %v4094_v28, 4 }
 0x48e   : > { %v6913_v12 = vsel %vm731_vm11, %v4099_v61, %v4058_v45  ;;  %v6916_v14 = vsel %vm731_vm11, %v4086_v5, %v4105_v6  ;;  %v6919_v9 = vsel %vm731_vm11, %v4082_v16, %v4101_v27  ;;  %v4103_v10 = vrot.slane %v4086_v5, 4 }
 0x48f   : > { %v6925_v55 = vsel %vm731_vm11, %v4094_v28, %v4109_v18  ;;  %v4074_v34 = vperm.slane %v4066_v39, %v5763_v31  ;;  %v4111_v21 = vrot.slane %v4098_v0, 4  ;;  %v6937_v60 = vsel %vm731_vm11, %v4107_v19, %v4070_v46 }
 0x490   : > { %v6930_v26 = vsel %vm731_vm11, %v4103_v10, %v4062_v54 }
 0x491   : > { %v6934_v47 = vsel %vm731_vm11, %v4111_v21, %v4074_v34  ;;  %v4113_v35 = vrot.slane %v4074_v34, 4 }
 0x493   : > { %v6940_v22 = vsel %vm731_vm11, %v4098_v0, %v4113_v35 }
 0x4ba   : > { %v1756_v38 = vpop.xlane.xlu1 %1755 }
 0x4bb   : > { %5164 = vrcp.f32 %v1756_v38  ;;  %v1768_v51 = vpop.xlane.xlu2 %1767 }
 0x4bc   : > { %5166 = vrcp.f32 %v1768_v51 }
 0x4bd   : > { %v1762_v13 = vpop.xlane.xlu0 %1761 }
 0x4be   : > { %5168 = vrcp.f32 %v1762_v13 }
 0x4c1   : > { %v5165_v48 = vpop.eup %5164 }
 0x4c2   : > { %v5167_v16 = vpop.eup %5166  ;;  %v1834_v33 = vmul.f32 %v5165_v48, %v6685_v36  ;;  %v1774_v45 = vpop.xlane.xlu1 %1773 }
 0x4c3   : > { %v1838_v54 = vmul.f32 %v5167_v16, %v6687_v7  ;;  %5170 = vrcp.f32 %v1774_v45  ;;  %v1759_v63 = vpop.xlane.xlu2 %1758 }
 0x4c4   : > { %v5169_v4 = vpop.eup %5168  ;;  %v1856_v61 = vrot.slane %v1834_v33, 4  ;;  %5172 = vrcp.f32 %v1759_v63  ;;  %v2328_v21 = vsel %vm1035_vm12, %v1834_v33, 0.0 }
 0x4c5   : > { %v1854_v5 = vrot.slane %v1838_v54, 4  ;;  %v1771_v6 = vpop.xlane.xlu0 %1770  ;;  %v1836_v49 = vmul.f32 %v5169_v4, %v6691_v15  ;;  %v2331_v4 = vsel %vm1035_vm12, %v1838_v54, 0.0 }
 0x4c6   : > { %5174 = vrcp.f32 %v1771_v6  ;;  %v1857_v27 = vsel %vm731_vm11, %v1838_v54, %v1856_v61 }
 0x4c7   : > { %v1855_v28 = vsel %vm731_vm11, %v1854_v5, %v1834_v33  ;;  %v1865_v36 = vperm.slane %v1857_v27, %v5746_v11  ;;  %v1868_v50 = vrot.slane %v1836_v49, 4  ;;  %v2329_v7 = vsel %vm1035_vm12, %v1836_v49, 0.0 }
 0x4c8   : > { %v2330_v38 = vadd.f32 %v2329_v7, %v2328_v21  ;;  %v1861_v16 = vperm.slane %v1855_v28, %v5746_v11 }
 0x4c9   : > { %v5171_v46 = vpop.eup %5170 }
 0x4ca   : > { %v5173_v18 = vpop.eup %5172  ;;  %v1840_v10 = vmul.f32 %v5171_v46, %v6703_v3  ;;  %v1765_v0 = vpop.xlane.xlu1 %1764  ;;  %v1916_v3 = vrot.slane %v1865_v36, 4  ;;  %v2332_v6 = vadd.f32 %v2331_v4, %v2330_v38  ;;  %v1904_v46 = vrot.slane %v1861_v16, 4 }
 0x4cb   : > { %v1835_v39 = vmul.f32 %v5173_v18, %v6705_v1  ;;  %5176 = vrcp.f32 %v1765_v0  ;;  %v1777_v34 = vpop.xlane.xlu2 %1776 }
 0x4cc   : > { %v5175_v15 = vpop.eup %5174  ;;  %v1866_v19 = vrot.slane %v1840_v10, 4  ;;  %v1869_v35 = vsel %vm731_vm11, %v1840_v10, %v1868_v50  ;;  %5178 = vrcp.f32 %v1777_v34  ;;  %v2333_v28 = vsel %vm1035_vm12, %v1840_v10, 0.0 }
 0x4cd   : > { %v1877_v51 = vperm.slane %v1869_v35, %v5746_v11  ;;  %v2020_v13 = vrot.slane %v1835_v39, 4  ;;  %v1780_v48 = vpop.xlane.xlu0 %1779  ;;  %v1839_v45 = vmul.f32 %v5175_v15, %v6709_v52  ;;  %v2347_v38 = vsel %vm1035_vm12, %v1835_v39, 0.0 }
 0x4ce   : > { %5180 = vrcp.f32 %v1780_v48  ;;  %v1867_v1 = vsel %vm731_vm11, %v1866_v19, %v1836_v49  ;;  %v2334_v48 = vadd.f32 %v2333_v28, %v2332_v6 }
 0x4cf   : > { %v1914_v63 = vrot.slane %v1877_v51, 4  ;;  %v1873_v33 = vperm.slane %v1867_v1, %v5746_v11  ;;  %v1917_v61 = vsel %vm731_vm11, %v1877_v51, %v1916_v3  ;;  %v2021_v27 = vsel %vm731_vm11, %v1839_v45, %v2020_v13 }
 0x4d0   : > { %v2018_v50 = vrot.slane %v1839_v45, 4  ;;  %v6966_v34 = vperm.slane %v1917_v61, %v5763_v31  ;;  %v6970_v19 = vperm.slane %v2021_v27, %v5746_v11  ;;  %v2350_v61 = vsel %vm1035_vm12, %v1839_v45, 0.0 }
 0x4d1   : > { %v5177_v5 = vpop.eup %5176  ;;  %v1915_v49 = vsel %vm731_vm11, %v1914_v63, %v1865_v36  ;;  %v1905_v15 = vsel %vm731_vm11, %v1873_v33, %v1904_v46 }
 0x4d2   : > { %v5179_v18 = vpop.eup %5178  ;;  %v1837_v52 = vmul.f32 %v5177_v5, %v6721_v23  ;;  %v1792_v7 = vpop.xlane.xlu1 %1791  ;;  %v6974_v36 = vperm.slane %v1915_v49, %v5763_v31  ;;  %v6979_v13 = vperm.slane %v1905_v15, %v5763_v31  ;;  %v2019_v63 = vsel %vm731_vm11, %v2018_v50, %v1835_v39 }
 0x4d3   : > { %v1841_v0 = vmul.f32 %v5179_v18, %v6723_v29  ;;  %5182 = vrcp.f32 %v1792_v7  ;;  %v1786_v54 = vpop.xlane.xlu2 %1785  ;;  %v1902_v29 = vrot.slane %v1873_v33, 4  ;;  %v2080_v4 = vrot.slane %v6970_v19, 4 }
 0x4d4   : > { %v5181_v21 = vpop.eup %5180  ;;  %v2032_v10 = vrot.slane %v1837_v52, 4  ;;  %v2348_v35 = vsel %vm1035_vm12, %v1837_v52, 0.0  ;;  %5184 = vrcp.f32 %v1786_v54  ;;  %v1964_v33 = vrot.slane %v6966_v34, 4 }
 0x4d5   : > { %v1798_v23 = vpop.xlane.xlu0 %1797  ;;  %v1842_v51 = vmul.f32 %v5181_v21, %v6727_v32  ;;  %v2349_v3 = vadd.f32 %v2348_v35, %v2347_v38  ;;  %v2030_v27 = vrot.slane %v1841_v0, 4  ;;  %v2352_v32 = vsel %vm1035_vm12, %v1841_v0, 0.0 }
 0x4d6   : > { %5186 = vrcp.f32 %v1798_v23  ;;  %v2033_v1 = vsel %vm731_vm11, %v1841_v0, %v2032_v10  ;;  %v1960_v46 = vrot.slane %v6974_v36, 4  ;;  %v1903_v18 = vsel %vm731_vm11, %v1902_v29, %v1861_v16 }
 0x4d7   : > { %v2041_v28 = vperm.slane %v2033_v1, %v5746_v11  ;;  %v1880_v7 = vrot.slane %v1842_v51, 4  ;;  %v1956_v49 = vrot.slane %v6979_v13, 4  ;;  %v2351_v45 = vadd.f32 %v2350_v61, %v2349_v3 }
 0x4d8   : > { %v2335_v54 = vsel %vm1035_vm12, %v1842_v51, 0.0  ;;  %v6996_v35 = vperm.slane %v1903_v18, %v5763_v31  ;;  %v7003_v3 = vperm.slane %v2019_v63, %v5746_v11  ;;  %v2031_v1 = vsel %vm731_vm11, %v2030_v27, %v1837_v52 }
 0x4d9   : > { %v5183_v5 = vpop.eup %5182  ;;  %v2081_v61 = vsel %vm731_vm11, %v2041_v28, %v2080_v4  ;;  %v7015_v52 = vperm.slane %v2031_v1, %v5746_v11 }
 0x4da   : > { %v5185_v6 = vpop.eup %5184  ;;  %v1846_v39 = vmul.f32 %v5183_v5, %v6741_v20  ;;  %v1783_v50 = vpop.xlane.xlu1 %1782  ;;  %v2078_v5 = vrot.slane %v2041_v28, 4  ;;  %v2068_v4 = vrot.slane %v7003_v3, 4  ;;  %v7019_v27 = vperm.slane %v2081_v61, %v5763_v31 }
 0x4db   : > { %v1844_v15 = vmul.f32 %v5185_v6, %v6743_v25  ;;  %5188 = vrcp.f32 %v1783_v50  ;;  %v1795_v0 = vpop.xlane.xlu2 %1794  ;;  %v2336_v25 = vadd.f32 %v2335_v54, %v2334_v48  ;;  %v2353_v50 = vadd.f32 %v2352_v32, %v2351_v45 }
 0x4dc   : > { %v5187_v21 = vpop.eup %5186  ;;  %v1878_v10 = vrot.slane %v1846_v39, 4  ;;  %v1881_v16 = vsel %vm731_vm11, %v1846_v39, %v1880_v7  ;;  %5190 = vrcp.f32 %v1795_v0 }
 0x4dd   : > { %v1889_v20 = vperm.slane %v1881_v16, %v5746_v11  ;;  %v1892_v23 = vrot.slane %v1844_v15, 4  ;;  %v7000_v29 = vmul.f32 %v5187_v21, %v6747_v37  ;;  %v1789_v38 = vpop.xlane.xlu0 %1788  ;;  %v2337_v37 = vsel %vm1035_vm12, %v1844_v15, 0.0 }
 0x4de   : > { %5192 = vrcp.f32 %v1789_v38  ;;  %v1879_v63 = vsel %vm731_vm11, %v1878_v10, %v1842_v51  ;;  %v2338_v10 = vadd.f32 %v2337_v37, %v2336_v25 }
 0x4df   : > { %v1890_v18 = vrot.slane %v7000_v29, 4  ;;  %v1893_v6 = vsel %vm731_vm11, %v7000_v29, %v1892_v23  ;;  %v1940_v7 = vrot.slane %v1889_v20, 4  ;;  %v1885_v1 = vperm.slane %v1879_v63, %v5746_v11 }
 0x4e0   : > { %v1901_v0 = vperm.slane %v1893_v6, %v5746_v11 }
 0x4e1   : > { %v5189_v48 = vpop.eup %5188  ;;  %v1891_v51 = vsel %vm731_vm11, %v1890_v18, %v1844_v15  ;;  %v2079_v18 = vsel %vm731_vm11, %v2078_v5, %v6970_v19  ;;  %v1928_v63 = vrot.slane %v1885_v1, 4 }
 0x4e2   : > { %v5191_v28 = vpop.eup %5190  ;;  %v1843_v32 = vmul.f32 %v5189_v48, %v6763_v44  ;;  %v1801_v45 = vpop.xlane.xlu1 %1800  ;;  %v1941_v21 = vsel %vm731_vm11, %v1901_v0, %v1940_v7  ;;  %v1938_v16 = vrot.slane %v1901_v0, 4  ;;  %v1897_v25 = vperm.slane %v1891_v51, %v5746_v11 }
 0x4e3   : > { %5194 = vrcp.f32 %v1801_v45  ;;  %v1804_v23 = vpop.xlane.xlu2 %1803  ;;  %v7025_v38 = vperm.slane %v1941_v21, %v5763_v31  ;;  %v1847_v54 = vmul.f32 %v5191_v28, %v6772_v57 }
 0x4e4   : > { %v5193_v6 = vpop.eup %5192  ;;  %v2354_v61 = vsel %vm1035_vm12, %v1843_v32, 0.0  ;;  %5196 = vrcp.f32 %v1804_v23  ;;  %v1939_v44 = vsel %vm731_vm11, %v1938_v16, %v1889_v20  ;;  %v2339_v20 = vsel %vm1035_vm12, %v1846_v39, 0.0 }
 0x4e5   : > { %v2355_v7 = vadd.f32 %v2354_v61, %v2353_v50  ;;  %v7032_v0 = vmul.f32 %v5193_v6, %v6775_v2  ;;  %v1807_v15 = vpop.xlane.xlu0 %1806  ;;  %v1965_v37 = vsel %vm731_vm11, %v7025_v38, %v1964_v33  ;;  %v1945_v57 = vperm.slane %v1939_v44, %v5763_v31 }
 0x4e6   : > { %5198 = vrcp.f32 %v1807_v15  ;;  %v2044_v50 = vrot.slane %v1843_v32, 4  ;;  %2232 = vrot.lane.b32.xlu2 %v1965_v37, %s5378_s2  ;;  %v2340_v48 = vadd.f32 %v2339_v20, %v2338_v10  ;;  %v2042_v28 = vrot.slane %v1847_v54, 4 }
 0x4e7   : > { %v2356_v2 = vsel %vm1035_vm12, %v7032_v0, 0.0  ;;  %v1961_v5 = vsel %vm731_vm11, %v1945_v57, %v1960_v46  ;;  %v1929_v33 = vsel %vm731_vm11, %v1897_v25, %v1928_v63  ;;  %v1958_v39 = vrot.slane %v1945_v57, 4 }
 0x4e8   : > { %v2357_v19 = vadd.f32 %v2356_v2, %v2355_v7  ;;  %2216 = vrot.lane.b32.xlu0 %v1961_v5, %s5380_s16  ;;  %v1926_v21 = vrot.slane %v1897_v25, 4  ;;  %v5387_v16 = vmov 10.0   ;;  %v2358_v23 = vsel %vm1035_vm12, %v1847_v54, 0.0 }
 0x4e9   : > { %v5195_v45 = vpop.eup %5194  ;;  %5200 = vrcp.f32 %v5387_v16  ;;  %v2056_v10 = vrot.slane %v7032_v0, 4  ;;  %v1937_v61 = vperm.slane %v1929_v33, %v5763_v31  ;;  %v2045_v46 = vsel %vm731_vm11, %v1847_v54, %v2044_v50 }
 0x4ea   : > { %v5197_v51 = vpop.eup %5196  ;;  %v1849_v6 = vmul.f32 %v5195_v45, %v6798_v42  ;;  %v1810_v44 = vpop.xlane.xlu1 %1809  ;;  %v1962_v15 = vrot.slane %v7025_v38, 4  ;;  %v1927_v25 = vsel %vm731_vm11, %v1926_v21, %v1885_v1  ;;  %v2359_v57 = vadd.f32 %v2358_v23, %v2357_v19 }
 0x4eb   : > { %5202 = vrcp.f32 %v1810_v44  ;;  %v1813_v7 = vpop.xlane.xlu2 %1812  ;;  %v7060_v2 = vmul.f32 %v5197_v51, %v6804_v56  ;;  %v1957_v42 = vsel %vm731_vm11, %v1937_v61, %v1956_v49  ;;  %v1959_v38 = vsel %vm731_vm11, %v1958_v39, %v6974_v36 }
 0x4ec   : > { %v5199_v37 = vpop.eup %5198  ;;  %v2057_v20 = vsel %vm731_vm11, %v1849_v6, %v2056_v10  ;;  %v2360_v54 = vsel %vm1035_vm12, %v1849_v6, 0.0  ;;  %2200 = vrot.lane.b32.xlu1 %v1957_v42, %s5383_s9  ;;  %v2043_v1 = vsel %vm731_vm11, %v2042_v28, %v1843_v32  ;;  %v2054_v50 = vrot.slane %v1849_v6, 4 }
 0x4ed   : > { %v7066_v63 = vperm.slane %v2057_v20, %v5746_v11  ;;  %v7074_v56 = vmul.f32 %v5199_v37, %v6808_v24  ;;  %5204 = vrcp.f32 %v1813_v7  ;;  %v7077_v19 = vperm.slane %v1927_v25, %v5763_v31 }
 0x4ee   : > { %v2341_v5 = vsel %vm1035_vm12, %v7000_v29, 0.0  ;;  %2208 = vrot.lane.b32.xlu2 %v1959_v38, %s5384_s11  ;;  %v7083_v45 = vperm.slane %v2079_v18, %v5763_v31  ;;  %v2069_v24 = vsel %vm731_vm11, %v7015_v52, %v2068_v4  ;;  %v2053_v32 = vperm.slane %v2045_v46, %v5746_v11 }
 0x4ef   : > { %v5201_v49 = vpop.eup %5200  ;;  %v2102_v36 = vrot.slane %v7066_v63, 4  ;;  %v2361_v28 = vadd.f32 %v2360_v54, %v2359_v57  ;;  %v1971_v33 = vperm.slane %v7060_v2, %v5746_v11  ;;  %v7636_v29 = vrot.slane %v6996_v35, 4 }
 0x4f0   : > { %v2362_v21 = vsel %vm1035_vm12, %v7074_v56, 0.0  ;;  %v1954_v16 = vrot.slane %v1937_v61, 4  ;;  %v2367_v51 = vmul.f32 10.0, %v5201_v49  ;;  %v7101_v4 = vperm.slane %v2043_v1, %v5746_v11 }
 0x4f1   : > { %v1953_v39 = vsel %vm731_vm11, %v7077_v19, %v7636_v29  ;;  %v5203_v18 = vpop.eup %5202  ;;  %v2342_v23 = vadd.f32 %v2341_v5, %v2340_v48  ;;  %v1963_v6 = vsel %vm731_vm11, %v1962_v15, %v6966_v34  ;;  %v2055_v44 = vsel %vm731_vm11, %v2054_v50, %v7032_v0 }
 0x4f2   : > { %2184 = vrot.lane.b32.xlu0 %v1953_v39, %s7560_s29  ;;  %v1852_v10 = vmul.f32 %v5203_v18, %v6817_v58  ;;  %v2343_v46 = vsel %vm1035_vm12, %v7060_v2, 0.0  ;;  %v2103_v7 = vsel %vm731_vm11, %v2102_v36, %v2053_v32  ;;  %v2368_v25 = vsub.f32 1.0, %v2367_v51 }
 0x4f3   : > { %v2061_v61 = vperm.slane %v2055_v44, %v5746_v11  ;;  %v5205_v37 = vpop.eup %5204  ;;  %v2363_v57 = vadd.f32 %v2362_v21, %v2361_v28  ;;  %v1988_v58 = vrot.slane %v1971_v33, 4  ;;  %v1955_v34 = vsel %vm731_vm11, %v1954_v16, %v6979_v13 }
 0x4f4   : > { %v1976_v20 = vrot.slane %v1852_v10, 4  ;;  %v1981_v48 = vperm.slane %v1852_v10, %v5746_v11  ;;  %v7114_v42 = vmul.f32 %v5205_v37, %v6823_v30  ;;  %2224 = vrot.lane.b32.xlu1 %v1963_v6, %s7559_s17  ;;  %v2369_v0 = vmul.f32 %v5201_v49, %v2368_v25 }
 0x4f5   : > { %v2092_v15 = vrot.slane %v7101_v4, 4  ;;  %v7121_v54 = vperm.slane %v2103_v7, %v5763_v31  ;;  %vm2371_vm0 = vweird.f32 %v5201_v49  ;;  %v7125_v1 = vperm.slane %v2069_v24, %v5763_v31 }
 0x4f6   : > { %v1989_v38 = vsel %vm731_vm11, %v1981_v48, %v1988_v58  ;;  %v2364_v30 = vsel %vm1035_vm12, %v7114_v42, 0.0  ;;  %2192 = vrot.lane.b32.xlu2 %v1955_v34, %s5382_s22  ;;  %v2345_v5 = vsel %vm1035_vm12, %v1852_v10, 0.0  ;;  %v1977_v36 = vsel %vm731_vm11, 0.0, %v1976_v20 }
 0x4f7   : > { %v7131_v50 = vperm.slane %v1989_v38, %v5763_v31  ;;  %v2093_v13 = vsel %vm731_vm11, %v2061_v61, %v2092_v15  ;;  %v2365_v28 = vadd.f32 %v2364_v30, %v2363_v57  ;;  %v2370_v29 = vadd.f32 %v5201_v49, %v2369_v0 }
 0x4f8   : > { %v2344_v39 = vadd.f32 %v2343_v46, %v2342_v23  ;;  %v2124_v24 = vrot.slane %v7083_v45, 4  ;;  %v1986_v18 = vrot.slane %v1981_v48, 4  ;;  %v2104_v21 = vrot.slane %v2053_v32, 4 }
 0x4f9   : > { %v2066_v16 = vrot.slane %v7015_v52, 4  ;;  %v1966_v51 = vrot.slane %v7060_v2, 4  ;;  %v2372_v6 = vsel %vm2371_vm0, %v5201_v49, %v2370_v29  ;;  %v7143_v10 = vperm.slane %v2093_v13, %v5763_v31 }
 0x4fa   : > { %2194 = vrot.lane.b32.xlu0 %v7131_v50, %s5382_s22  ;;  %v2346_v44 = vadd.f32 %v2345_v5, %v2344_v39  ;;  %v2374_v7 = vmul.f32 %v2372_v6, %v2365_v28  ;;  %v1987_v23 = vsel %vm731_vm11, %v1986_v18, %v1971_v33  ;;  %v2105_v46 = vsel %vm731_vm11, %v7066_v63, %v2104_v21 }
 0x4fb   : > { %v7149_v25 = vperm.slane %v1977_v36, %v5746_v11  ;;  %v2125_v52 = vsel %vm731_vm11, %v7121_v54, %v2124_v24  ;;  %v2120_v2 = vrot.slane %v7125_v1, 4  ;;  %v7155_v49 = vperm.slane %v1987_v23, %v5763_v31 }
 0x4fc   : > { %v2113_v32 = vperm.slane %v2105_v46, %v5763_v31  ;;  %2272 = vrot.lane.b32.xlu1 %v2125_v52, %s5380_s16  ;;  %5004 = vmatpush.xpose.msk.msra.mxu0 %vm1035_vm12, %v2374_v7  ;;  %v2090_v33 = vrot.slane %v2061_v61, 4  ;;  %v2128_v37 = vrot.slane %v7019_v27, 4  ;;  %v1967_v57 = vsel %vm731_vm11, 0.0, %v1966_v51 }
 0x4fd   : > { %5033 = vmatpush.xpose.msk.msra.mxu1 %vm1035_vm12, %v2374_v7  ;;  %5034 = vmatpush.xpose.msk.msrb.mxu2 %vm1035_vm12, %v2374_v7  ;;  %v2121_v63 = vsel %vm731_vm11, %v7143_v10, %v2120_v2  ;;  %v2373_v20 = vmul.f32 %v2372_v6, %v2346_v44  ;;  %v1998_v48 = vrot.slane %v7149_v25, 4  ;;  %v2067_v61 = vsel %vm731_vm11, %v2066_v16, %v7003_v3 }
 0x4fe   : > { %5035 = vmatpush.xpose.msk.msrb.mxu3 %vm1035_vm12, %v2374_v7  ;;  %2256 = vrot.lane.b32.xlu2 %v2121_v63, %s5383_s9  ;;  %v2091_v58 = vsel %vm731_vm11, %v2090_v33, %v7101_v4  ;;  %v2010_v34 = vrot.slane %v7155_v49, 4  ;;  %v2129_v0 = vsel %vm731_vm11, %v2113_v32, %v2128_v37  ;;  %v1975_v15 = vperm.slane %v1967_v57, %v5746_v11 }
 0x4ff   : > { %v2097_v38 = vperm.slane %v2091_v58, %v5763_v31  ;;  %v2126_v3 = vrot.slane %v2113_v32, 4  ;;  %v2073_v30 = vperm.slane %v2067_v61, %v5763_v31  ;;  %v2145_v4 = vperm.slane %v7114_v42, %v5746_v11 }
 0x500   : > { %5005 = vmatpush.xpose.msk.msra.mxu0 %vm1035_vm12, %v2373_v20  ;;  %v1999_v13 = vsel %vm731_vm11, %v1998_v48, %v1975_v15  ;;  %v2011_v5 = vsel %vm731_vm11, 0.0, %v2010_v34  ;;  %v1950_v36 = vrot.slane %v7077_v19, 4  ;;  %v2140_v18 = vrot.slane %v7114_v42, 4 }
 0x501   : > { %5036 = vmatpush.xpose.msk.msra.mxu1 %vm1035_vm12, %v2373_v20  ;;  %5037 = vmatpush.xpose.msk.msrb.mxu2 %vm1035_vm12, %v2373_v20  ;;  %v2114_v28 = vrot.slane %v2097_v38, 4  ;;  %v2127_v29 = vsel %vm731_vm11, %v2126_v3, %v7019_v27  ;;  %v2005_v39 = vperm.slane %v1999_v13, %v5763_v31  ;;  %v2150_v24 = vrot.slane %v2145_v4, 4 }
 0x502   : > { %2288 = vrot.lane.b32.xlu0 %v2129_v0, %s5378_s2  ;;  %5038 = vmatpush.xpose.msk.msrb.mxu3 %vm1035_vm12, %v2373_v20  ;;  %v2130_v16 = vrot.slane %v7074_v56, 4 }
 0x503   : > { %5006 = vmatmul.msk.f32.vlgmr.msra.gmra.mxu0 %vm1035_vm12, %v6870_v62  ;;  %v2116_v62 = vrot.slane %v2073_v30, 4  ;;  %v2014_v27 = vrot.slane %v2005_v39, 4 }
 0x504   : > { %2186 = vrot.lane.b32.xlu1 %v2011_v5, %s7560_s29  ;;  %5009 = vmatmul.msk.f32.vlgmr.msra.gmra.mxu1 %vm1035_vm12, %v6919_v9  ;;  %v7203_v9 = vsel %vm731_vm11, %v1950_v36, %v6996_v35  ;;  %v2122_v35 = vrot.slane %v7121_v54, 4  ;;  %v2000_v54 = vrot.slane %v1975_v15, 4  ;;  %v2131_v6 = vsel %vm731_vm11, 0.0, %v2130_v16 }
 0x505   : > { %5012 = vmatmul.msk.f32.vlgmr.msrb.gmra.mxu2 %vm1035_vm12, %v6883_v40  ;;  %5017 = vmatmul.msk.f32.vlgmr.msrb.gmra.mxu3 %vm1035_vm12, %v6925_v55  ;;  %v2117_v19 = vsel %vm731_vm11, %v2097_v38, %v2116_v62  ;;  %v7207_v40 = vsel %vm731_vm11, %v2114_v28, %v2073_v30  ;;  %v2135_v55 = vperm.slane %v7074_v56, %v5746_v11  ;;  %v2015_v42 = vsel %vm731_vm11, 0.0, %v2014_v27 }
 0x506   : > { %2280 = vrot.lane.b32.xlu2 %v2127_v29, %s7559_s17  ;;  %v2123_v56 = vsel %vm731_vm11, %v2122_v35, %v7083_v45  ;;  %v2012_v45 = vrot.slane %v7131_v50, 4  ;;  %v2139_v23 = vperm.slane %v2131_v6, %v5746_v11 }
 0x507   : > { %v2151_v21 = vsel %vm731_vm11, %v2150_v24, %v2135_v55  ;;  %v2152_v46 = vrot.slane %v2135_v55, 4 }
 0x508   : > { %v7227_v51 = vperm.slane %v2151_v21, %v5763_v31  ;;  %v2164_v52 = vrot.slane %v2139_v23, 4 }
 0x50a   : > { %2240 = vrot.lane.b32.xlu0 %v2117_v19, %s7560_s29 }
 0x50b   : > { %5007 = vmatmul.msk.f32.gmra.mxu0 %vm1035_vm12, %v6913_v12  ;;  %v2141_v12 = vsel %vm731_vm11, 0.0, %v2140_v18 }
 0x50c   : > { %2210 = vrot.lane.b32.xlu1 %v2005_v39, %s5384_s11  ;;  %5010 = vmatmul.msk.f32.gmra.mxu1 %vm1035_vm12, %v6878_v41  ;;  %v2118_v41 = vrot.slane %v7143_v10, 4  ;;  %v2149_v44 = vperm.slane %v2141_v12, %v5746_v11 }
 0x50d   : > { %5013 = vmatmul.msk.f32.gmra.mxu2 %vm1035_vm12, %v6916_v14  ;;  %5018 = vmatmul.msk.f32.gmra.mxu3 %vm1035_vm12, %v6873_v8  ;;  %v2001_v8 = vsel %vm731_vm11, %v7149_v25, %v2000_v54  ;;  %v2174_v14 = vrot.slane %v7227_v51, 4  ;;  %v2013_v25 = vsel %vm731_vm11, 0.0, %v2012_v45 }
 0x50e   : > { %2218 = vrot.lane.b32.xlu2 %v2015_v42, %s5380_s16  ;;  %v2119_v7 = vsel %vm731_vm11, %v2118_v41, %v7125_v1  ;;  %v2009_v10 = vperm.slane %v2001_v8, %v5763_v31 }
 0x50f   : > { %v2175_v1 = vsel %vm731_vm11, 0.0, %v2174_v14 }
 0x510   : > { %v2016_v50 = vrot.slane %v2009_v10, 4 }
 0x512   : > { %2264 = vrot.lane.b32.xlu0 %v2123_v56, %s5384_s11 }
 0x513   : > { %5008 = vmatmul.msk.f32.gmra.mxu0 %vm1035_vm12, %v6894_v17  ;;  %v2162_v17 = vrot.slane %v2149_v44, 4 }
 0x514   : > { %2248 = vrot.lane.b32.xlu1 %v2119_v7, %s5382_s22  ;;  %5011 = vmatmul.msk.f32.gmra.mxu1 %vm1035_vm12, %v6930_v26  ;;  %v2153_v26 = vsel %vm731_vm11, %v2145_v4, %v2152_v46 }
 0x515   : > { %5014 = vmatmul.msk.f32.gmra.mxu2 %vm1035_vm12, %v6886_v43  ;;  %5019 = vmatmul.msk.f32.gmra.mxu3 %vm1035_vm12, %v6934_v47  ;;  %v2163_v2 = vsel %vm731_vm11, %v2162_v17, %v2139_v23  ;;  %v2165_v43 = vsel %vm731_vm11, %v2149_v44, %v2164_v52  ;;  %v2017_v47 = vsel %vm731_vm11, 0.0, %v2016_v50  ;;  %v2161_v32 = vperm.slane %v2153_v26, %v5763_v31 }
 0x516   : > { %2242 = vrot.lane.b32.xlu2 %v2175_v1, %s7560_s29  ;;  %v2169_v33 = vperm.slane %v2163_v2, %v5763_v31  ;;  %v2173_v63 = vperm.slane %v2165_v43, %v5763_v31 }
 0x517   : > { %v2176_v37 = vrot.slane %v2161_v32, 4 }
 0x518   : > { %v2180_v57 = vrot.slane %v2173_v63, 4 }
 0x519   : > { %v2177_v20 = vsel %vm731_vm11, 0.0, %v2176_v37 }
 0x51a   : > { %2202 = vrot.lane.b32.xlu0 %v2013_v25, %s5383_s9 }
 0x51c   : > { %2234 = vrot.lane.b32.xlu1 %v2017_v47, %s5378_s2 }
 0x51d   : > { %5015 = vmatmul.msk.f32.gmra.mxu2 %vm1035_vm12, %v6937_v60  ;;  %5020 = vmatmul.msk.f32.gmra.mxu3 %vm1035_vm12, %v6897_v53  ;;  %v2181_v53 = vsel %vm731_vm11, 0.0, %v2180_v57  ;;  %v2178_v60 = vrot.slane %v2169_v33, 4 }
 0x51e   : > { %2266 = vrot.lane.b32.xlu2 %v2169_v33, %s5384_s11 }
 0x51f   : > { %v2179_v48 = vsel %vm731_vm11, 0.0, %v2178_v60 }
 0x522   : > { %2226 = vrot.lane.b32.xlu0 %v2009_v10, %s7559_s17 }
 0x524   : > { %2258 = vrot.lane.b32.xlu1 %v2177_v20, %s5383_s9 }
 0x525   : > { %5016 = vmatmul.msk.f32.gmra.mxu2 %vm1035_vm12, %v6889_v59  ;;  %5021 = vmatmul.msk.f32.gmra.mxu3 %vm1035_vm12, %v6940_v22 }
 0x526   : > { %2290 = vrot.lane.b32.xlu2 %v2181_v53, %s5378_s2 }
 0x52a   : > { %2250 = vrot.lane.b32.xlu0 %v2161_v32, %s5382_s22 }
 0x52c   : > { %2282 = vrot.lane.b32.xlu1 %v2173_v63, %s7559_s17 }
 0x532   : > { %2274 = vrot.lane.b32.xlu0 %v2179_v48, %s5380_s16 }
 0x540   : > { %v2233_v61 = vpop.permute.xlu2 %2232 }
 0x548   : > { %v2209_v58 = vpop.permute.xlu2 %2208 }
 0x550   : > { %v2193_v0 = vpop.permute.xlu2 %2192 }
 0x558   : > { %v2257_v39 = vpop.permute.xlu2 %2256 }
 0x55a   : > { %v2217_v59 = vpop.permute.xlu0 %2216 }
 0x55e   : > { %v2201_v34 = vpop.permute.xlu1 %2200 }
 0x560   : > { %v2281_v19 = vpop.permute.xlu2 %2280 }
 0x564   : > { %v2185_v22 = vpop.permute.xlu0 %2184 }
 0x565   : > { %v2294_v15 = vsel %vm1035_vm12, %v7203_v9, %v2185_v22 }
 0x566   : > { %v2297_v38 = vsel %vm2296_vm1, %v2294_v15, %v2193_v0  ;;  %v2225_v4 = vpop.permute.xlu1 %2224 }
 0x567   : > { %v2300_v3 = vsel %vm2299_vm2, %v2297_v38, %v2201_v34 }
 0x568   : > { %v2303_v30 = vsel %vm2302_vm3, %v2300_v3, %v2209_v58  ;;  %v2219_v35 = vpop.permute.xlu2 %2218 }
 0x569   : > { %v2306_v13 = vsel %vm2305_vm4, %v2303_v30, %v2217_v59 }
 0x56a   : > { %v2309_v5 = vsel %vm2308_vm5, %v2306_v13, %v2225_v4 }
 0x56b   : > { %v2312_v36 = vsel %vm2311_vm6, %v2309_v5, %v2233_v61 }
 0x56c   : > { %4784 = vst [vmem:[%s7293_s21] sm:$0xff] %v2312_v36  ;;  %v2195_v28 = vpop.permute.xlu0 %2194 }
 0x56e   : > { %v2273_v29 = vpop.permute.xlu1 %2272 }
 0x570   : > { %v2243_v23 = vpop.permute.xlu2 %2242 }
 0x571   : > { %v2315_v57 = vsel %vm1035_vm12, %v7227_v51, %v2243_v23 }
 0x574   : > { %v2289_v62 = vpop.permute.xlu0 %2288 }
 0x576   : > { %v2187_v24 = vpop.permute.xlu1 %2186 }
 0x577   : > { %v2295_v54 = vsel %vm1035_vm12, %v7155_v49, %v2187_v24 }
 0x578   : > { %v2298_v10 = vsel %vm2296_vm1, %v2295_v54, %v2195_v28  ;;  %v2267_v63 = vpop.permute.xlu2 %2266 }
 0x57c   : > { %v2241_v9 = vpop.permute.xlu0 %2240 }
 0x57d   : > { %v2314_v16 = vsel %vm1035_vm12, %v7207_v40, %v2241_v9 }
 0x57e   : > { %v2211_v55 = vpop.permute.xlu1 %2210 }
 0x580   : > { %v4186_v27 = vpop.f32.mrf.mxu0  ;;  %v2291_v22 = vpop.permute.xlu2 %2290 }
 0x581   : > { %v4195_v18 = vpop.f32.mrf.mxu1  ;;  %4234 = vxpose.xlu2.b32.start [1/2] (short) (narrow) %v4186_v27, 16 }
 0x584   : > { %v2265_v21 = vpop.permute.xlu0 %2264 }
 0x586   : > { %v2249_v42 = vpop.permute.xlu1 %2248 }
 0x587   : > { %v2316_v12 = vsel %vm2296_vm1, %v2314_v16, %v2249_v42 }
 0x588   : > { %v2318_v41 = vsel %vm2299_vm2, %v2316_v12, %v2257_v39  ;;  %v4204_v56 = vpop.f32.mrf.mxu2  ;;  %v4189_v14 = vpop.f32.mrf.mxu0 }
 0x589   : > { %v2320_v8 = vsel %vm2302_vm3, %v2318_v41, %v2265_v21  ;;  %v4198_v6 = vpop.f32.mrf.mxu1  ;;  %4235 = vxpose.xlu2.b32.end [2/2] (short) (narrow) %v4189_v14, 16  ;;  %v4219_v46 = vpop.f32.mrf.mxu3 }
 0x58a   : > { %v2322_v44 = vsel %vm2305_vm4, %v2320_v8, %v2273_v29  ;;  %4298 = vxpose.xlu1.b32.start [1/2] (short) (narrow) %v4198_v6, 16 }
 0x58b   : > { %v2324_v40 = vsel %vm2308_vm5, %v2322_v44, %v2281_v19 }
 0x58c   : > { %v2203_v7 = vpop.permute.xlu0 %2202  ;;  %v2326_v45 = vsel %vm2311_vm6, %v2324_v40, %v2289_v62 }
 0x58d   : > { %v2301_v49 = vsel %vm2299_vm2, %v2298_v10, %v2203_v7  ;;  %4785 = vst [vmem:[%s7293_s21 + $0x8] sm:$0xff] %v2326_v45 }
 0x58e   : > { %v2235_v1 = vpop.permute.xlu1 %2234  ;;  %v2304_v17 = vsel %vm2302_vm3, %v2301_v49, %v2211_v55 }
 0x58f   : > { %v2307_v2 = vsel %vm2305_vm4, %v2304_v17, %v2219_v35 }
 0x590   : > { %v4207_v50 = vpop.f32.mrf.mxu2  ;;  %v4192_v25 = vpop.f32.mrf.mxu0 }
 0x591   : > { %v4201_v26 = vpop.f32.mrf.mxu1  ;;  %4266 = vxpose.xlu0.b32.start [1/2] (short) (narrow) %v4192_v25, 16  ;;  %4330 = vxpose.xlu2.b32.start [1/2] (short) (narrow) %v4204_v56, 16  ;;  %v4222_v20 = vpop.f32.mrf.mxu3 }
 0x592   : > { %4299 = vxpose.xlu1.b32.end [2/2] (short) (narrow) %v4201_v26, 16 }
 0x594   : > { %v2227_v52 = vpop.permute.xlu0 %2226 }
 0x595   : > { %v2310_v43 = vsel %vm2308_vm5, %v2307_v2, %v2227_v52 }
 0x596   : > { %v2313_v47 = vsel %vm2311_vm6, %v2310_v43, %v2235_v1  ;;  %v2259_v33 = vpop.permute.xlu1 %2258 }
 0x597   : > { %4786 = vst [vmem:[%s7293_s21 + $0x10] sm:$0x3] %v2313_v47 }
 0x598   : > { %v4210_v32 = vpop.f32.mrf.mxu2 }
 0x599   : > { %4267 = vxpose.xlu0.b32.end [2/2] (short) (narrow) %v4195_v18, 16  ;;  %4331 = vxpose.xlu2.b32.end [2/2] (short) (narrow) %v4207_v50, 16  ;;  %v4225_v51 = vpop.f32.mrf.mxu3 }
 0x59c   : > { %v2251_v37 = vpop.permute.xlu0 %2250 }
 0x59d   : > { %v2317_v53 = vsel %vm2296_vm1, %v2315_v57, %v2251_v37 }
 0x59e   : > { %v2319_v60 = vsel %vm2299_vm2, %v2317_v53, %v2259_v33  ;;  %v2283_v59 = vpop.permute.xlu1 %2282 }
 0x59f   : > { %v2321_v58 = vsel %vm2302_vm3, %v2319_v60, %v2267_v63 }
 0x5a0   : > { %v4213_v48 = vpop.f32.mrf.mxu2 }
 0x5a1   : > { %4362 = vxpose.xlu0.b32.start [1/2] (short) (narrow) %v4210_v32, 16  ;;  %4426 = vxpose.xlu2.b32.start [1/2] (short) (narrow) %v4222_v20, 16  ;;  %v4228_v3 = vpop.f32.mrf.mxu3 }
 0x5a4   : > { %v2275_v61 = vpop.permute.xlu0 %2274 }
 0x5a5   : > { %v2323_v34 = vsel %vm2305_vm4, %v2321_v58, %v2275_v61 }
 0x5a6   : > { %v2325_v0 = vsel %vm2308_vm5, %v2323_v34, %v2283_v59 }
 0x5a7   : > { %v2327_v15 = vsel %vm2311_vm6, %v2325_v0, %v2291_v22 }
 0x5a8   : > { %4787 = vst [vmem:[%s7293_s21 + $0x18] sm:$0x3] %v2327_v15  ;;  %v4216_v38 = vpop.f32.mrf.mxu2 }
 0x5a9   : > { %4394 = vxpose.xlu1.b32.start [1/2] (short) (narrow) %v4216_v38, 16  ;;  %4363 = vxpose.xlu0.b32.end [2/2] (short) (narrow) %v4213_v48, 16  ;;  %v4231_v30 = vpop.f32.mrf.mxu3 }
 0x5aa   : > { %4427 = vxpose.xlu2.b32.end [2/2] (short) (narrow) %v4225_v51, 16 }
 0x5b1   : > { %4395 = vxpose.xlu1.b32.end [2/2] (short) (narrow) %v4219_v46, 16  ;;  %4458 = vxpose.xlu0.b32.start [1/2] (short) (narrow) %v4228_v3, 16 }
 0x5b9   : > { %4459 = vxpose.xlu0.b32.end [2/2] (short) (narrow) %v4231_v30, 16 }
 0x61a   : > { %v4250_v4 = vpop.trf.xlu2 }
 0x61b   : > { %v4492_v19 = vrot.slane %v4250_v4, 4 }
 0x622   : > { %v4251_v13 = vpop.trf.xlu2 }
 0x623   : > { %v4604_v49 = vrot.slane %v4251_v13, 4 }
 0x62a   : > { %v4346_v36 = vpop.trf.xlu2 }
 0x62b   : > { %v4502_v55 = vrot.slane %v4346_v36, 4 }
 0x62e   : > { %v4314_v28 = vpop.trf.xlu1 }
 0x62f   : > { %v4490_v9 = vrot.slane %v4314_v28, 4  ;;  %v4493_v16 = vsel %vm731_vm11, %v4314_v28, %v4492_v19 }
 0x630   : > { %v7330_v14 = vperm.slane %v4493_v16, %v5746_v11 }
 0x631   : > { %v4491_v27 = vsel %vm731_vm11, %v4490_v9, %v4250_v4 }
 0x632   : > { %v4347_v39 = vpop.trf.xlu2  ;;  %v4497_v42 = vperm.slane %v4491_v27, %v5746_v11  ;;  %v4552_v25 = vrot.slane %v7330_v14, 4 }
 0x633   : > { %v4614_v12 = vrot.slane %v4347_v39, 4 }
 0x634   : > { %v4540_v10 = vrot.slane %v4497_v42, 4 }
 0x635   : > { %v4282_v5 = vpop.trf.xlu0 }
 0x636   : > { %v4315_v62 = vpop.trf.xlu1  ;;  %v4504_v35 = vrot.slane %v4282_v5, 4  ;;  %v4503_v56 = vsel %vm731_vm11, %v4502_v55, %v4282_v5 }
 0x637   : > { %v4509_v40 = vperm.slane %v4503_v56, %v5746_v11  ;;  %v4602_v23 = vrot.slane %v4315_v62, 4  ;;  %v4605_v33 = vsel %vm731_vm11, %v4315_v62, %v4604_v49 }
 0x638   : > { %v4505_v7 = vsel %vm731_vm11, %v4346_v36, %v4504_v35  ;;  %v7373_v30 = vperm.slane %v4605_v33, %v5746_v11 }
 0x639   : > { %v7341_v50 = vperm.slane %v4505_v7, %v5746_v11  ;;  %v4541_v47 = vsel %vm731_vm11, %v4509_v40, %v4540_v10  ;;  %v4603_v32 = vsel %vm731_vm11, %v4602_v23, %v4251_v13  ;;  %v4538_v57 = vrot.slane %v4509_v40, 4 }
 0x63a   : > { %v4549_v34 = vperm.slane %v4541_v47, %v5763_v31  ;;  %v7370_v3 = vperm.slane %v4603_v32, %v5746_v11 }
 0x63b   : > { %v4442_v18 = vpop.trf.xlu2  ;;  %v4553_v59 = vsel %vm731_vm11, %v7341_v50, %v4552_v25  ;;  %v4539_v27 = vsel %vm731_vm11, %v4538_v57, %v4497_v42 }
 0x63c   : > { %v4514_v8 = vrot.slane %v4442_v18, 4  ;;  %v7380_v28 = vperm.slane %v4553_v59, %v5763_v31  ;;  %v4592_v9 = vrot.slane %v4549_v34, 4  ;;  %v4545_v10 = vperm.slane %v4539_v27, %v5763_v31 }
 0x63d   : > { %v4283_v29 = vpop.trf.xlu0 }
 0x63e   : > { %v4616_v6 = vrot.slane %v4283_v29, 4  ;;  %v4615_v45 = vsel %vm731_vm11, %v4614_v12, %v4283_v29  ;;  %v4588_v47 = vrot.slane %v4545_v10, 4 }
 0x63f   : > { %v7346_v52 = vperm.slane %v4615_v45, %v5746_v11 }
 0x640   : > { %v4617_v26 = vsel %vm731_vm11, %v4347_v39, %v4616_v6 }
 0x641   : > { %v7354_v20 = vperm.slane %v4617_v26, %v5746_v11  ;;  %v4650_v61 = vrot.slane %v7346_v52, 4 }
 0x643   : > { %v4443_v51 = vpop.trf.xlu2  ;;  %v4662_v5 = vrot.slane %v7354_v20, 4 }
 0x644   : > { %v4626_v39 = vrot.slane %v4443_v51, 4 }
 0x645   : > { %v4378_v24 = vpop.trf.xlu0  ;;  %v4663_v56 = vsel %vm731_vm11, %v4662_v5, %v7373_v30  ;;  %v4600_v5 = vrot.slane %v7380_v28, 4 }
 0x646   : > { %v4516_v21 = vrot.slane %v4378_v24, 4  ;;  %v4515_v1 = vsel %vm731_vm11, %v4514_v8, %v4378_v24 }
 0x647   : > { %v4521_v2 = vperm.slane %v4515_v1, %v5746_v11 }
 0x648   : > { %v4517_v44 = vsel %vm731_vm11, %v4442_v18, %v4516_v21  ;;  %v4651_v21 = vsel %vm731_vm11, %v4650_v61, %v7370_v3 }
 0x649   : > { %v7338_v46 = vperm.slane %v4517_v44, %v5746_v11  ;;  %v4564_v22 = vrot.slane %v4521_v2, 4  ;;  %v4550_v44 = vrot.slane %v7341_v50, 4  ;;  %v4657_v50 = vperm.slane %v4651_v21, %v5763_v31 }
 0x64b   : > { %v4576_v53 = vrot.slane %v7338_v46, 4  ;;  %v4551_v32 = vsel %vm731_vm11, %v4550_v44, %v7330_v14 }
 0x64c   : > { %v4557_v14 = vperm.slane %v4551_v32, %v5763_v31 }
 0x64d   : > { %v7326_v54 = vpop.trf.xlu0  ;;  %v4410_v41 = vpop.trf.xlu1 }
 0x64e   : > { %v4528_v17 = vrot.slane %v4410_v41, 4  ;;  %v4628_v0 = vrot.slane %v7326_v54, 4  ;;  %v4627_v7 = vsel %vm731_vm11, %v4626_v39, %v7326_v54 }
 0x64f   : > { %v4633_v54 = vperm.slane %v4627_v7, %v5746_v11 }
 0x650   : > { %v4629_v19 = vsel %vm731_vm11, %v4443_v51, %v4628_v0  ;;  %v4664_v0 = vrot.slane %v7373_v30, 4  ;;  %v4596_v51 = vrot.slane %v4557_v14, 4 }
 0x651   : > { %v4637_v45 = vperm.slane %v4629_v19, %v5746_v11 }
 0x655   : > { %v4474_v43 = vpop.trf.xlu0  ;;  %v4411_v48 = vpop.trf.xlu1 }
 0x656   : > { %v4526_v63 = vrot.slane %v4474_v43, 4  ;;  %v4529_v37 = vsel %vm731_vm11, %v4474_v43, %v4528_v17  ;;  %v4640_v13 = vrot.slane %v4411_v48, 4  ;;  %v4669_v17 = vperm.slane %v4663_v56, %v5763_v31 }
 0x657   : > { %v7358_v60 = vperm.slane %v4529_v37, %v5746_v11 }
 0x658   : > { %v4527_v58 = vsel %vm731_vm11, %v4526_v63, %v4410_v41 }
 0x659   : > { %v4533_v15 = vperm.slane %v4527_v58, %v5746_v11  ;;  %v4577_v38 = vsel %vm731_vm11, %v7358_v60, %v4576_v53  ;;  %v4574_v26 = vrot.slane %v7358_v60, 4  ;;  %v4700_v53 = vrot.slane %v4657_v50, 4 }
 0x65a   : > { %v7376_v4 = vperm.slane %v4577_v38, %v5763_v31  ;;  %v4708_v60 = vrot.slane %v4669_v17, 4  ;;  %v4665_v38 = vsel %vm731_vm11, %v7354_v20, %v4664_v0 }
 0x65b   : > { %v4562_v36 = vrot.slane %v4533_v15, 4  ;;  %v4565_v29 = vsel %vm731_vm11, %v4533_v15, %v4564_v22  ;;  %v4673_v20 = vperm.slane %v4665_v38, %v5763_v31 }
 0x65c   : > { %v4598_v62 = vrot.slane %v7376_v4, 4  ;;  %v4573_v24 = vperm.slane %v4565_v29, %v5763_v31  ;;  %v4652_v29 = vrot.slane %v7370_v3, 4  ;;  %v4601_v30 = vsel %vm731_vm11, %v7376_v4, %v4600_v5 }
 0x65d   : > { %v4475_v55 = vpop.trf.xlu0  ;;  %v4563_v18 = vsel %vm731_vm11, %v4562_v36, %v4521_v2  ;;  %v4712_v19 = vrot.slane %v4673_v20, 4 }
 0x65e   : > { %v4638_v35 = vrot.slane %v4475_v55, 4  ;;  %v4641_v16 = vsel %vm731_vm11, %v4475_v55, %v4640_v13  ;;  %v4599_v12 = vsel %vm731_vm11, %v4598_v62, %v7380_v28  ;;  %v4593_v41 = vsel %vm731_vm11, %v4573_v24, %v4592_v9 }
 0x65f   : > { %v4649_v8 = vperm.slane %v4641_v16, %v5746_v11  ;;  %4735 = vrot.lane.b32.xlu2 %v4599_v12, %s7559_s17  ;;  %4723 = vrot.lane.b32.xlu1 %v4593_v41, %s5383_s9  ;;  %v4590_v42 = vrot.slane %v4573_v24, 4  ;;  %v4569_v6 = vperm.slane %v4563_v18, %v5763_v31  ;;  %v4688_v13 = vrot.slane %v4637_v45, 4 }
 0x660   : > { %v4639_v40 = vsel %vm731_vm11, %v4638_v35, %v4411_v48  ;;  %v4575_v48 = vsel %vm731_vm11, %v4574_v26, %v7338_v46  ;;  %v4676_v28 = vrot.slane %v4633_v54, 4  ;;  %v4653_v3 = vsel %vm731_vm11, %v7346_v52, %v4652_v29 }
 0x661   : > { %v4645_v49 = vperm.slane %v4639_v40, %v5746_v11  ;;  %v4686_v23 = vrot.slane %v4649_v8, 4  ;;  %v4591_v1 = vsel %vm731_vm11, %v4590_v42, %v4549_v34  ;;  %v4586_v25 = vrot.slane %v4569_v6, 4 }
 0x662   : > { %4719 = vrot.lane.b32.xlu0 %v4591_v1, %s5382_s22  ;;  %v4589_v57 = vsel %vm731_vm11, %v4569_v6, %v4588_v47  ;;  %v4581_v34 = vperm.slane %v4575_v48, %v5763_v31  ;;  %v4689_v39 = vsel %vm731_vm11, %v4649_v8, %v4688_v13  ;;  %v4661_v27 = vperm.slane %v4653_v3, %v5763_v31 }
 0x663   : > { %v4674_v2 = vrot.slane %v4645_v49, 4  ;;  %v4687_v43 = vsel %vm731_vm11, %v4686_v23, %v4637_v45  ;;  %v7419_v37 = vsel %vm731_vm11, %v4586_v25, %v4545_v10  ;;  %v4697_v24 = vperm.slane %v4689_v39, %v5763_v31 }
 0x664   : > { %v4693_v33 = vperm.slane %v4687_v43, %v5763_v31  ;;  %v4597_v15 = vsel %vm731_vm11, %v4581_v34, %v4596_v51  ;;  %v4594_v62 = vrot.slane %v4581_v34, 4  ;;  %v4677_v4 = vsel %vm731_vm11, %v4645_v49, %v4676_v28 }
 0x665   : > { %v4675_v63 = vsel %vm731_vm11, %v4674_v2, %v4633_v54  ;;  %v4713_v55 = vsel %vm731_vm11, %v4697_v24, %v4712_v19  ;;  %v4685_v18 = vperm.slane %v4677_v4, %v5763_v31  ;;  %v4704_v21 = vrot.slane %v4661_v27, 4 }
 0x666   : > { %v4681_v11 = vperm.slane %v4675_v63, %v5763_v31  ;;  %v4709_v59 = vsel %vm731_vm11, %v4693_v33, %v4708_v60  ;;  %v4706_v46 = vrot.slane %v4693_v33, 4  ;;  %v4595_v9 = vsel %vm731_vm11, %v4594_v62, %v4557_v14 }
 0x667   : > { %4715 = vrot.lane.b32.xlu1 %v4589_v57, %s7560_s29  ;;  %v4705_v52 = vsel %vm731_vm11, %v4685_v18, %v4704_v21  ;;  %v4702_v35 = vrot.slane %v4685_v18, 4  ;;  %v4710_v31 = vrot.slane %v4697_v24, 4 }
 0x668   : > { %v4701_v61 = vsel %vm731_vm11, %v4681_v11, %v4700_v53  ;;  %v4698_v58 = vrot.slane %v4681_v11, 4  ;;  %v4707_v36 = vsel %vm731_vm11, %v4706_v46, %v4669_v17 }
 0x669   : > { %4743 = vrot.lane.b32.xlu2 %v4701_v61, %s7560_s29  ;;  %v4703_v16 = vsel %vm731_vm11, %v4702_v35, %v4661_v27 }
 0x66a   : > { %4759 = vrot.lane.b32.xlu0 %v4709_v59, %s5380_s16  ;;  %v7433_v22 = vsel %vm731_vm11, %v4698_v58, %v4657_v50 }
 0x66f   : > { %4731 = vrot.lane.b32.xlu1 %v4597_v15, %s5380_s16  ;;  %s4823_s16 = sshll.u32 %s7293_s21, 4  ;;  %s4824_s16 = int_to_ptr.vmem [resolvable:$true] %s4823_s16 }
 0x671   : > { %4755 = vrot.lane.b32.xlu2 %v4707_v36, %s5384_s11 }
 0x672   : > { %4739 = vrot.lane.b32.xlu0 %v4601_v30, %s5378_s2 }
 0x677   : > { %4727 = vrot.lane.b32.xlu1 %v4595_v9, %s5384_s11  ;;  %s7561_s11 = sshll.u32 %s5451_s28, 4 }
 0x679   : > { %4767 = vrot.lane.b32.xlu2 %v4713_v55, %s5378_s2  ;;  %s4822_s2 = scalar_lea.hbm %s7542_s7, %s7561_s11 }
 0x67a   : > { %s4825_s30 = sshll.u32 %s4822_s2, 4  ;;  %s4826_s30 = int_to_ptr.hbm [resolvable:$true] %s4825_s30 }
 0x67b   : > { %s5280_s13 = sshra.s32 %s4826_s30, 4  ;;  %s5281_s13 = int_to_ptr.hbm [resolvable:$true] %s5280_s13 }
 0x67c   : > { %p5287_p9 = scmp.lt.s32.totalorder %s5281_s13, %s7542_s7 }
 0x67f   : > { %4751 = vrot.lane.b32.xlu1 %v4705_v52, %s5383_s9  ;;  %s5282_s9 = scalar_lea.hbm %s5281_s13, 32 }
 0x680   : > { %p5283_p1 = scmp.ne.s32.totalorder %s5281_s13, %s5282_s9 }
 0x682   : > { %p5284_p4 = pnand %p5283_p1, %p5496_p3 }
 0x684   : > { %p5285_p8 = pneg %p5284_p4 }
 0x687   : > { %4747 = vrot.lane.b32.xlu1 %v4703_v16, %s5382_s22  ;;  %s5286_s22 = scalar_lea.hbm %s7542_s7, 64 }
 0x688   : > { %p5288_p10 = scmp.lt.s32.totalorder %s5286_s22, %s5282_s9 }
 0x68a   : > { %p5289_p2 = por %p5288_p10, %p5287_p9 }
 0x68c   : > { %p5290_p11 = pnand %p5289_p2, %p5285_p8 }
 0x68e   : > { %5293 = shalt.err (!%p5290_p11)
}
 0x68f   : > { %s5388_s23 = smov 256   ;;  %s5389_s12 = smov 512   ;;  %v4711_v12 = vsel %vm731_vm11, %v4710_v31, %v4673_v20 }
 0x690   : > { %s7637_s2 = smov 16   ;;  %s7638_s11 = smov 96  }
 0x691   : > { %5046 = dma.vmem_to_hbm [thread:$0]  (%p5496_p3), %s4824_s16, 512, %s4826_s30, %s4796_s10, %s5388_s23, %s5389_s12, %s7637_s2  }
 0x692   : > { %4763 = vrot.lane.b32.xlu1 %v4711_v12, %s7638_s11  ;;  %s4952_s29 = sshll.u32 %s5523_s20, 4  ;;  %s7639_s16 = sshll.u32 %s5451_s28, 4 }
 0x693   : > { %s315_s17 = scalar_lea.vmem [#allocation7], %s4952_s29  ;;  %s4807_s10 = scalar_lea.hbm %s7541_s6, %s7639_s16 }
 0x694   : > { %s4809_s13 = sshll.u32 %s315_s17, 4  ;;  %s4811_s9 = sshll.u32 %s4807_s10, 4  ;;  %s4810_s13 = int_to_ptr.vmem [resolvable:$true] %s4809_s13  ;;  %s4812_s9 = int_to_ptr.hbm [resolvable:$true] %s4811_s9 }
 0x695   : > { %s4791_s28 = scalar_lea.sflag [#allocation4], %s5523_s20  ;;  %s5308_s14 = sshra.s32 %s4812_s9, 4  ;;  %s5309_s14 = int_to_ptr.hbm [resolvable:$true] %s5308_s14 }
 0x696   : > { %s5310_s21 = scalar_lea.hbm %s5309_s14, 16  ;;  %s5314_s12 = scalar_lea.hbm %s7541_s6, 32 }
 0x697   : > { %p5311_p12 = scmp.ne.s32.totalorder %s5309_s14, %s5310_s21  ;;  %p5315_p5 = scmp.lt.s32.totalorder %s5309_s14, %s7541_s6 }
 0x698   : > { %p5316_p7 = scmp.lt.s32.totalorder %s5314_s12, %s5310_s21 }
 0x699   : > { %p5312_p13 = pnand %p5311_p12, %p5496_p3 }
 0x69a   : > { %p5317_p1 = por %p5316_p7, %p5315_p5 }
 0x69b   : > { %p5313_p0 = pneg %p5312_p13 }
 0x69d   : > { %p5318_p4 = pnand %p5317_p1, %p5313_p0 }
 0x6b9   : > { %v4736_v7 = vpop.permute.xlu2 %4735 }
 0x6c3   : > { %v4744_v25 = vpop.permute.xlu2 %4743 }
 0x6c4   : > { %v4777_v2 = vsel %vm1035_vm12, %v7433_v22, %v4744_v25 }
 0x6cb   : > { %v4756_v26 = vpop.permute.xlu2 %4755 }
 0x6d1   : > { %v4724_v41 = vpop.permute.xlu1 %4723 }
 0x6d3   : > { %v4768_v57 = vpop.permute.xlu2 %4767 }
 0x6d4   : > { %v4720_v56 = vpop.permute.xlu0 %4719 }
 0x6d9   : > { %v4716_v8 = vpop.permute.xlu1 %4715 }
 0x6da   : > { %v4770_v44 = vsel %vm1035_vm12, %v7419_v37, %v4716_v8 }
 0x6db   : > { %v4771_v40 = vsel %vm2296_vm1, %v4770_v44, %v4720_v56 }
 0x6dc   : > { %v4760_v6 = vpop.permute.xlu0 %4759  ;;  %v4772_v10 = vsel %vm2299_vm2, %v4771_v40, %v4724_v41 }
 0x6e1   : > { %v4732_v42 = vpop.permute.xlu1 %4731 }
 0x6e4   : > { %v4740_v1 = vpop.permute.xlu0 %4739 }
 0x6e9   : > { %v4728_v45 = vpop.permute.xlu1 %4727 }
 0x6ea   : > { %v4773_v49 = vsel %vm2302_vm3, %v4772_v10, %v4728_v45 }
 0x6eb   : > { %v4774_v23 = vsel %vm2305_vm4, %v4773_v49, %v4732_v42 }
 0x6ec   : > { %v4775_v17 = vsel %vm2308_vm5, %v4774_v23, %v4736_v7 }
 0x6ed   : > { %v4776_v50 = vsel %vm2311_vm6, %v4775_v17, %v4740_v1 }
 0x6ee   : > { %4788 = vst [vmem:[%s315_s17] sm:$0xff] %v4776_v50 }
 0x6f1   : > { %v4752_v54 = vpop.permute.xlu1 %4751 }
 0x6f9   : > { %v4748_v43 = vpop.permute.xlu1 %4747 }
 0x6fa   : > { %v4778_v47 = vsel %vm2296_vm1, %v4777_v2, %v4748_v43 }
 0x6fb   : > { %v4779_v32 = vsel %vm2299_vm2, %v4778_v47, %v4752_v54 }
 0x6fc   : > { %v4780_v33 = vsel %vm2302_vm3, %v4779_v32, %v4756_v26 }
 0x6fd   : > { %v4781_v63 = vsel %vm2305_vm4, %v4780_v33, %v4760_v6 }
 0x704   : > { %v4764_v37 = vpop.permute.xlu1 %4763 }
 0x705   : > { %v4782_v11 = vsel %vm2308_vm5, %v4781_v63, %v4764_v37 }
 0x706   : > { %v4783_v53 = vsel %vm2311_vm6, %v4782_v11, %v4768_v57 }
 0x707   : > { %4789 = vst [vmem:[%s315_s17 + $0x8] sm:$0xff] %v4783_v53 }
 0x708   : > { %5321 = shalt.err (!%p5318_p4)
}
 0x709   : > { %5045 = dma.vmem_to_hbm [thread:$0]  (%p5496_p3), %s4810_s13, 256, %s4812_s9, %s4791_s28  }
 0x70a PF: > { %s4840_s20 = sand.u32 1, %s5356_s24   ;;  %p7640_p8 = scmp.ge.s32.totalorder %s5368_s27, 2 }
 0x70b   : > { %s4841_s17 = scalar_lea.sflag [#allocation4], %s4840_s20 }
 0x70c   : > { %p5058_p9 = pnand %p7640_p8, %p5465_p6 }
 0x70e   : > { %p5059_p10 = pneg %p5058_p9 }
 0x710   : > { %5347 = dma.done.wait (%p5059_p10), %s4841_s17, 256  }
 0x711   : > { %5349 = vsyncadd (%p5059_p10), %s4841_s17, 4294967040  ;;  %s4851_s16 = scalar_lea.sflag [#allocation9], %s4840_s20 }
 0x712   : > { %5351 = dma.done.wait (%p5059_p10), %s4851_s16, 512  }
 0x713   : > { %5353 = vsyncadd (%p5059_p10), %s4851_s16, 4294966784  ;;  %p25_p3 = scmp.ge.s32.totalorder %s5483_s15, 4   ;;  %s7641_s24 = smov %s5360_s25 }
 0x714   : > { %s7642_s25 = smov %s5364_s26  ;;  %s7643_s26 = smov %s5492_s18 }
 0x715   : > { %s7644_s27 = smov %s5483_s15  ;;  %27 = sbr.rel (!%p25_p3) target bundleno = 10 (0xa), region = 110 }
 0x71a   :  { %4857 = vsyncpa [#allocation3], 1 }
 0x71b   :  { %4859 = vsyncpa [#allocation3 + $0x1], 1 }
 0x71c   :  { %4860 = vsyncpa [#allocation6], 1 }
 0x71d   :  { %4861 = vsyncpa [#allocation4], 1 }
 0x71e   :  { %4863 = vsyncpa [#allocation4 + $0x1], 1 }
 0x71f   :  { %4864 = vsyncpa [#allocation9], 1 }
 0x720   :  { %4866 = vsyncpa [#allocation9 + $0x1], 1 }

</bundles_post_ra>
